<compile_context>
chip_gen: v6e
topology: v6e:2x2x1
jax: 0.10.0
libtpu: 0.0.40
codegen_flags: <defaults>
</compile_context>

<pallas_src>
import math

import jax
import jax.numpy as jnp
from jax.experimental import pallas as pl
from jax.experimental.pallas import tpu as pltpu

BN_EPS = 1e-5
NUM_ROTATIONS = 16
TRUNK_CH = 1024          # densenet121.features output channels (per trunk)
HEAD_IN = 2 * TRUNK_CH   # concat(color_feat, depth_feat) -> 2048
HEAD_MID = 64            # grasp-conv0 output channels
MAX_TILE_P = 256         # lane tile over pixel positions (multiple of 128)


def _round_up(x, m):
    return ((x + m - 1) // m) * m


# ----------------------------------------------------------------------------
# Pallas kernel.  Layout: channels on sublanes, pixels on lanes.  BatchNorm
# (inference form) is pre-folded into per-channel scale/shift columns.
# Grid: P tiles only; w0^T is one resident VMEM block.
# ----------------------------------------------------------------------------
def _graspnet_head_kernel(x_ref, s0_ref, b0_ref, w0t_ref, s1_ref, b1_ref,
                          w1_ref, o_ref):
    # grasp-norm0 (folded) + grasp-relu0 — f32 VPU math (v5e has no bf16 VPU).
    x = x_ref[...].astype(jnp.float32)                         # (2048, tp)
    h0 = jnp.maximum(x * s0_ref[...] + b0_ref[...], 0.0)
    # grasp-conv0 (1x1, bias=False): bf16 MXU matmul, f32 accumulate.
    a = jnp.dot(w0t_ref[...], h0.astype(jnp.bfloat16),
                preferred_element_type=jnp.float32)            # (64, tp)
    # grasp-norm1 (folded) + grasp-relu1
    h1 = jnp.maximum(a * s1_ref[...] + b1_ref[...], 0.0)
    # grasp-conv1 (1x1, 64->1, bias=False): VPU multiply + sublane reduce,
    # lane-dense (1, tp) store.
    o_ref[...] = jnp.sum(h1 * w1_ref[...], axis=0, keepdims=True)


def graspnet_head(feat_cp, params):
    """feat_cp: (HEAD_IN, P) channels-first flattened features -> (1, P)."""
    c, p = feat_cp.shape
    assert c == HEAD_IN
    p_pad = _round_up(p, 128)
    if p_pad > MAX_TILE_P:
        tp = MAX_TILE_P
        p_pad = _round_up(p, tp)
    else:
        tp = p_pad

    x = feat_cp
    if p_pad != p:
        # Padded pixel columns flow through BN/ReLU/matmuls and produce garbage
        # values; they are discarded by the [:, :p] slice below — keep in sync.
        x = jnp.pad(x, ((0, 0), (0, p_pad - p)))
    x = x.astype(jnp.bfloat16)

    s0 = params["bn0_scale"].reshape(HEAD_IN, 1)
    b0 = params["bn0_shift"].reshape(HEAD_IN, 1)
    s1 = params["bn1_scale"].reshape(HEAD_MID, 1)
    b1 = params["bn1_shift"].reshape(HEAD_MID, 1)
    w0t = params["w0_t"].astype(jnp.bfloat16)   # (64, 2048)
    w1 = params["w1"]                           # (64, 1)

    grid = (p_pad // tp,)
    out = pl.pallas_call(
        _graspnet_head_kernel,
        out_shape=jax.ShapeDtypeStruct((1, p_pad), jnp.float32),
        grid_spec=pltpu.PrefetchScalarGridSpec(
            num_scalar_prefetch=0,
            grid=grid,
            in_specs=[
                pl.BlockSpec((HEAD_IN, tp), lambda i: (0, i)),        # x (C, P)
                pl.BlockSpec((HEAD_IN, 1), lambda i: (0, 0)),         # bn0 scale
                pl.BlockSpec((HEAD_IN, 1), lambda i: (0, 0)),         # bn0 shift
                pl.BlockSpec((HEAD_MID, HEAD_IN), lambda i: (0, 0)),  # w0^T resident
                pl.BlockSpec((HEAD_MID, 1), lambda i: (0, 0)),        # bn1 scale
                pl.BlockSpec((HEAD_MID, 1), lambda i: (0, 0)),        # bn1 shift
                pl.BlockSpec((HEAD_MID, 1), lambda i: (0, 0)),        # w1
            ],
            out_specs=pl.BlockSpec((1, tp), lambda i: (0, i)),        # lane-dense
        ),
        compiler_params=pltpu.CompilerParams(
            dimension_semantics=("parallel",),
            vmem_limit_bytes=32 * 1024 * 1024),
    )(x, s0, b0, w0t, s1, b1, w1)
    return out[:, :p]


def _graspnet_head_ref(feat_cp, params):
    """Pure-JAX reference for the head (applies the same bf16 quantization)."""
    x = feat_cp.astype(jnp.bfloat16).astype(jnp.float32)
    h0 = jnp.maximum(x * params["bn0_scale"][:, None] + params["bn0_shift"][:, None], 0.0)
    w0t = params["w0_t"].astype(jnp.bfloat16).astype(jnp.float32)
    a = jnp.dot(w0t, h0.astype(jnp.bfloat16).astype(jnp.float32),
                preferred_element_type=jnp.float32)
    h1 = jnp.maximum(a * params["bn1_scale"][:, None] + params["bn1_shift"][:, None], 0.0)
    return jnp.sum(h1 * params["w1"], axis=0, keepdims=True)


# ----------------------------------------------------------------------------
# JAX glue: affine_grid + grid_sample(nearest), trunk stub, bilinear upsample.
# ----------------------------------------------------------------------------
def affine_grid_sample_nearest(x, theta):
    """F.affine_grid + F.grid_sample(mode='nearest', padding='zeros',
    align_corners=False) with a single 2x3 theta shared across the batch."""
    n, c, h, w = x.shape
    xs = (2.0 * (jnp.arange(w, dtype=jnp.float32) + 0.5) / w) - 1.0
    ys = (2.0 * (jnp.arange(h, dtype=jnp.float32) + 0.5) / h) - 1.0
    gx = theta[0, 0] * xs[None, :] + theta[0, 1] * ys[:, None] + theta[0, 2]
    gy = theta[1, 0] * xs[None, :] + theta[1, 1] * ys[:, None] + theta[1, 2]
    ix = ((gx + 1.0) * w - 1.0) * 0.5
    iy = ((gy + 1.0) * h - 1.0) * 0.5
    ii = jnp.round(ix).astype(jnp.int32)
    jj = jnp.round(iy).astype(jnp.int32)
    valid = (ii >= 0) & (ii < w) & (jj >= 0) & (jj < h)
    iic = jnp.clip(ii, 0, w - 1)
    jjc = jnp.clip(jj, 0, h - 1)
    sampled = x[:, :, jjc, iic]                        # (N, C, H, W)
    return jnp.where(valid[None, None, :, :], sampled, 0.0)


def densenet_trunk_stub(x, proj):
    # TODO(synk): torchvision densenet121 pretrained trunk is not reimplemented;
    # replaced with a deterministic stub (32x spatial avg-pool + 1x1 projection
    # to 1024 channels + ReLU) that preserves the trunk's output-shape contract.
    # The stub emits channels-first (K, N, h, w) directly so the Pallas head
    # consumes it with a free reshape (no extra HBM transpose pass).
    n, c, h, w = x.shape
    pooled = x.reshape(n, c, h // 32, 32, w // 32, 32).mean(axis=(3, 5))
    feat = jnp.einsum("nchw,kc->knhw", pooled, proj)
    return jax.nn.relu(feat)                           # (K, N, h/32, w/32)


def _make_thetas(rotate_indices):
    ang = jnp.asarray(rotate_indices, jnp.float32) * (2.0 * math.pi / NUM_ROTATIONS)

    def mk(a):
        ca, sa, z = jnp.cos(a), jnp.sin(a), jnp.zeros_like(a)
        return jnp.stack([jnp.stack([ca, sa, z], axis=-1),
                          jnp.stack([-sa, ca, z], axis=-1)], axis=-2)  # (R, 2, 3)

    return mk(-ang), mk(ang)   # theta_before (rotate by -theta), theta_after


def _forward_rotations(params, input_color, input_depth, theta_before, theta_after):
    """Runs R rotations batched through the trunks and ONE Pallas head call."""
    r = theta_before.shape[0]
    n, c, h, w = input_color.shape

    rot = jax.vmap(affine_grid_sample_nearest, in_axes=(None, 0))
    rotate_color = rot(input_color, theta_before).reshape(r * n, c, h, w)
    rotate_depth = rot(input_depth, theta_before).reshape(r * n, c, h, w)

    color_feat = densenet_trunk_stub(rotate_color, params["proj_color"])
    depth_feat = densenet_trunk_stub(rotate_depth, params["proj_depth"])
    feat_cfirst = jnp.concatenate([color_feat, depth_feat], axis=0)  # (2048, R*N, hh, ww)
    _, rn, hh, ww = feat_cfirst.shape

    head = graspnet_head(feat_cfirst.reshape(HEAD_IN, rn * hh * ww), params)
    head = head.reshape(r, n, 1, hh, ww)

    unrot = jax.vmap(affine_grid_sample_nearest, in_axes=(0, 0))(head, theta_after)
    unrot = unrot.reshape(r * n, 1, hh, ww)
    # nn.Upsample(scale_factor=16, mode='bilinear') [align_corners=False]
    prob = jax.image.resize(unrot, (r * n, 1, hh * 16, ww * 16), method="bilinear")
    prob = prob.reshape(r, n, 1, hh * 16, ww * 16)

    # Intermediate feature of the LAST rotation, returned NCHW like PyTorch.
    interm_feat = jnp.transpose(feat_cfirst[:, (r - 1) * n:], (1, 0, 2, 3))
    return prob, interm_feat


def grasp_net_forward(params, input_color_data, input_depth_data,
                      is_volatile=False, specific_rotation=-1):
    if is_volatile:
        tb, ta = _make_thetas(list(range(NUM_ROTATIONS)))
        prob, interm_feat = _forward_rotations(
            params, input_color_data, input_depth_data, tb, ta)
        grasp_output_prob = [[prob[i]] for i in range(NUM_ROTATIONS)]
        return grasp_output_prob, interm_feat
    else:
        tb, ta = _make_thetas([specific_rotation])
        prob, interm_feat = _forward_rotations(
            params, input_color_data, input_depth_data, tb, ta)
        return [[prob[0]]], interm_feat


# ----------------------------------------------------------------------------
# Deterministic synthetic parameters (shapes dictated by the module __init__).
# ----------------------------------------------------------------------------
def init_params(key):
    ks = jax.random.split(key, 12)

    def bn_fold(kg, kb, km, kv, ch):
        gamma = jax.random.uniform(kg, (ch,), jnp.float32, 0.5, 1.5)
        beta = 0.1 * jax.random.normal(kb, (ch,), jnp.float32)
        mean = 0.1 * jax.random.normal(km, (ch,), jnp.float32)
        var = jax.random.uniform(kv, (ch,), jnp.float32, 0.5, 1.5)
        scale = gamma / jnp.sqrt(var + BN_EPS)
        shift = beta - mean * scale
        return scale, shift

    bn0_scale, bn0_shift = bn_fold(ks[0], ks[1], ks[2], ks[3], HEAD_IN)
    bn1_scale, bn1_shift = bn_fold(ks[4], ks[5], ks[6], ks[7], HEAD_MID)
    # kaiming_normal_ (fan_in) for the two 1x1 convs; stored (Cout, Cin) /
    # (Cin, 1) so the head kernel needs no per-call transpose.
    w0_t = jax.random.normal(ks[8], (HEAD_MID, HEAD_IN), jnp.float32) * math.sqrt(2.0 / HEAD_IN)
    w1 = jax.random.normal(ks[9], (HEAD_MID, 1), jnp.float32) * math.sqrt(2.0 / HEAD_MID)
    proj_color = jax.random.normal(ks[10], (TRUNK_CH, 3), jnp.float32) * math.sqrt(2.0 / 3.0)
    proj_depth = jax.random.normal(ks[11], (TRUNK_CH, 3), jnp.float32) * math.sqrt(2.0 / 3.0)
    return dict(bn0_scale=bn0_scale, bn0_shift=bn0_shift,
                bn1_scale=bn1_scale, bn1_shift=bn1_shift,
                w0_t=w0_t, w1=w1, proj_color=proj_color, proj_depth=proj_depth)


if __name__ == "__main__":
    key = jax.random.PRNGKey(0)
    kc, kd, kp, kf = jax.random.split(key, 4)
    N, H, W = 2, 64, 64
    input_color = jax.random.normal(kc, (N, 3, H, W), jnp.float32)
    input_depth = jax.random.normal(kd, (N, 3, H, W), jnp.float32)
    params = init_params(kp)

    # Kernel-vs-reference numerical check on the Pallas head alone.
    feat_test = jax.random.normal(kf, (HEAD_IN, 128), jnp.float32)
    got = jax.block_until_ready(graspnet_head(feat_test, params))
    want = _graspnet_head_ref(feat_test, params)
    err = float(jnp.max(jnp.abs(got - want)))
    assert err < 1e-2, f"head mismatch: max abs err {err}"

    # Batched 16-rotation (is_volatile) inference path: one Pallas head call
    # covers all rotations (P = 16*N*(H/32)*(W/32) = 128 lanes).
    probs16, interm16 = grasp_net_forward(
        params, input_color, input_depth, is_volatile=True)
    out16 = jax.block_until_ready(probs16[-1][0])
    assert len(probs16) == NUM_ROTATIONS
    assert out16.shape == (N, 1, (H // 32) * 16, (W // 32) * 16)
    assert interm16.shape == (N, HEAD_IN, H // 32, W // 32)

    # Single specific-rotation (training) path.
    probs, interm_feat = grasp_net_forward(
        params, input_color, input_depth, is_volatile=False, specific_rotation=3)
    out = jax.block_until_ready(probs[0][0])
    jax.block_until_ready(interm_feat)
    assert out.shape == (N, 1, (H // 32) * 16, (W // 32) * 16)
    assert interm_feat.shape == (N, HEAD_IN, H // 32, W // 32)
    print("KERNEL_OK")
</pallas_src>

<mosaic_0001>
module attributes {stable_mosaic.version = 11 : i64} {
  func.func @_graspnet_head_kernel(%arg0: i32, %arg1: memref<2048x128xbf16, #tpu.memory_space<vmem>>, %arg2: memref<2048x1xf32, #tpu.memory_space<vmem>>, %arg3: memref<2048x1xf32, #tpu.memory_space<vmem>>, %arg4: memref<64x2048xbf16, #tpu.memory_space<vmem>>, %arg5: memref<64x1xf32, #tpu.memory_space<vmem>>, %arg6: memref<64x1xf32, #tpu.memory_space<vmem>>, %arg7: memref<64x1xf32, #tpu.memory_space<vmem>>, %arg8: memref<1x128xf32, #tpu.memory_space<vmem>>) attributes {dimension_semantics = [#tpu.dimension_semantics<parallel>], iteration_bounds = array<i64: 1>, scalar_prefetch = 0 : i64, scratch_operands = 0 : i64, tpu.core_type = #tpu.core_type<tc>, window_params = [{transform_indices = @transform_0, window_bounds = array<i64: 2048, 128>}, {pipeline_mode = #tpu.pipeline_mode<synchronous>, transform_indices = @transform_1, window_bounds = array<i64: 2048, 1>}, {pipeline_mode = #tpu.pipeline_mode<synchronous>, transform_indices = @transform_2, window_bounds = array<i64: 2048, 1>}, {pipeline_mode = #tpu.pipeline_mode<synchronous>, transform_indices = @transform_3, window_bounds = array<i64: 64, 2048>}, {pipeline_mode = #tpu.pipeline_mode<synchronous>, transform_indices = @transform_4, window_bounds = array<i64: 64, 1>}, {pipeline_mode = #tpu.pipeline_mode<synchronous>, transform_indices = @transform_5, window_bounds = array<i64: 64, 1>}, {pipeline_mode = #tpu.pipeline_mode<synchronous>, transform_indices = @transform_6, window_bounds = array<i64: 64, 1>}, {transform_indices = @transform_7, window_bounds = array<i64: 1, 128>}]} {
    %c0 = arith.constant 0 : index
    %c0_0 = arith.constant 0 : index
    %0 = vector.load %arg1[%c0, %c0_0] : memref<2048x128xbf16, #tpu.memory_space<vmem>>, vector<2048x128xbf16>
    %1 = arith.extf %0 : vector<2048x128xbf16> to vector<2048x128xf32>
    %c0_1 = arith.constant 0 : index
    %c0_2 = arith.constant 0 : index
    %2 = vector.load %arg2[%c0_1, %c0_2] : memref<2048x1xf32, #tpu.memory_space<vmem>>, vector<2048x1xf32>
    %3 = vector.broadcast %2 : vector<2048x1xf32> to vector<2048x128xf32>
    %4 = arith.mulf %1, %3 : vector<2048x128xf32>
    %c0_3 = arith.constant 0 : index
    %c0_4 = arith.constant 0 : index
    %5 = vector.load %arg3[%c0_3, %c0_4] : memref<2048x1xf32, #tpu.memory_space<vmem>>, vector<2048x1xf32>
    %6 = vector.broadcast %5 : vector<2048x1xf32> to vector<2048x128xf32>
    %7 = arith.addf %4, %6 : vector<2048x128xf32>
    %cst = arith.constant 0.000000e+00 : f32
    %8 = vector.broadcast %cst : f32 to vector<2048x128xf32>
    %9 = arith.maximumf %7, %8 : vector<2048x128xf32>
    %c0_5 = arith.constant 0 : index
    %c0_6 = arith.constant 0 : index
    %10 = vector.load %arg4[%c0_5, %c0_6] : memref<64x2048xbf16, #tpu.memory_space<vmem>>, vector<64x2048xbf16>
    %11 = arith.truncf %9 : vector<2048x128xf32> to vector<2048x128xbf16>
    %cst_7 = arith.constant dense<0.000000e+00> : vector<64x128xf32>
    %12 = tpu.matmul %10, %11, %cst_7 {dimension_numbers = #tpu.dot_dimension_numbers<[1], [0], [0], [1], [0, 0, 1, 1], [], []>} : vector<64x2048xbf16>, vector<2048x128xbf16>, vector<64x128xf32> -> vector<64x128xf32>
    %c0_8 = arith.constant 0 : index
    %c0_9 = arith.constant 0 : index
    %13 = vector.load %arg5[%c0_8, %c0_9] : memref<64x1xf32, #tpu.memory_space<vmem>>, vector<64x1xf32>
    %14 = vector.broadcast %13 : vector<64x1xf32> to vector<64x128xf32>
    %15 = arith.mulf %12, %14 : vector<64x128xf32>
    %c0_10 = arith.constant 0 : index
    %c0_11 = arith.constant 0 : index
    %16 = vector.load %arg6[%c0_10, %c0_11] : memref<64x1xf32, #tpu.memory_space<vmem>>, vector<64x1xf32>
    %17 = vector.broadcast %16 : vector<64x1xf32> to vector<64x128xf32>
    %18 = arith.addf %15, %17 : vector<64x128xf32>
    %cst_12 = arith.constant 0.000000e+00 : f32
    %19 = vector.broadcast %cst_12 : f32 to vector<64x128xf32>
    %20 = arith.maximumf %18, %19 : vector<64x128xf32>
    %c0_13 = arith.constant 0 : index
    %c0_14 = arith.constant 0 : index
    %21 = vector.load %arg7[%c0_13, %c0_14] : memref<64x1xf32, #tpu.memory_space<vmem>>, vector<64x1xf32>
    %22 = vector.broadcast %21 : vector<64x1xf32> to vector<64x128xf32>
    %23 = arith.mulf %20, %22 : vector<64x128xf32>
    %cst_15 = arith.constant dense<0.000000e+00> : vector<128xf32>
    %24 = vector.multi_reduction <add>, %23, %cst_15 [0] : vector<64x128xf32> to vector<128xf32>
    %25 = vector.shape_cast %24 : vector<128xf32> to vector<1x128xf32>
    %c0_16 = arith.constant 0 : index
    %c0_17 = arith.constant 0 : index
    %26 = vector.load %arg8[%c0_16, %c0_17] : memref<1x128xf32, #tpu.memory_space<vmem>>, vector<1x128xf32>
    tpu.vector_store %arg8[%c0_16, %c0_17], %25 {strides = array<i32>} : memref<1x128xf32, #tpu.memory_space<vmem>>, vector<1x128xf32>,
    return
  }
  func.func @transform_0(%arg0: i32) -> (i32, i32) {
    %c0_i32 = arith.constant 0 : i32
    %c0_i32_0 = arith.constant 0 : i32
    return %c0_i32, %arg0 : i32, i32
  }
  func.func @transform_1(%arg0: i32) -> (i32, i32) {
    %c0_i32 = arith.constant 0 : i32
    %c0_i32_0 = arith.constant 0 : i32
    %c0_i32_1 = arith.constant 0 : i32
    return %c0_i32, %c0_i32_0 : i32, i32
  }
  func.func @transform_2(%arg0: i32) -> (i32, i32) {
    %c0_i32 = arith.constant 0 : i32
    %c0_i32_0 = arith.constant 0 : i32
    %c0_i32_1 = arith.constant 0 : i32
    return %c0_i32, %c0_i32_0 : i32, i32
  }
  func.func @transform_3(%arg0: i32) -> (i32, i32) {
    %c0_i32 = arith.constant 0 : i32
    %c0_i32_0 = arith.constant 0 : i32
    %c0_i32_1 = arith.constant 0 : i32
    return %c0_i32, %c0_i32_0 : i32, i32
  }
  func.func @transform_4(%arg0: i32) -> (i32, i32) {
    %c0_i32 = arith.constant 0 : i32
    %c0_i32_0 = arith.constant 0 : i32
    %c0_i32_1 = arith.constant 0 : i32
    return %c0_i32, %c0_i32_0 : i32, i32
  }
  func.func @transform_5(%arg0: i32) -> (i32, i32) {
    %c0_i32 = arith.constant 0 : i32
    %c0_i32_0 = arith.constant 0 : i32
    %c0_i32_1 = arith.constant 0 : i32
    return %c0_i32, %c0_i32_0 : i32, i32
  }
  func.func @transform_6(%arg0: i32) -> (i32, i32) {
    %c0_i32 = arith.constant 0 : i32
    %c0_i32_0 = arith.constant 0 : i32
    %c0_i32_1 = arith.constant 0 : i32
    return %c0_i32, %c0_i32_0 : i32, i32
  }
  func.func @transform_7(%arg0: i32) -> (i32, i32) {
    %c0_i32 = arith.constant 0 : i32
    %c0_i32_0 = arith.constant 0 : i32
    return %c0_i32, %arg0 : i32, i32
  }
}

</mosaic_0001>

<bundles_post_ra>
// kernel: tpu_custom_call.1
= control target key start
LH: loop header
LB: loop body
LE: loop exit
PB: predicated region body
PF: predicated region fallthrough
CT: control target
= control target key end

     0   :  { %v6665_v2 = vmov 0   ;;  %s11004_s0 = inlined_call_operand.vmem [shape: bf16[2048,128], index: 0, kind: input, shape index: {}]   ;;  %s11005_s1 = inlined_call_operand.vmem [shape: f32[2048,1], index: 1, kind: input, shape index: {}]   ;;  %s11006_s2 = inlined_call_operand.vmem [shape: f32[2048,1], index: 2, kind: input, shape index: {}]   ;;  %s11007_s3 = inlined_call_operand.vmem [shape: bf16[64,2048], index: 3, kind: input, shape index: {}]   ;;  %s11008_s4 = inlined_call_operand.vmem [shape: f32[64,1], index: 4, kind: input, shape index: {}]   ;;  %s11009_s5 = inlined_call_operand.vmem [shape: f32[64,1], index: 5, kind: input, shape index: {}]   ;;  %s11010_s6 = inlined_call_operand.vmem [shape: f32[64,1], index: 6, kind: input, shape index: {}]   ;;  %s11011_s7 = inlined_call_operand.hbm [shape: f32[1,128], index: 7, kind: output, shape index: {}]  }
   0x1   :  { %v542_v0 = vld [vmem:[%s11005_s1 + $0x10] sm:$0xff]  ;;  %v540_v1 = vld [vmem:[%s11005_s1] sm:$0xff]  ;;  %6642 = vset.pattern.permute.xlu1 %v6665_v2  ;;  %6641 = vset.pattern.permute.xlu0 %v6665_v2  ;;  %v543_v3 = vld [vmem:[%s11005_s1 + $0x18] sm:$0xff] }
   0x2   :  { %808 = vperm.xlu1 %6642, %v542_v0   ;;  %798 = vperm.xlu0 %6641, %v540_v1   ;;  %v541_v4 = vld [vmem:[%s11005_s1 + $0x8] sm:$0xff]  ;;  %v544_v6 = vld [vmem:[%s11005_s1 + $0x20] sm:$0xff]  ;;  %v547_v7 = vld [vmem:[%s11005_s1 + $0x38] sm:$0xff] }
   0x3   :  { %v545_v5 = vld [vmem:[%s11005_s1 + $0x28] sm:$0xff]  ;;  %v546_v8 = vld [vmem:[%s11005_s1 + $0x30] sm:$0xff]  ;;  %v548_v10 = vld [vmem:[%s11005_s1 + $0x40] sm:$0xff] }
   0x4   :  { %v549_v9 = vld [vmem:[%s11005_s1 + $0x48] sm:$0xff]  ;;  %v551_v11 = vld [vmem:[%s11005_s1 + $0x58] sm:$0xff]  ;;  %v550_v12 = vld [vmem:[%s11005_s1 + $0x50] sm:$0xff] }
   0x5   :  { %v553_v13 = vld [vmem:[%s11005_s1 + $0x68] sm:$0xff]  ;;  %v552_v14 = vld [vmem:[%s11005_s1 + $0x60] sm:$0xff]  ;;  %v555_v15 = vld [vmem:[%s11005_s1 + $0x78] sm:$0xff] }
   0x6   :  { %813 = vperm.xlu1 %6642, %v543_v3   ;;  %803 = vperm.xlu0 %6641, %v541_v4   ;;  %v554_v16 = vld [vmem:[%s11005_s1 + $0x70] sm:$0xff] }
   0xa   :  { %823 = vperm.xlu1 %6642, %v545_v5   ;;  %818 = vperm.xlu0 %6641, %v544_v6  }
   0xe   :  { %833 = vperm.xlu1 %6642, %v547_v7   ;;  %828 = vperm.xlu0 %6641, %v546_v8  }
  0x12   :  { %843 = vperm.xlu1 %6642, %v549_v9   ;;  %838 = vperm.xlu0 %6641, %v548_v10  }
  0x16   :  { %853 = vperm.xlu1 %6642, %v551_v11   ;;  %848 = vperm.xlu0 %6641, %v550_v12  }
  0x1a   :  { %863 = vperm.xlu1 %6642, %v553_v13   ;;  %858 = vperm.xlu0 %6641, %v552_v14  }
  0x1b   :  { %12 = vsyncpa [#allocation3], 0  ;;  %v557_v17 = vld [vmem:[%s11005_s1 + $0x88] sm:$0xff]  ;;  %v556_v18 = vld [vmem:[%s11005_s1 + $0x80] sm:$0xff] }
  0x1c   :  { %v559_v19 = vld [vmem:[%s11005_s1 + $0x98] sm:$0xff]  ;;  %v558_v20 = vld [vmem:[%s11005_s1 + $0x90] sm:$0xff]  ;;  %v561_v21 = vld [vmem:[%s11005_s1 + $0xa8] sm:$0xff] }
  0x1d   :  { %v560_v22 = vld [vmem:[%s11005_s1 + $0xa0] sm:$0xff]  ;;  %v563_v23 = vld [vmem:[%s11005_s1 + $0xb8] sm:$0xff]  ;;  %v562_v24 = vld [vmem:[%s11005_s1 + $0xb0] sm:$0xff] }
  0x1e   :  { %873 = vperm.xlu1 %6642, %v555_v15   ;;  %868 = vperm.xlu0 %6641, %v554_v16   ;;  %v565_v25 = vld [vmem:[%s11005_s1 + $0xc8] sm:$0xff]  ;;  %v564_v26 = vld [vmem:[%s11005_s1 + $0xc0] sm:$0xff]  ;;  %v567_v27 = vld [vmem:[%s11005_s1 + $0xd8] sm:$0xff] }
  0x1f   :  { %v566_v28 = vld [vmem:[%s11005_s1 + $0xd0] sm:$0xff]  ;;  %v569_v29 = vld [vmem:[%s11005_s1 + $0xe8] sm:$0xff]  ;;  %v568_v30 = vld [vmem:[%s11005_s1 + $0xe0] sm:$0xff] }
  0x20   :  { %v571_v31 = vld [vmem:[%s11005_s1 + $0xf8] sm:$0xff]  ;;  %v570_v32 = vld [vmem:[%s11005_s1 + $0xf0] sm:$0xff]  ;;  %v573_v33 = vld [vmem:[%s11005_s1 + $0x108] sm:$0xff] }
  0x21   :  { %v572_v34 = vld [vmem:[%s11005_s1 + $0x100] sm:$0xff]  ;;  %v575_v35 = vld [vmem:[%s11005_s1 + $0x118] sm:$0xff]  ;;  %v574_v36 = vld [vmem:[%s11005_s1 + $0x110] sm:$0xff] }
  0x22   :  { %883 = vperm.xlu1 %6642, %v557_v17   ;;  %878 = vperm.xlu0 %6641, %v556_v18   ;;  %v577_v37 = vld [vmem:[%s11005_s1 + $0x128] sm:$0xff]  ;;  %v576_v38 = vld [vmem:[%s11005_s1 + $0x120] sm:$0xff]  ;;  %v579_v39 = vld [vmem:[%s11005_s1 + $0x138] sm:$0xff] }
  0x23   :  { %v578_v40 = vld [vmem:[%s11005_s1 + $0x130] sm:$0xff]  ;;  %v581_v41 = vld [vmem:[%s11005_s1 + $0x148] sm:$0xff]  ;;  %v580_v42 = vld [vmem:[%s11005_s1 + $0x140] sm:$0xff] }
  0x24   :  { %v583_v43 = vld [vmem:[%s11005_s1 + $0x158] sm:$0xff]  ;;  %v582_v44 = vld [vmem:[%s11005_s1 + $0x150] sm:$0xff]  ;;  %v585_v45 = vld [vmem:[%s11005_s1 + $0x168] sm:$0xff] }
  0x25   :  { %v584_v46 = vld [vmem:[%s11005_s1 + $0x160] sm:$0xff]  ;;  %v587_v47 = vld [vmem:[%s11005_s1 + $0x178] sm:$0xff]  ;;  %v586_v48 = vld [vmem:[%s11005_s1 + $0x170] sm:$0xff] }
  0x26   :  { %893 = vperm.xlu1 %6642, %v559_v19   ;;  %888 = vperm.xlu0 %6641, %v558_v20   ;;  %v589_v49 = vld [vmem:[%s11005_s1 + $0x188] sm:$0xff]  ;;  %v588_v50 = vld [vmem:[%s11005_s1 + $0x180] sm:$0xff]  ;;  %v591_v51 = vld [vmem:[%s11005_s1 + $0x198] sm:$0xff] }
  0x27   :  { %v590_v52 = vld [vmem:[%s11005_s1 + $0x190] sm:$0xff]  ;;  %v593_v53 = vld [vmem:[%s11005_s1 + $0x1a8] sm:$0xff]  ;;  %v592_v54 = vld [vmem:[%s11005_s1 + $0x1a0] sm:$0xff] }
  0x28   :  { %v595_v55 = vld [vmem:[%s11005_s1 + $0x1b8] sm:$0xff]  ;;  %v594_v56 = vld [vmem:[%s11005_s1 + $0x1b0] sm:$0xff]  ;;  %v597_v57 = vld [vmem:[%s11005_s1 + $0x1c8] sm:$0xff] }
  0x29   :  { %v596_v58 = vld [vmem:[%s11005_s1 + $0x1c0] sm:$0xff]  ;;  %v599_v59 = vld [vmem:[%s11005_s1 + $0x1d8] sm:$0xff]  ;;  %v598_v60 = vld [vmem:[%s11005_s1 + $0x1d0] sm:$0xff] }
  0x2a   :  { %903 = vperm.xlu1 %6642, %v561_v21   ;;  %898 = vperm.xlu0 %6641, %v560_v22   ;;  %v601_v61 = vld [vmem:[%s11005_s1 + $0x1e8] sm:$0xff]  ;;  %v600_v62 = vld [vmem:[%s11005_s1 + $0x1e0] sm:$0xff]  ;;  %v603_v63 = vld [vmem:[%s11005_s1 + $0x1f8] sm:$0xff] }
  0x2b   :  { %v602_v0 = vld [vmem:[%s11005_s1 + $0x1f0] sm:$0xff]  ;;  %v605_v3 = vld [vmem:[%s11005_s1 + $0x208] sm:$0xff]  ;;  %v604_v4 = vld [vmem:[%s11005_s1 + $0x200] sm:$0xff] }
  0x2c   :  { %v607_v7 = vld [vmem:[%s11005_s1 + $0x218] sm:$0xff]  ;;  %v606_v8 = vld [vmem:[%s11005_s1 + $0x210] sm:$0xff]  ;;  %v609_v11 = vld [vmem:[%s11005_s1 + $0x228] sm:$0xff] }
  0x2d   :  { %v608_v12 = vld [vmem:[%s11005_s1 + $0x220] sm:$0xff]  ;;  %v611_v15 = vld [vmem:[%s11005_s1 + $0x238] sm:$0xff]  ;;  %v610_v16 = vld [vmem:[%s11005_s1 + $0x230] sm:$0xff] }
  0x2e   :  { %913 = vperm.xlu1 %6642, %v563_v23   ;;  %908 = vperm.xlu0 %6641, %v562_v24   ;;  %v613_v19 = vld [vmem:[%s11005_s1 + $0x248] sm:$0xff]  ;;  %v612_v20 = vld [vmem:[%s11005_s1 + $0x240] sm:$0xff]  ;;  %v615_v23 = vld [vmem:[%s11005_s1 + $0x258] sm:$0xff] }
  0x2f   :  { %v614_v24 = vld [vmem:[%s11005_s1 + $0x250] sm:$0xff] }
  0x32   :  { %923 = vperm.xlu1 %6642, %v565_v25   ;;  %918 = vperm.xlu0 %6641, %v564_v26  }
  0x36   :  { %933 = vperm.xlu1 %6642, %v567_v27   ;;  %928 = vperm.xlu0 %6641, %v566_v28   ;;  %v617_v27 = vld [vmem:[%s11005_s1 + $0x268] sm:$0xff]  ;;  %v616_v28 = vld [vmem:[%s11005_s1 + $0x260] sm:$0xff] }
  0x3a   :  { %943 = vperm.xlu1 %6642, %v569_v29   ;;  %938 = vperm.xlu0 %6641, %v568_v30  }
  0x3e   :  { %953 = vperm.xlu1 %6642, %v571_v31   ;;  %948 = vperm.xlu0 %6641, %v570_v32   ;;  %v619_v31 = vld [vmem:[%s11005_s1 + $0x278] sm:$0xff]  ;;  %v618_v32 = vld [vmem:[%s11005_s1 + $0x270] sm:$0xff] }
  0x42   :  { %963 = vperm.xlu1 %6642, %v573_v33   ;;  %958 = vperm.xlu0 %6641, %v572_v34  }
  0x46   :  { %973 = vperm.xlu1 %6642, %v575_v35   ;;  %968 = vperm.xlu0 %6641, %v574_v36   ;;  %v621_v35 = vld [vmem:[%s11005_s1 + $0x288] sm:$0xff]  ;;  %v620_v36 = vld [vmem:[%s11005_s1 + $0x280] sm:$0xff] }
  0x4a   :  { %983 = vperm.xlu1 %6642, %v577_v37   ;;  %978 = vperm.xlu0 %6641, %v576_v38  }
  0x4e   :  { %993 = vperm.xlu1 %6642, %v579_v39   ;;  %988 = vperm.xlu0 %6641, %v578_v40   ;;  %v623_v39 = vld [vmem:[%s11005_s1 + $0x298] sm:$0xff]  ;;  %v622_v40 = vld [vmem:[%s11005_s1 + $0x290] sm:$0xff] }
  0x52   :  { %1003 = vperm.xlu1 %6642, %v581_v41   ;;  %998 = vperm.xlu0 %6641, %v580_v42  }
  0x56   :  { %1013 = vperm.xlu1 %6642, %v583_v43   ;;  %1008 = vperm.xlu0 %6641, %v582_v44   ;;  %v625_v43 = vld [vmem:[%s11005_s1 + $0x2a8] sm:$0xff]  ;;  %v624_v44 = vld [vmem:[%s11005_s1 + $0x2a0] sm:$0xff] }
  0x5a   :  { %1023 = vperm.xlu1 %6642, %v585_v45   ;;  %1018 = vperm.xlu0 %6641, %v584_v46  }
  0x5e   :  { %1033 = vperm.xlu1 %6642, %v587_v47   ;;  %1028 = vperm.xlu0 %6641, %v586_v48   ;;  %v627_v47 = vld [vmem:[%s11005_s1 + $0x2b8] sm:$0xff]  ;;  %v626_v48 = vld [vmem:[%s11005_s1 + $0x2b0] sm:$0xff] }
  0x62   :  { %1043 = vperm.xlu1 %6642, %v589_v49   ;;  %1038 = vperm.xlu0 %6641, %v588_v50  }
  0x66   :  { %1053 = vperm.xlu1 %6642, %v591_v51   ;;  %1048 = vperm.xlu0 %6641, %v590_v52   ;;  %v629_v51 = vld [vmem:[%s11005_s1 + $0x2c8] sm:$0xff]  ;;  %v628_v52 = vld [vmem:[%s11005_s1 + $0x2c0] sm:$0xff] }
  0x6a   :  { %1063 = vperm.xlu1 %6642, %v593_v53   ;;  %1058 = vperm.xlu0 %6641, %v592_v54  }
  0x6e   :  { %1073 = vperm.xlu1 %6642, %v595_v55   ;;  %1068 = vperm.xlu0 %6641, %v594_v56   ;;  %v631_v55 = vld [vmem:[%s11005_s1 + $0x2d8] sm:$0xff]  ;;  %v630_v56 = vld [vmem:[%s11005_s1 + $0x2d0] sm:$0xff] }
  0x72   :  { %1083 = vperm.xlu1 %6642, %v597_v57   ;;  %1078 = vperm.xlu0 %6641, %v596_v58  }
  0x76   :  { %1093 = vperm.xlu1 %6642, %v599_v59   ;;  %1088 = vperm.xlu0 %6641, %v598_v60   ;;  %v633_v59 = vld [vmem:[%s11005_s1 + $0x2e8] sm:$0xff]  ;;  %v632_v60 = vld [vmem:[%s11005_s1 + $0x2e0] sm:$0xff] }
  0x7a   :  { %1103 = vperm.xlu1 %6642, %v601_v61   ;;  %1098 = vperm.xlu0 %6641, %v600_v62  }
  0x7d   :  { %v6899_v1 = vpop.permute.xlu1 %808  ;;  %v6901_v2 = vpop.permute.xlu0 %798 }
  0x7e   :  { %11028 = vst [vmem:[#allocation5_spill] sm:$0xff] %v6899_v1  ;;  %11029 = vst [vmem:[#allocation6_spill] sm:$0xff] %v6901_v2  ;;  %1113 = vperm.xlu1 %6642, %v603_v63   ;;  %1108 = vperm.xlu0 %6641, %v602_v0   ;;  %v635_v63 = vld [vmem:[%s11005_s1 + $0x2f8] sm:$0xff]  ;;  %v634_v0 = vld [vmem:[%s11005_s1 + $0x2f0] sm:$0xff] }
  0x7f   :  { %v6206_v2 = vld [vmem:[%s11004_s0 + $0x78] sm:$0xff]  }
  0x81   :  { %v6909_v5 = vpop.permute.xlu1 %813  ;;  %v6911_v6 = vpop.permute.xlu0 %803 }
  0x82   :  { %11030 = vst [vmem:[#allocation7_spill] sm:$0xff] %v6909_v5  ;;  %11031 = vst [vmem:[#allocation8_spill] sm:$0xff] %v6911_v6  ;;  %1123 = vperm.xlu1 %6642, %v605_v3   ;;  %1118 = vperm.xlu0 %6641, %v604_v4   ;;  %v6204_v5 = vld [vmem:[%s11004_s0 + $0x68] sm:$0xff]  }
  0x85   :  { %v6919_v9 = vpop.permute.xlu1 %823  ;;  %v6921_v10 = vpop.permute.xlu0 %818 }
  0x86   :  { %11032 = vst [vmem:[#allocation9_spill] sm:$0xff] %v6919_v9  ;;  %11033 = vst [vmem:[#allocation10_spill] sm:$0xff] %v6921_v10  ;;  %1133 = vperm.xlu1 %6642, %v607_v7   ;;  %1128 = vperm.xlu0 %6641, %v606_v8   ;;  %v637_v7 = vld [vmem:[%s11005_s1 + $0x308] sm:$0xff]  ;;  %v636_v8 = vld [vmem:[%s11005_s1 + $0x300] sm:$0xff] }
  0x89   :  { %v6929_v13 = vpop.permute.xlu1 %833  ;;  %v6931_v14 = vpop.permute.xlu0 %828 }
  0x8a   :  { %1143 = vperm.xlu1 %6642, %v609_v11   ;;  %1138 = vperm.xlu0 %6641, %v608_v12  }
  0x8d   :  { %v6939_v17 = vpop.permute.xlu1 %843  ;;  %v6941_v18 = vpop.permute.xlu0 %838 }
  0x8e   :  { %1153 = vperm.xlu1 %6642, %v611_v15   ;;  %1148 = vperm.xlu0 %6641, %v610_v16   ;;  %v639_v15 = vld [vmem:[%s11005_s1 + $0x318] sm:$0xff]  ;;  %v638_v16 = vld [vmem:[%s11005_s1 + $0x310] sm:$0xff] }
  0x91   :  { %v6949_v21 = vpop.permute.xlu1 %853  ;;  %v6951_v22 = vpop.permute.xlu0 %848 }
  0x92   :  { %1163 = vperm.xlu1 %6642, %v613_v19   ;;  %1158 = vperm.xlu0 %6641, %v612_v20  }
  0x95   :  { %v6959_v25 = vpop.permute.xlu1 %863  ;;  %v6961_v26 = vpop.permute.xlu0 %858 }
  0x96   :  { %1173 = vperm.xlu1 %6642, %v615_v23   ;;  %1168 = vperm.xlu0 %6641, %v614_v24   ;;  %v641_v23 = vld [vmem:[%s11005_s1 + $0x328] sm:$0xff]  ;;  %v640_v24 = vld [vmem:[%s11005_s1 + $0x320] sm:$0xff] }
  0x99   :  { %v6969_v29 = vpop.permute.xlu1 %873  ;;  %v6971_v30 = vpop.permute.xlu0 %868 }
  0x9a   :  { %1183 = vperm.xlu1 %6642, %v617_v27   ;;  %1178 = vperm.xlu0 %6641, %v616_v28  }
  0x9d   :  { %v6979_v33 = vpop.permute.xlu1 %883  ;;  %v6981_v34 = vpop.permute.xlu0 %878 }
  0x9e   :  { %11034 = vst [vmem:[#allocation11_spill] sm:$0xff] %v6979_v33  ;;  %11035 = vst [vmem:[#allocation12_spill] sm:$0xff] %v6981_v34  ;;  %1193 = vperm.xlu1 %6642, %v619_v31   ;;  %1188 = vperm.xlu0 %6641, %v618_v32   ;;  %v643_v31 = vld [vmem:[%s11005_s1 + $0x338] sm:$0xff]  ;;  %v642_v32 = vld [vmem:[%s11005_s1 + $0x330] sm:$0xff] }
  0x9f   :  { %v6197_v34 = vld [vmem:[%s11004_s0 + $0x30] sm:$0xff]  }
  0xa1   :  { %v6989_v37 = vpop.permute.xlu1 %893  ;;  %v6991_v38 = vpop.permute.xlu0 %888 }
  0xa2   :  { %11036 = vst [vmem:[#allocation13_spill] sm:$0xff] %v6989_v37  ;;  %11037 = vst [vmem:[#allocation14_spill] sm:$0xff] %v6991_v38  ;;  %1203 = vperm.xlu1 %6642, %v621_v35   ;;  %1198 = vperm.xlu0 %6641, %v620_v36   ;;  %v2422_v38 = vld [vmem:[%s11006_s2 + $0x2d0] sm:$0xff]  ;;  %v5742_v37 = vunpack.c.l.bf16 %v6206_v2 }
  0xa5   :  { %v6999_v41 = vpop.permute.xlu1 %903  ;;  %v7001_v42 = vpop.permute.xlu0 %898 }
  0xa6   :  { %11038 = vst [vmem:[#allocation15_spill] sm:$0xff] %v6999_v41  ;;  %11039 = vst [vmem:[#allocation16_spill] sm:$0xff] %v7001_v42  ;;  %1213 = vperm.xlu1 %6642, %v623_v39   ;;  %1208 = vperm.xlu0 %6641, %v622_v40   ;;  %v645_v39 = vld [vmem:[%s11005_s1 + $0x348] sm:$0xff]  ;;  %v644_v40 = vld [vmem:[%s11005_s1 + $0x340] sm:$0xff]  ;;  %v5734_v41 = vunpack.c.l.bf16 %v6204_v5 }
  0xa9   :  { %v7009_v45 = vpop.permute.xlu1 %913  ;;  %v7011_v46 = vpop.permute.xlu0 %908 }
  0xaa   :  { %1223 = vperm.xlu1 %6642, %v625_v43   ;;  %1218 = vperm.xlu0 %6641, %v624_v44  }
  0xad   :  { %v7019_v49 = vpop.permute.xlu1 %923  ;;  %v7021_v50 = vpop.permute.xlu0 %918 }
  0xae   :  { %1233 = vperm.xlu1 %6642, %v627_v47   ;;  %1228 = vperm.xlu0 %6641, %v626_v48   ;;  %v647_v47 = vld [vmem:[%s11005_s1 + $0x358] sm:$0xff]  ;;  %v646_v48 = vld [vmem:[%s11005_s1 + $0x350] sm:$0xff] }
  0xb1   :  { %v7029_v53 = vpop.permute.xlu1 %933  ;;  %v7031_v54 = vpop.permute.xlu0 %928 }
  0xb2   :  { %1243 = vperm.xlu1 %6642, %v629_v51   ;;  %1238 = vperm.xlu0 %6641, %v628_v52  }
  0xb5   :  { %v7039_v57 = vpop.permute.xlu1 %943  ;;  %v7041_v58 = vpop.permute.xlu0 %938 }
  0xb6   :  { %1253 = vperm.xlu1 %6642, %v631_v55   ;;  %1248 = vperm.xlu0 %6641, %v630_v56   ;;  %v649_v55 = vld [vmem:[%s11005_s1 + $0x368] sm:$0xff]  ;;  %v648_v56 = vld [vmem:[%s11005_s1 + $0x360] sm:$0xff] }
  0xb9   :  { %v7049_v61 = vpop.permute.xlu1 %953  ;;  %v7051_v62 = vpop.permute.xlu0 %948 }
  0xba   :  { %1263 = vperm.xlu1 %6642, %v633_v59   ;;  %1258 = vperm.xlu0 %6641, %v632_v60  }
  0xbd   :  { %v7059_v3 = vpop.permute.xlu1 %963  ;;  %v7061_v4 = vpop.permute.xlu0 %958 }
  0xbe   :  { %11040 = vst [vmem:[#allocation17_spill] sm:$0xff] %v7059_v3  ;;  %11041 = vst [vmem:[#allocation18_spill] sm:$0xff] %v7061_v4  ;;  %1273 = vperm.xlu1 %6642, %v635_v63   ;;  %1268 = vperm.xlu0 %6641, %v634_v0   ;;  %v651_v63 = vld [vmem:[%s11005_s1 + $0x378] sm:$0xff]  ;;  %v650_v0 = vld [vmem:[%s11005_s1 + $0x370] sm:$0xff] }
  0xbf   :  { %v663_v4 = vld [vmem:[%s11005_s1 + $0x3d8] sm:$0xff] }
  0xc1   :  { %v7069_v11 = vpop.permute.xlu1 %973  ;;  %v7071_v12 = vpop.permute.xlu0 %968 }
  0xc2   :  { %11042 = vst [vmem:[#allocation19_spill] sm:$0xff] %v7069_v11  ;;  %11043 = vst [vmem:[#allocation20_spill] sm:$0xff] %v7071_v12  ;;  %1283 = vperm.xlu1 %6642, %v637_v7   ;;  %1278 = vperm.xlu0 %6641, %v636_v8   ;;  %v667_v12 = vld [vmem:[%s11005_s1 + $0x3f8] sm:$0xff] }
  0xc5   :  { %v7079_v19 = vpop.permute.xlu1 %983  ;;  %v7081_v20 = vpop.permute.xlu0 %978 }
  0xc6   :  { %11044 = vst [vmem:[#allocation21_spill] sm:$0xff] %v7079_v19  ;;  %11045 = vst [vmem:[#allocation22_spill] sm:$0xff] %v7081_v20  ;;  %1293 = vperm.xlu1 %6642, %v639_v15   ;;  %1288 = vperm.xlu0 %6641, %v638_v16   ;;  %v653_v15 = vld [vmem:[%s11005_s1 + $0x388] sm:$0xff]  ;;  %v652_v16 = vld [vmem:[%s11005_s1 + $0x380] sm:$0xff] }
  0xc7   :  { %v2399_v20 = vld [vmem:[%s11006_s2 + $0x218] sm:$0xff] }
  0xc9   :  { %v7089_v27 = vpop.permute.xlu1 %993  ;;  %v7091_v28 = vpop.permute.xlu0 %988 }
  0xca   :  { %11046 = vst [vmem:[#allocation23_spill] sm:$0xff] %v7089_v27  ;;  %11047 = vst [vmem:[#allocation24_spill] sm:$0xff] %v7091_v28  ;;  %1303 = vperm.xlu1 %6642, %v641_v23   ;;  %1298 = vperm.xlu0 %6641, %v640_v24   ;;  %v2403_v28 = vld [vmem:[%s11006_s2 + $0x238] sm:$0xff] }
  0xcd   :  { %v7099_v35 = vpop.permute.xlu1 %1003  ;;  %v7101_v36 = vpop.permute.xlu0 %998 }
  0xce   :  { %11048 = vst [vmem:[#allocation25_spill] sm:$0xff] %v7099_v35  ;;  %11049 = vst [vmem:[#allocation26_spill] sm:$0xff] %v7101_v36  ;;  %1313 = vperm.xlu1 %6642, %v643_v31   ;;  %1308 = vperm.xlu0 %6641, %v642_v32   ;;  %v655_v31 = vld [vmem:[%s11005_s1 + $0x398] sm:$0xff]  ;;  %v654_v32 = vld [vmem:[%s11005_s1 + $0x390] sm:$0xff] }
  0xcf   :  { %v2407_v36 = vld [vmem:[%s11006_s2 + $0x258] sm:$0xff] }
  0xd1   :  { %v7109_v43 = vpop.permute.xlu1 %1013  ;;  %v7111_v44 = vpop.permute.xlu0 %1008 }
  0xd2   :  { %11050 = vst [vmem:[#allocation27_spill] sm:$0xff] %v7109_v43  ;;  %11051 = vst [vmem:[#allocation28_spill] sm:$0xff] %v7111_v44  ;;  %1323 = vperm.xlu1 %6642, %v645_v39   ;;  %1318 = vperm.xlu0 %6641, %v644_v40   ;;  %v2411_v44 = vld [vmem:[%s11006_s2 + $0x278] sm:$0xff] }
  0xd5   :  { %v7119_v51 = vpop.permute.xlu1 %1023  ;;  %v7121_v52 = vpop.permute.xlu0 %1018 }
  0xd6   :  { %11052 = vst [vmem:[#allocation29_spill] sm:$0xff] %v7119_v51  ;;  %11053 = vst [vmem:[#allocation30_spill] sm:$0xff] %v7121_v52  ;;  %1333 = vperm.xlu1 %6642, %v647_v47   ;;  %1328 = vperm.xlu0 %6641, %v646_v48   ;;  %v657_v47 = vld [vmem:[%s11005_s1 + $0x3a8] sm:$0xff]  ;;  %v656_v48 = vld [vmem:[%s11005_s1 + $0x3a0] sm:$0xff] }
  0xd7   :  { %v2417_v51 = vld [vmem:[%s11006_s2 + $0x2a8] sm:$0xff] }
  0xd9   :  { %v7129_v59 = vpop.permute.xlu1 %1033  ;;  %v7131_v60 = vpop.permute.xlu0 %1028 }
  0xda   :  { %11054 = vst [vmem:[#allocation31_spill] sm:$0xff] %v7129_v59  ;;  %11055 = vst [vmem:[#allocation32_spill] sm:$0xff] %v7131_v60  ;;  %1343 = vperm.xlu1 %6642, %v649_v55   ;;  %1338 = vperm.xlu0 %6641, %v648_v56   ;;  %v8316_v60 = vld [vmem:[%s11004_s0 + $0x10] sm:$0xff]   ;;  %v8321_v59 = vld [vmem:[%s11004_s0 + $0x18] sm:$0xff]  }
  0xdb   :  { %11280 = vst [vmem:[#allocation257_spill] sm:$0xff] %v8316_v60  ;;  %v5735_v60 = vunpack.c.h.bf16 %v6204_v5 }
  0xdd   :  { %v7139_v7 = vpop.permute.xlu1 %1043  ;;  %v7141_v8 = vpop.permute.xlu0 %1038 }
  0xde   :  { %11056 = vst [vmem:[#allocation33_spill] sm:$0xff] %v7139_v7  ;;  %11057 = vst [vmem:[#allocation34_spill] sm:$0xff] %v7141_v8  ;;  %1353 = vperm.xlu1 %6642, %v651_v63   ;;  %1348 = vperm.xlu0 %6641, %v650_v0   ;;  %v659_v63 = vld [vmem:[%s11005_s1 + $0x3b8] sm:$0xff]  ;;  %v658_v0 = vld [vmem:[%s11005_s1 + $0x3b0] sm:$0xff] }
  0xdf   :  { %v665_v8 = vld [vmem:[%s11005_s1 + $0x3e8] sm:$0xff] }
  0xe1   :  { %v7149_v23 = vpop.permute.xlu1 %1053  ;;  %v7151_v24 = vpop.permute.xlu0 %1048 }
  0xe2   :  { %11058 = vst [vmem:[#allocation35_spill] sm:$0xff] %v7149_v23  ;;  %11059 = vst [vmem:[#allocation36_spill] sm:$0xff] %v7151_v24  ;;  %1363 = vperm.xlu1 %6642, %v653_v15   ;;  %1358 = vperm.xlu0 %6641, %v652_v16   ;;  %v669_v24 = vld [vmem:[%s11005_s1 + $0x408] sm:$0xff] }
  0xe5   :  { %v7159_v39 = vpop.permute.xlu1 %1063  ;;  %v7161_v40 = vpop.permute.xlu0 %1058 }
  0xe6   :  { %11060 = vst [vmem:[#allocation37_spill] sm:$0xff] %v7159_v39  ;;  %11061 = vst [vmem:[#allocation38_spill] sm:$0xff] %v7161_v40  ;;  %1373 = vperm.xlu1 %6642, %v655_v31   ;;  %1368 = vperm.xlu0 %6641, %v654_v32   ;;  %v661_v31 = vld [vmem:[%s11005_s1 + $0x3c8] sm:$0xff]  ;;  %v660_v32 = vld [vmem:[%s11005_s1 + $0x3c0] sm:$0xff] }
  0xe7   :  { %v2401_v40 = vld [vmem:[%s11006_s2 + $0x228] sm:$0xff] }
  0xe9   :  { %v7169_v55 = vpop.permute.xlu1 %1073  ;;  %v7171_v56 = vpop.permute.xlu0 %1068 }
  0xea   :  { %11062 = vst [vmem:[#allocation39_spill] sm:$0xff] %v7169_v55  ;;  %11063 = vst [vmem:[#allocation40_spill] sm:$0xff] %v7171_v56  ;;  %1383 = vperm.xlu1 %6642, %v657_v47   ;;  %1378 = vperm.xlu0 %6641, %v656_v48   ;;  %v2405_v56 = vld [vmem:[%s11006_s2 + $0x248] sm:$0xff] }
  0xed   :  { %v7179_v15 = vpop.permute.xlu1 %1083  ;;  %v7181_v16 = vpop.permute.xlu0 %1078 }
  0xee   :  { %11064 = vst [vmem:[#allocation41_spill] sm:$0xff] %v7179_v15  ;;  %11065 = vst [vmem:[#allocation42_spill] sm:$0xff] %v7181_v16  ;;  %1393 = vperm.xlu1 %6642, %v659_v63   ;;  %1388 = vperm.xlu0 %6641, %v658_v0   ;;  %v662_v63 = vld [vmem:[%s11005_s1 + $0x3d0] sm:$0xff]  ;;  %v2409_v16 = vld [vmem:[%s11006_s2 + $0x268] sm:$0xff] }
  0xf1   :  { %v7189_v47 = vpop.permute.xlu1 %1093  ;;  %v7191_v48 = vpop.permute.xlu0 %1088 }
  0xf2   :  { %11066 = vst [vmem:[#allocation43_spill] sm:$0xff] %v7189_v47  ;;  %11067 = vst [vmem:[#allocation44_spill] sm:$0xff] %v7191_v48  ;;  %1403 = vperm.xlu1 %6642, %v661_v31   ;;  %1398 = vperm.xlu0 %6641, %v660_v32   ;;  %v664_v31 = vld [vmem:[%s11005_s1 + $0x3e0] sm:$0xff]  ;;  %v2413_v47 = vld [vmem:[%s11006_s2 + $0x288] sm:$0xff] }
  0xf5   :  { %v7199_v0 = vpop.permute.xlu1 %1103  ;;  %v7201_v3 = vpop.permute.xlu0 %1098 }
  0xf6   :  { %11068 = vst [vmem:[#allocation45_spill] sm:$0xff] %v7199_v0  ;;  %11069 = vst [vmem:[#allocation46_spill] sm:$0xff] %v7201_v3  ;;  %1413 = vperm.xlu1 %6642, %v663_v4   ;;  %1408 = vperm.xlu0 %6641, %v662_v63   ;;  %v666_v4 = vld [vmem:[%s11005_s1 + $0x3f0] sm:$0xff]  ;;  %v2419_v3 = vld [vmem:[%s11006_s2 + $0x2b8] sm:$0xff] }
  0xf7   :  { %v8307_v0 = vld [vmem:[%s11004_s0] sm:$0xff]  }
  0xf8   :  { %11279 = vst [vmem:[#allocation256_spill] sm:$0xff] %v8307_v0  ;;  %v6203_v0 = vld [vmem:[%s11004_s0 + $0x60] sm:$0xff]  }
  0xf9   :  { %v7209_v32 = vpop.permute.xlu1 %1113  ;;  %v7211_v7 = vpop.permute.xlu0 %1108  ;;  %v5731_v42 = vunpack.c.h.bf16 %v6203_v0 }
  0xfa   :  { %11070 = vst [vmem:[#allocation47_spill] sm:$0xff] %v7209_v32  ;;  %11071 = vst [vmem:[#allocation48_spill] sm:$0xff] %v7211_v7  ;;  %1423 = vperm.xlu1 %6642, %v665_v8   ;;  %1418 = vperm.xlu0 %6641, %v664_v31   ;;  %v668_v8 = vld [vmem:[%s11005_s1 + $0x400] sm:$0xff]  ;;  %v2415_v7 = vld [vmem:[%s11006_s2 + $0x298] sm:$0xff] }
  0xfd   :  { %v7219_v63 = vpop.permute.xlu1 %1123  ;;  %v7221_v11 = vpop.permute.xlu0 %1118 }
  0xfe   :  { %11072 = vst [vmem:[#allocation49_spill] sm:$0xff] %v7219_v63  ;;  %11073 = vst [vmem:[#allocation50_spill] sm:$0xff] %v7221_v11  ;;  %1433 = vperm.xlu1 %6642, %v667_v12   ;;  %1428 = vperm.xlu0 %6641, %v666_v4   ;;  %v671_v11 = vld [vmem:[%s11005_s1 + $0x418] sm:$0xff]  ;;  %v670_v12 = vld [vmem:[%s11005_s1 + $0x410] sm:$0xff] }
 0x101   :  { %v7229_v31 = vpop.permute.xlu1 %1133  ;;  %v7231_v23 = vpop.permute.xlu0 %1128 }
 0x102   :  { %11074 = vst [vmem:[#allocation51_spill] sm:$0xff] %v7229_v31  ;;  %11075 = vst [vmem:[#allocation52_spill] sm:$0xff] %v7231_v23  ;;  %1443 = vperm.xlu1 %6642, %v669_v24   ;;  %1438 = vperm.xlu0 %6641, %v668_v8   ;;  %v673_v23 = vld [vmem:[%s11005_s1 + $0x428] sm:$0xff]  ;;  %v672_v24 = vld [vmem:[%s11005_s1 + $0x420] sm:$0xff] }
 0x105   :  { %v7239_v4 = vpop.permute.xlu1 %1143  ;;  %v7241_v63 = vpop.permute.xlu0 %1138 }
 0x106   :  { %11076 = vst [vmem:[#allocation53_spill] sm:$0xff] %v7239_v4  ;;  %11077 = vst [vmem:[#allocation54_spill] sm:$0xff] %v7241_v63  ;;  %1453 = vperm.xlu1 %6642, %v671_v11   ;;  %1448 = vperm.xlu0 %6641, %v670_v12   ;;  %v675_v63 = vld [vmem:[%s11005_s1 + $0x438] sm:$0xff]  ;;  %v674_v11 = vld [vmem:[%s11005_s1 + $0x430] sm:$0xff] }
 0x109   :  { %v7249_v8 = vpop.permute.xlu1 %1153  ;;  %v7251_v31 = vpop.permute.xlu0 %1148 }
 0x10a   :  { %11078 = vst [vmem:[#allocation55_spill] sm:$0xff] %v7249_v8  ;;  %11079 = vst [vmem:[#allocation56_spill] sm:$0xff] %v7251_v31  ;;  %1463 = vperm.xlu1 %6642, %v673_v23   ;;  %1458 = vperm.xlu0 %6641, %v672_v24   ;;  %v677_v31 = vld [vmem:[%s11005_s1 + $0x448] sm:$0xff]  ;;  %v676_v23 = vld [vmem:[%s11005_s1 + $0x440] sm:$0xff] }
 0x10d   :  { %v7259_v12 = vpop.permute.xlu1 %1163  ;;  %v7261_v4 = vpop.permute.xlu0 %1158 }
 0x10e   :  { %11080 = vst [vmem:[#allocation57_spill] sm:$0xff] %v7259_v12  ;;  %11081 = vst [vmem:[#allocation58_spill] sm:$0xff] %v7261_v4  ;;  %1473 = vperm.xlu1 %6642, %v675_v63   ;;  %1468 = vperm.xlu0 %6641, %v674_v11   ;;  %v679_v4 = vld [vmem:[%s11005_s1 + $0x458] sm:$0xff]  ;;  %v678_v63 = vld [vmem:[%s11005_s1 + $0x450] sm:$0xff] }
 0x111   :  { %v7269_v24 = vpop.permute.xlu1 %1173  ;;  %v7271_v8 = vpop.permute.xlu0 %1168 }
 0x112   :  { %11082 = vst [vmem:[#allocation59_spill] sm:$0xff] %v7269_v24  ;;  %11083 = vst [vmem:[#allocation60_spill] sm:$0xff] %v7271_v8  ;;  %1483 = vperm.xlu1 %6642, %v677_v31   ;;  %1478 = vperm.xlu0 %6641, %v676_v23   ;;  %v681_v8 = vld [vmem:[%s11005_s1 + $0x468] sm:$0xff]  ;;  %v680_v31 = vld [vmem:[%s11005_s1 + $0x460] sm:$0xff] }
 0x115   :  { %v7279_v11 = vpop.permute.xlu1 %1183  ;;  %v7281_v12 = vpop.permute.xlu0 %1178 }
 0x116   :  { %11084 = vst [vmem:[#allocation61_spill] sm:$0xff] %v7279_v11  ;;  %11085 = vst [vmem:[#allocation62_spill] sm:$0xff] %v7281_v12  ;;  %1493 = vperm.xlu1 %6642, %v679_v4   ;;  %1488 = vperm.xlu0 %6641, %v678_v63   ;;  %v683_v12 = vld [vmem:[%s11005_s1 + $0x478] sm:$0xff]  ;;  %v682_v4 = vld [vmem:[%s11005_s1 + $0x470] sm:$0xff] }
 0x119   :  { %v7289_v23 = vpop.permute.xlu1 %1193  ;;  %v7291_v24 = vpop.permute.xlu0 %1188 }
 0x11a   :  { %11086 = vst [vmem:[#allocation63_spill] sm:$0xff] %v7289_v23  ;;  %11087 = vst [vmem:[#allocation64_spill] sm:$0xff] %v7291_v24  ;;  %1503 = vperm.xlu1 %6642, %v681_v8   ;;  %1498 = vperm.xlu0 %6641, %v680_v31   ;;  %v685_v24 = vld [vmem:[%s11005_s1 + $0x488] sm:$0xff]  ;;  %v684_v8 = vld [vmem:[%s11005_s1 + $0x480] sm:$0xff] }
 0x11d   :  { %v7299_v63 = vpop.permute.xlu1 %1203  ;;  %v7301_v11 = vpop.permute.xlu0 %1198 }
 0x11e   :  { %11088 = vst [vmem:[#allocation65_spill] sm:$0xff] %v7299_v63  ;;  %11089 = vst [vmem:[#allocation66_spill] sm:$0xff] %v7301_v11  ;;  %1513 = vperm.xlu1 %6642, %v683_v12   ;;  %1508 = vperm.xlu0 %6641, %v682_v4   ;;  %v687_v11 = vld [vmem:[%s11005_s1 + $0x498] sm:$0xff]  ;;  %v686_v12 = vld [vmem:[%s11005_s1 + $0x490] sm:$0xff] }
 0x121   :  { %v7309_v31 = vpop.permute.xlu1 %1213  ;;  %v7311_v23 = vpop.permute.xlu0 %1208 }
 0x122   :  { %11090 = vst [vmem:[#allocation67_spill] sm:$0xff] %v7309_v31  ;;  %11091 = vst [vmem:[#allocation68_spill] sm:$0xff] %v7311_v23  ;;  %1523 = vperm.xlu1 %6642, %v685_v24   ;;  %1518 = vperm.xlu0 %6641, %v684_v8   ;;  %v689_v23 = vld [vmem:[%s11005_s1 + $0x4a8] sm:$0xff]  ;;  %v688_v24 = vld [vmem:[%s11005_s1 + $0x4a0] sm:$0xff] }
 0x125   :  { %v7319_v4 = vpop.permute.xlu1 %1223  ;;  %v7321_v63 = vpop.permute.xlu0 %1218 }
 0x126   :  { %11092 = vst [vmem:[#allocation69_spill] sm:$0xff] %v7319_v4  ;;  %11093 = vst [vmem:[#allocation70_spill] sm:$0xff] %v7321_v63  ;;  %1533 = vperm.xlu1 %6642, %v687_v11   ;;  %1528 = vperm.xlu0 %6641, %v686_v12   ;;  %v691_v63 = vld [vmem:[%s11005_s1 + $0x4b8] sm:$0xff]  ;;  %v690_v11 = vld [vmem:[%s11005_s1 + $0x4b0] sm:$0xff] }
 0x129   :  { %v7329_v8 = vpop.permute.xlu1 %1233  ;;  %v7331_v31 = vpop.permute.xlu0 %1228 }
 0x12a   :  { %11094 = vst [vmem:[#allocation71_spill] sm:$0xff] %v7329_v8  ;;  %11095 = vst [vmem:[#allocation72_spill] sm:$0xff] %v7331_v31  ;;  %1543 = vperm.xlu1 %6642, %v689_v23   ;;  %1538 = vperm.xlu0 %6641, %v688_v24   ;;  %v693_v31 = vld [vmem:[%s11005_s1 + $0x4c8] sm:$0xff]  ;;  %v692_v23 = vld [vmem:[%s11005_s1 + $0x4c0] sm:$0xff] }
 0x12d   :  { %v7339_v12 = vpop.permute.xlu1 %1243  ;;  %v7341_v4 = vpop.permute.xlu0 %1238 }
 0x12e   :  { %11096 = vst [vmem:[#allocation73_spill] sm:$0xff] %v7339_v12  ;;  %11097 = vst [vmem:[#allocation74_spill] sm:$0xff] %v7341_v4  ;;  %1553 = vperm.xlu1 %6642, %v691_v63   ;;  %1548 = vperm.xlu0 %6641, %v690_v11   ;;  %v695_v4 = vld [vmem:[%s11005_s1 + $0x4d8] sm:$0xff]  ;;  %v694_v63 = vld [vmem:[%s11005_s1 + $0x4d0] sm:$0xff] }
 0x131   :  { %v7349_v24 = vpop.permute.xlu1 %1253  ;;  %v7351_v8 = vpop.permute.xlu0 %1248 }
 0x132   :  { %11098 = vst [vmem:[#allocation75_spill] sm:$0xff] %v7349_v24  ;;  %11099 = vst [vmem:[#allocation76_spill] sm:$0xff] %v7351_v8  ;;  %1563 = vperm.xlu1 %6642, %v693_v31   ;;  %1558 = vperm.xlu0 %6641, %v692_v23   ;;  %v697_v8 = vld [vmem:[%s11005_s1 + $0x4e8] sm:$0xff]  ;;  %v696_v31 = vld [vmem:[%s11005_s1 + $0x4e0] sm:$0xff] }
 0x135   :  { %v7359_v11 = vpop.permute.xlu1 %1263  ;;  %v7361_v12 = vpop.permute.xlu0 %1258 }
 0x136   :  { %11100 = vst [vmem:[#allocation77_spill] sm:$0xff] %v7359_v11  ;;  %11101 = vst [vmem:[#allocation78_spill] sm:$0xff] %v7361_v12  ;;  %1573 = vperm.xlu1 %6642, %v695_v4   ;;  %1568 = vperm.xlu0 %6641, %v694_v63   ;;  %v699_v12 = vld [vmem:[%s11005_s1 + $0x4f8] sm:$0xff]  ;;  %v698_v4 = vld [vmem:[%s11005_s1 + $0x4f0] sm:$0xff] }
 0x139   :  { %v7369_v23 = vpop.permute.xlu1 %1273  ;;  %v7371_v24 = vpop.permute.xlu0 %1268 }
 0x13a   :  { %11102 = vst [vmem:[#allocation79_spill] sm:$0xff] %v7369_v23  ;;  %11103 = vst [vmem:[#allocation80_spill] sm:$0xff] %v7371_v24  ;;  %1583 = vperm.xlu1 %6642, %v697_v8   ;;  %1578 = vperm.xlu0 %6641, %v696_v31   ;;  %v701_v24 = vld [vmem:[%s11005_s1 + $0x508] sm:$0xff]  ;;  %v700_v8 = vld [vmem:[%s11005_s1 + $0x500] sm:$0xff] }
 0x13d   :  { %v7379_v63 = vpop.permute.xlu1 %1283  ;;  %v7381_v11 = vpop.permute.xlu0 %1278 }
 0x13e   :  { %11104 = vst [vmem:[#allocation81_spill] sm:$0xff] %v7379_v63  ;;  %11105 = vst [vmem:[#allocation82_spill] sm:$0xff] %v7381_v11  ;;  %1593 = vperm.xlu1 %6642, %v699_v12   ;;  %1588 = vperm.xlu0 %6641, %v698_v4   ;;  %v703_v11 = vld [vmem:[%s11005_s1 + $0x518] sm:$0xff]  ;;  %v702_v12 = vld [vmem:[%s11005_s1 + $0x510] sm:$0xff] }
 0x141   :  { %v7389_v31 = vpop.permute.xlu1 %1293  ;;  %v7391_v23 = vpop.permute.xlu0 %1288 }
 0x142   :  { %11106 = vst [vmem:[#allocation83_spill] sm:$0xff] %v7389_v31  ;;  %11107 = vst [vmem:[#allocation84_spill] sm:$0xff] %v7391_v23  ;;  %1603 = vperm.xlu1 %6642, %v701_v24   ;;  %1598 = vperm.xlu0 %6641, %v700_v8   ;;  %v705_v23 = vld [vmem:[%s11005_s1 + $0x528] sm:$0xff]  ;;  %v704_v24 = vld [vmem:[%s11005_s1 + $0x520] sm:$0xff] }
 0x145   :  { %v7399_v4 = vpop.permute.xlu1 %1303  ;;  %v7401_v63 = vpop.permute.xlu0 %1298 }
 0x146   :  { %11108 = vst [vmem:[#allocation85_spill] sm:$0xff] %v7399_v4  ;;  %11109 = vst [vmem:[#allocation86_spill] sm:$0xff] %v7401_v63  ;;  %1613 = vperm.xlu1 %6642, %v703_v11   ;;  %1608 = vperm.xlu0 %6641, %v702_v12   ;;  %v707_v63 = vld [vmem:[%s11005_s1 + $0x538] sm:$0xff]  ;;  %v706_v11 = vld [vmem:[%s11005_s1 + $0x530] sm:$0xff] }
 0x149   :  { %v7409_v8 = vpop.permute.xlu1 %1313  ;;  %v7411_v31 = vpop.permute.xlu0 %1308 }
 0x14a   :  { %11110 = vst [vmem:[#allocation87_spill] sm:$0xff] %v7409_v8  ;;  %11111 = vst [vmem:[#allocation88_spill] sm:$0xff] %v7411_v31  ;;  %1623 = vperm.xlu1 %6642, %v705_v23   ;;  %1618 = vperm.xlu0 %6641, %v704_v24   ;;  %v709_v31 = vld [vmem:[%s11005_s1 + $0x548] sm:$0xff]  ;;  %v708_v23 = vld [vmem:[%s11005_s1 + $0x540] sm:$0xff] }
 0x14d   :  { %v7419_v12 = vpop.permute.xlu1 %1323  ;;  %v7421_v4 = vpop.permute.xlu0 %1318 }
 0x14e   :  { %11112 = vst [vmem:[#allocation89_spill] sm:$0xff] %v7419_v12  ;;  %11113 = vst [vmem:[#allocation90_spill] sm:$0xff] %v7421_v4  ;;  %1633 = vperm.xlu1 %6642, %v707_v63   ;;  %1628 = vperm.xlu0 %6641, %v706_v11   ;;  %v711_v4 = vld [vmem:[%s11005_s1 + $0x558] sm:$0xff]  ;;  %v710_v63 = vld [vmem:[%s11005_s1 + $0x550] sm:$0xff] }
 0x151   :  { %v7429_v24 = vpop.permute.xlu1 %1333  ;;  %v7431_v8 = vpop.permute.xlu0 %1328 }
 0x152   :  { %11114 = vst [vmem:[#allocation91_spill] sm:$0xff] %v7429_v24  ;;  %11115 = vst [vmem:[#allocation92_spill] sm:$0xff] %v7431_v8  ;;  %1643 = vperm.xlu1 %6642, %v709_v31   ;;  %1638 = vperm.xlu0 %6641, %v708_v23   ;;  %v713_v8 = vld [vmem:[%s11005_s1 + $0x568] sm:$0xff]  ;;  %v712_v31 = vld [vmem:[%s11005_s1 + $0x560] sm:$0xff] }
 0x155   :  { %v7439_v11 = vpop.permute.xlu1 %1343  ;;  %v7441_v12 = vpop.permute.xlu0 %1338 }
 0x156   :  { %11116 = vst [vmem:[#allocation93_spill] sm:$0xff] %v7439_v11  ;;  %11117 = vst [vmem:[#allocation94_spill] sm:$0xff] %v7441_v12  ;;  %1653 = vperm.xlu1 %6642, %v711_v4   ;;  %1648 = vperm.xlu0 %6641, %v710_v63   ;;  %v715_v12 = vld [vmem:[%s11005_s1 + $0x578] sm:$0xff]  ;;  %v714_v4 = vld [vmem:[%s11005_s1 + $0x570] sm:$0xff] }
 0x159   :  { %v7449_v23 = vpop.permute.xlu1 %1353  ;;  %v7451_v24 = vpop.permute.xlu0 %1348 }
 0x15a   :  { %11118 = vst [vmem:[#allocation95_spill] sm:$0xff] %v7449_v23  ;;  %11119 = vst [vmem:[#allocation96_spill] sm:$0xff] %v7451_v24  ;;  %1663 = vperm.xlu1 %6642, %v713_v8   ;;  %1658 = vperm.xlu0 %6641, %v712_v31   ;;  %v717_v24 = vld [vmem:[%s11005_s1 + $0x588] sm:$0xff]  ;;  %v716_v8 = vld [vmem:[%s11005_s1 + $0x580] sm:$0xff] }
 0x15d   :  { %v7459_v63 = vpop.permute.xlu1 %1363  ;;  %v7461_v11 = vpop.permute.xlu0 %1358 }
 0x15e   :  { %11120 = vst [vmem:[#allocation97_spill] sm:$0xff] %v7459_v63  ;;  %11121 = vst [vmem:[#allocation98_spill] sm:$0xff] %v7461_v11  ;;  %1673 = vperm.xlu1 %6642, %v715_v12   ;;  %1668 = vperm.xlu0 %6641, %v714_v4   ;;  %v719_v11 = vld [vmem:[%s11005_s1 + $0x598] sm:$0xff]  ;;  %v718_v12 = vld [vmem:[%s11005_s1 + $0x590] sm:$0xff] }
 0x161   :  { %v7469_v31 = vpop.permute.xlu1 %1373  ;;  %v7471_v23 = vpop.permute.xlu0 %1368 }
 0x162   :  { %11122 = vst [vmem:[#allocation99_spill] sm:$0xff] %v7469_v31  ;;  %11123 = vst [vmem:[#allocation100_spill] sm:$0xff] %v7471_v23  ;;  %1683 = vperm.xlu1 %6642, %v717_v24   ;;  %1678 = vperm.xlu0 %6641, %v716_v8   ;;  %v721_v23 = vld [vmem:[%s11005_s1 + $0x5a8] sm:$0xff]  ;;  %v720_v24 = vld [vmem:[%s11005_s1 + $0x5a0] sm:$0xff] }
 0x165   :  { %v7479_v4 = vpop.permute.xlu1 %1383  ;;  %v7481_v63 = vpop.permute.xlu0 %1378 }
 0x166   :  { %11124 = vst [vmem:[#allocation101_spill] sm:$0xff] %v7479_v4  ;;  %11125 = vst [vmem:[#allocation102_spill] sm:$0xff] %v7481_v63  ;;  %1693 = vperm.xlu1 %6642, %v719_v11   ;;  %1688 = vperm.xlu0 %6641, %v718_v12   ;;  %v723_v63 = vld [vmem:[%s11005_s1 + $0x5b8] sm:$0xff]  ;;  %v722_v11 = vld [vmem:[%s11005_s1 + $0x5b0] sm:$0xff] }
 0x169   :  { %v7489_v8 = vpop.permute.xlu1 %1393  ;;  %v7491_v31 = vpop.permute.xlu0 %1388 }
 0x16a   :  { %11126 = vst [vmem:[#allocation103_spill] sm:$0xff] %v7489_v8  ;;  %11127 = vst [vmem:[#allocation104_spill] sm:$0xff] %v7491_v31  ;;  %1703 = vperm.xlu1 %6642, %v721_v23   ;;  %1698 = vperm.xlu0 %6641, %v720_v24   ;;  %v725_v31 = vld [vmem:[%s11005_s1 + $0x5c8] sm:$0xff]  ;;  %v724_v23 = vld [vmem:[%s11005_s1 + $0x5c0] sm:$0xff] }
 0x16d   :  { %v7499_v12 = vpop.permute.xlu1 %1403  ;;  %v7501_v4 = vpop.permute.xlu0 %1398 }
 0x16e   :  { %11128 = vst [vmem:[#allocation105_spill] sm:$0xff] %v7499_v12  ;;  %11129 = vst [vmem:[#allocation106_spill] sm:$0xff] %v7501_v4  ;;  %1713 = vperm.xlu1 %6642, %v723_v63   ;;  %1708 = vperm.xlu0 %6641, %v722_v11   ;;  %v727_v4 = vld [vmem:[%s11005_s1 + $0x5d8] sm:$0xff]  ;;  %v726_v63 = vld [vmem:[%s11005_s1 + $0x5d0] sm:$0xff] }
 0x171   :  { %v7509_v24 = vpop.permute.xlu1 %1413  ;;  %v7511_v8 = vpop.permute.xlu0 %1408 }
 0x172   :  { %11130 = vst [vmem:[#allocation107_spill] sm:$0xff] %v7509_v24  ;;  %11131 = vst [vmem:[#allocation108_spill] sm:$0xff] %v7511_v8  ;;  %1723 = vperm.xlu1 %6642, %v725_v31   ;;  %1718 = vperm.xlu0 %6641, %v724_v23   ;;  %v729_v8 = vld [vmem:[%s11005_s1 + $0x5e8] sm:$0xff]  ;;  %v728_v31 = vld [vmem:[%s11005_s1 + $0x5e0] sm:$0xff] }
 0x175   :  { %v7519_v11 = vpop.permute.xlu1 %1423  ;;  %v7521_v12 = vpop.permute.xlu0 %1418 }
 0x176   :  { %11132 = vst [vmem:[#allocation109_spill] sm:$0xff] %v7519_v11  ;;  %11133 = vst [vmem:[#allocation110_spill] sm:$0xff] %v7521_v12  ;;  %1733 = vperm.xlu1 %6642, %v727_v4   ;;  %1728 = vperm.xlu0 %6641, %v726_v63   ;;  %v731_v12 = vld [vmem:[%s11005_s1 + $0x5f8] sm:$0xff]  ;;  %v730_v4 = vld [vmem:[%s11005_s1 + $0x5f0] sm:$0xff] }
 0x179   :  { %v7529_v23 = vpop.permute.xlu1 %1433  ;;  %v7531_v24 = vpop.permute.xlu0 %1428 }
 0x17a   :  { %11134 = vst [vmem:[#allocation111_spill] sm:$0xff] %v7529_v23  ;;  %11135 = vst [vmem:[#allocation112_spill] sm:$0xff] %v7531_v24  ;;  %1743 = vperm.xlu1 %6642, %v729_v8   ;;  %1738 = vperm.xlu0 %6641, %v728_v31   ;;  %v733_v24 = vld [vmem:[%s11005_s1 + $0x608] sm:$0xff]  ;;  %v732_v8 = vld [vmem:[%s11005_s1 + $0x600] sm:$0xff] }
 0x17d   :  { %v7539_v63 = vpop.permute.xlu1 %1443  ;;  %v7541_v11 = vpop.permute.xlu0 %1438 }
 0x17e   :  { %11136 = vst [vmem:[#allocation113_spill] sm:$0xff] %v7539_v63  ;;  %11137 = vst [vmem:[#allocation114_spill] sm:$0xff] %v7541_v11  ;;  %1753 = vperm.xlu1 %6642, %v731_v12   ;;  %1748 = vperm.xlu0 %6641, %v730_v4   ;;  %v735_v11 = vld [vmem:[%s11005_s1 + $0x618] sm:$0xff]  ;;  %v734_v12 = vld [vmem:[%s11005_s1 + $0x610] sm:$0xff] }
 0x181   :  { %v7549_v31 = vpop.permute.xlu1 %1453  ;;  %v7551_v23 = vpop.permute.xlu0 %1448 }
 0x182   :  { %11138 = vst [vmem:[#allocation115_spill] sm:$0xff] %v7549_v31  ;;  %11139 = vst [vmem:[#allocation116_spill] sm:$0xff] %v7551_v23  ;;  %1763 = vperm.xlu1 %6642, %v733_v24   ;;  %1758 = vperm.xlu0 %6641, %v732_v8   ;;  %v737_v23 = vld [vmem:[%s11005_s1 + $0x628] sm:$0xff]  ;;  %v736_v24 = vld [vmem:[%s11005_s1 + $0x620] sm:$0xff] }
 0x185   :  { %v7559_v4 = vpop.permute.xlu1 %1463  ;;  %v7561_v63 = vpop.permute.xlu0 %1458 }
 0x186   :  { %11140 = vst [vmem:[#allocation117_spill] sm:$0xff] %v7559_v4  ;;  %11141 = vst [vmem:[#allocation118_spill] sm:$0xff] %v7561_v63  ;;  %1773 = vperm.xlu1 %6642, %v735_v11   ;;  %1768 = vperm.xlu0 %6641, %v734_v12   ;;  %v739_v63 = vld [vmem:[%s11005_s1 + $0x638] sm:$0xff]  ;;  %v738_v11 = vld [vmem:[%s11005_s1 + $0x630] sm:$0xff] }
 0x189   :  { %v7569_v8 = vpop.permute.xlu1 %1473  ;;  %v7571_v31 = vpop.permute.xlu0 %1468 }
 0x18a   :  { %11142 = vst [vmem:[#allocation119_spill] sm:$0xff] %v7569_v8  ;;  %11143 = vst [vmem:[#allocation120_spill] sm:$0xff] %v7571_v31  ;;  %1783 = vperm.xlu1 %6642, %v737_v23   ;;  %1778 = vperm.xlu0 %6641, %v736_v24   ;;  %v741_v31 = vld [vmem:[%s11005_s1 + $0x648] sm:$0xff]  ;;  %v740_v23 = vld [vmem:[%s11005_s1 + $0x640] sm:$0xff] }
 0x18d   :  { %v7579_v12 = vpop.permute.xlu1 %1483  ;;  %v7581_v4 = vpop.permute.xlu0 %1478 }
 0x18e   :  { %11144 = vst [vmem:[#allocation121_spill] sm:$0xff] %v7579_v12  ;;  %11145 = vst [vmem:[#allocation122_spill] sm:$0xff] %v7581_v4  ;;  %1793 = vperm.xlu1 %6642, %v739_v63   ;;  %1788 = vperm.xlu0 %6641, %v738_v11   ;;  %v743_v4 = vld [vmem:[%s11005_s1 + $0x658] sm:$0xff]  ;;  %v742_v63 = vld [vmem:[%s11005_s1 + $0x650] sm:$0xff] }
 0x191   :  { %v7589_v24 = vpop.permute.xlu1 %1493  ;;  %v7591_v8 = vpop.permute.xlu0 %1488 }
 0x192   :  { %11146 = vst [vmem:[#allocation123_spill] sm:$0xff] %v7589_v24  ;;  %11147 = vst [vmem:[#allocation124_spill] sm:$0xff] %v7591_v8  ;;  %1803 = vperm.xlu1 %6642, %v741_v31   ;;  %1798 = vperm.xlu0 %6641, %v740_v23   ;;  %v745_v8 = vld [vmem:[%s11005_s1 + $0x668] sm:$0xff]  ;;  %v744_v31 = vld [vmem:[%s11005_s1 + $0x660] sm:$0xff] }
 0x195   :  { %v7599_v11 = vpop.permute.xlu1 %1503  ;;  %v7601_v12 = vpop.permute.xlu0 %1498 }
 0x196   :  { %11148 = vst [vmem:[#allocation125_spill] sm:$0xff] %v7599_v11  ;;  %11149 = vst [vmem:[#allocation126_spill] sm:$0xff] %v7601_v12  ;;  %1813 = vperm.xlu1 %6642, %v743_v4   ;;  %1808 = vperm.xlu0 %6641, %v742_v63   ;;  %v747_v12 = vld [vmem:[%s11005_s1 + $0x678] sm:$0xff]  ;;  %v746_v4 = vld [vmem:[%s11005_s1 + $0x670] sm:$0xff] }
 0x199   :  { %v7609_v23 = vpop.permute.xlu1 %1513  ;;  %v7611_v24 = vpop.permute.xlu0 %1508 }
 0x19a   :  { %11150 = vst [vmem:[#allocation127_spill] sm:$0xff] %v7609_v23  ;;  %11151 = vst [vmem:[#allocation128_spill] sm:$0xff] %v7611_v24  ;;  %1823 = vperm.xlu1 %6642, %v745_v8   ;;  %1818 = vperm.xlu0 %6641, %v744_v31   ;;  %v749_v24 = vld [vmem:[%s11005_s1 + $0x688] sm:$0xff]  ;;  %v748_v8 = vld [vmem:[%s11005_s1 + $0x680] sm:$0xff] }
 0x19d   :  { %v7619_v63 = vpop.permute.xlu1 %1523  ;;  %v7621_v11 = vpop.permute.xlu0 %1518 }
 0x19e   :  { %11152 = vst [vmem:[#allocation129_spill] sm:$0xff] %v7619_v63  ;;  %11153 = vst [vmem:[#allocation130_spill] sm:$0xff] %v7621_v11  ;;  %1833 = vperm.xlu1 %6642, %v747_v12   ;;  %1828 = vperm.xlu0 %6641, %v746_v4   ;;  %v751_v11 = vld [vmem:[%s11005_s1 + $0x698] sm:$0xff]  ;;  %v750_v12 = vld [vmem:[%s11005_s1 + $0x690] sm:$0xff] }
 0x1a1   :  { %v7629_v31 = vpop.permute.xlu1 %1533  ;;  %v7631_v23 = vpop.permute.xlu0 %1528 }
 0x1a2   :  { %11154 = vst [vmem:[#allocation131_spill] sm:$0xff] %v7629_v31  ;;  %11155 = vst [vmem:[#allocation132_spill] sm:$0xff] %v7631_v23  ;;  %1843 = vperm.xlu1 %6642, %v749_v24   ;;  %1838 = vperm.xlu0 %6641, %v748_v8   ;;  %v753_v23 = vld [vmem:[%s11005_s1 + $0x6a8] sm:$0xff]  ;;  %v752_v24 = vld [vmem:[%s11005_s1 + $0x6a0] sm:$0xff] }
 0x1a5   :  { %v7639_v4 = vpop.permute.xlu1 %1543  ;;  %v7641_v63 = vpop.permute.xlu0 %1538 }
 0x1a6   :  { %11156 = vst [vmem:[#allocation133_spill] sm:$0xff] %v7639_v4  ;;  %11157 = vst [vmem:[#allocation134_spill] sm:$0xff] %v7641_v63  ;;  %1853 = vperm.xlu1 %6642, %v751_v11   ;;  %1848 = vperm.xlu0 %6641, %v750_v12   ;;  %v755_v63 = vld [vmem:[%s11005_s1 + $0x6b8] sm:$0xff]  ;;  %v754_v11 = vld [vmem:[%s11005_s1 + $0x6b0] sm:$0xff] }
 0x1a9   :  { %v7649_v8 = vpop.permute.xlu1 %1553  ;;  %v7651_v31 = vpop.permute.xlu0 %1548 }
 0x1aa   :  { %11158 = vst [vmem:[#allocation135_spill] sm:$0xff] %v7649_v8  ;;  %11159 = vst [vmem:[#allocation136_spill] sm:$0xff] %v7651_v31  ;;  %1863 = vperm.xlu1 %6642, %v753_v23   ;;  %1858 = vperm.xlu0 %6641, %v752_v24   ;;  %v757_v31 = vld [vmem:[%s11005_s1 + $0x6c8] sm:$0xff]  ;;  %v756_v23 = vld [vmem:[%s11005_s1 + $0x6c0] sm:$0xff] }
 0x1ad   :  { %v7659_v12 = vpop.permute.xlu1 %1563  ;;  %v7661_v4 = vpop.permute.xlu0 %1558 }
 0x1ae   :  { %11160 = vst [vmem:[#allocation137_spill] sm:$0xff] %v7659_v12  ;;  %11161 = vst [vmem:[#allocation138_spill] sm:$0xff] %v7661_v4  ;;  %1873 = vperm.xlu1 %6642, %v755_v63   ;;  %1868 = vperm.xlu0 %6641, %v754_v11   ;;  %v759_v4 = vld [vmem:[%s11005_s1 + $0x6d8] sm:$0xff]  ;;  %v758_v63 = vld [vmem:[%s11005_s1 + $0x6d0] sm:$0xff] }
 0x1b1   :  { %v7669_v24 = vpop.permute.xlu1 %1573  ;;  %v7671_v8 = vpop.permute.xlu0 %1568 }
 0x1b2   :  { %11162 = vst [vmem:[#allocation139_spill] sm:$0xff] %v7669_v24  ;;  %11163 = vst [vmem:[#allocation140_spill] sm:$0xff] %v7671_v8  ;;  %1883 = vperm.xlu1 %6642, %v757_v31   ;;  %1878 = vperm.xlu0 %6641, %v756_v23   ;;  %v761_v8 = vld [vmem:[%s11005_s1 + $0x6e8] sm:$0xff]  ;;  %v760_v31 = vld [vmem:[%s11005_s1 + $0x6e0] sm:$0xff] }
 0x1b5   :  { %v7679_v11 = vpop.permute.xlu1 %1583  ;;  %v7681_v12 = vpop.permute.xlu0 %1578 }
 0x1b6   :  { %11164 = vst [vmem:[#allocation141_spill] sm:$0xff] %v7679_v11  ;;  %11165 = vst [vmem:[#allocation142_spill] sm:$0xff] %v7681_v12  ;;  %1893 = vperm.xlu1 %6642, %v759_v4   ;;  %1888 = vperm.xlu0 %6641, %v758_v63   ;;  %v763_v12 = vld [vmem:[%s11005_s1 + $0x6f8] sm:$0xff]  ;;  %v762_v4 = vld [vmem:[%s11005_s1 + $0x6f0] sm:$0xff] }
 0x1b9   :  { %v7689_v23 = vpop.permute.xlu1 %1593  ;;  %v7691_v24 = vpop.permute.xlu0 %1588 }
 0x1ba   :  { %11166 = vst [vmem:[#allocation143_spill] sm:$0xff] %v7689_v23  ;;  %11167 = vst [vmem:[#allocation144_spill] sm:$0xff] %v7691_v24  ;;  %1903 = vperm.xlu1 %6642, %v761_v8   ;;  %1898 = vperm.xlu0 %6641, %v760_v31   ;;  %v765_v24 = vld [vmem:[%s11005_s1 + $0x708] sm:$0xff]  ;;  %v764_v8 = vld [vmem:[%s11005_s1 + $0x700] sm:$0xff] }
 0x1bd   :  { %v7699_v63 = vpop.permute.xlu1 %1603  ;;  %v7701_v11 = vpop.permute.xlu0 %1598 }
 0x1be   :  { %11168 = vst [vmem:[#allocation145_spill] sm:$0xff] %v7699_v63  ;;  %11169 = vst [vmem:[#allocation146_spill] sm:$0xff] %v7701_v11  ;;  %1913 = vperm.xlu1 %6642, %v763_v12   ;;  %1908 = vperm.xlu0 %6641, %v762_v4   ;;  %v767_v11 = vld [vmem:[%s11005_s1 + $0x718] sm:$0xff]  ;;  %v766_v12 = vld [vmem:[%s11005_s1 + $0x710] sm:$0xff] }
 0x1c1   :  { %v7709_v31 = vpop.permute.xlu1 %1613  ;;  %v7711_v23 = vpop.permute.xlu0 %1608 }
 0x1c2   :  { %11170 = vst [vmem:[#allocation147_spill] sm:$0xff] %v7709_v31  ;;  %11171 = vst [vmem:[#allocation148_spill] sm:$0xff] %v7711_v23  ;;  %1923 = vperm.xlu1 %6642, %v765_v24   ;;  %1918 = vperm.xlu0 %6641, %v764_v8   ;;  %v769_v23 = vld [vmem:[%s11005_s1 + $0x728] sm:$0xff]  ;;  %v768_v24 = vld [vmem:[%s11005_s1 + $0x720] sm:$0xff] }
 0x1c5   :  { %v7719_v4 = vpop.permute.xlu1 %1623  ;;  %v7721_v63 = vpop.permute.xlu0 %1618 }
 0x1c6   :  { %11172 = vst [vmem:[#allocation149_spill] sm:$0xff] %v7719_v4  ;;  %11173 = vst [vmem:[#allocation150_spill] sm:$0xff] %v7721_v63  ;;  %1933 = vperm.xlu1 %6642, %v767_v11   ;;  %1928 = vperm.xlu0 %6641, %v766_v12   ;;  %v771_v63 = vld [vmem:[%s11005_s1 + $0x738] sm:$0xff]  ;;  %v770_v11 = vld [vmem:[%s11005_s1 + $0x730] sm:$0xff] }
 0x1c9   :  { %v7729_v8 = vpop.permute.xlu1 %1633  ;;  %v7731_v31 = vpop.permute.xlu0 %1628 }
 0x1ca   :  { %11174 = vst [vmem:[#allocation151_spill] sm:$0xff] %v7729_v8  ;;  %11175 = vst [vmem:[#allocation152_spill] sm:$0xff] %v7731_v31  ;;  %1943 = vperm.xlu1 %6642, %v769_v23   ;;  %1938 = vperm.xlu0 %6641, %v768_v24   ;;  %v773_v31 = vld [vmem:[%s11005_s1 + $0x748] sm:$0xff]  ;;  %v772_v23 = vld [vmem:[%s11005_s1 + $0x740] sm:$0xff] }
 0x1cd   :  { %v7739_v12 = vpop.permute.xlu1 %1643  ;;  %v7741_v4 = vpop.permute.xlu0 %1638 }
 0x1ce   :  { %11176 = vst [vmem:[#allocation153_spill] sm:$0xff] %v7739_v12  ;;  %11177 = vst [vmem:[#allocation154_spill] sm:$0xff] %v7741_v4  ;;  %1953 = vperm.xlu1 %6642, %v771_v63   ;;  %1948 = vperm.xlu0 %6641, %v770_v11   ;;  %v775_v4 = vld [vmem:[%s11005_s1 + $0x758] sm:$0xff]  ;;  %v774_v63 = vld [vmem:[%s11005_s1 + $0x750] sm:$0xff] }
 0x1d1   :  { %v7749_v24 = vpop.permute.xlu1 %1653  ;;  %v7751_v8 = vpop.permute.xlu0 %1648 }
 0x1d2   :  { %11178 = vst [vmem:[#allocation155_spill] sm:$0xff] %v7749_v24  ;;  %11179 = vst [vmem:[#allocation156_spill] sm:$0xff] %v7751_v8  ;;  %1963 = vperm.xlu1 %6642, %v773_v31   ;;  %1958 = vperm.xlu0 %6641, %v772_v23   ;;  %v777_v8 = vld [vmem:[%s11005_s1 + $0x768] sm:$0xff]  ;;  %v776_v31 = vld [vmem:[%s11005_s1 + $0x760] sm:$0xff] }
 0x1d5   :  { %v7759_v11 = vpop.permute.xlu1 %1663  ;;  %v7761_v12 = vpop.permute.xlu0 %1658 }
 0x1d6   :  { %11180 = vst [vmem:[#allocation157_spill] sm:$0xff] %v7759_v11  ;;  %11181 = vst [vmem:[#allocation158_spill] sm:$0xff] %v7761_v12  ;;  %1973 = vperm.xlu1 %6642, %v775_v4   ;;  %1968 = vperm.xlu0 %6641, %v774_v63   ;;  %v779_v12 = vld [vmem:[%s11005_s1 + $0x778] sm:$0xff]  ;;  %v778_v4 = vld [vmem:[%s11005_s1 + $0x770] sm:$0xff] }
 0x1d9   :  { %v7769_v23 = vpop.permute.xlu1 %1673  ;;  %v7771_v24 = vpop.permute.xlu0 %1668 }
 0x1da   :  { %11182 = vst [vmem:[#allocation159_spill] sm:$0xff] %v7769_v23  ;;  %11183 = vst [vmem:[#allocation160_spill] sm:$0xff] %v7771_v24  ;;  %1983 = vperm.xlu1 %6642, %v777_v8   ;;  %1978 = vperm.xlu0 %6641, %v776_v31   ;;  %v781_v24 = vld [vmem:[%s11005_s1 + $0x788] sm:$0xff]  ;;  %v780_v8 = vld [vmem:[%s11005_s1 + $0x780] sm:$0xff] }
 0x1dd   :  { %v7779_v63 = vpop.permute.xlu1 %1683  ;;  %v7781_v11 = vpop.permute.xlu0 %1678 }
 0x1de   :  { %11184 = vst [vmem:[#allocation161_spill] sm:$0xff] %v7779_v63  ;;  %11185 = vst [vmem:[#allocation162_spill] sm:$0xff] %v7781_v11  ;;  %1993 = vperm.xlu1 %6642, %v779_v12   ;;  %1988 = vperm.xlu0 %6641, %v778_v4   ;;  %v783_v11 = vld [vmem:[%s11005_s1 + $0x798] sm:$0xff]  ;;  %v782_v12 = vld [vmem:[%s11005_s1 + $0x790] sm:$0xff] }
 0x1e1   :  { %v7789_v31 = vpop.permute.xlu1 %1693  ;;  %v7791_v23 = vpop.permute.xlu0 %1688 }
 0x1e2   :  { %11186 = vst [vmem:[#allocation163_spill] sm:$0xff] %v7789_v31  ;;  %11187 = vst [vmem:[#allocation164_spill] sm:$0xff] %v7791_v23  ;;  %2003 = vperm.xlu1 %6642, %v781_v24   ;;  %1998 = vperm.xlu0 %6641, %v780_v8   ;;  %v785_v23 = vld [vmem:[%s11005_s1 + $0x7a8] sm:$0xff]  ;;  %v784_v24 = vld [vmem:[%s11005_s1 + $0x7a0] sm:$0xff] }
 0x1e5   :  { %v7799_v4 = vpop.permute.xlu1 %1703  ;;  %v7801_v63 = vpop.permute.xlu0 %1698 }
 0x1e6   :  { %11188 = vst [vmem:[#allocation165_spill] sm:$0xff] %v7799_v4  ;;  %11189 = vst [vmem:[#allocation166_spill] sm:$0xff] %v7801_v63  ;;  %2013 = vperm.xlu1 %6642, %v783_v11   ;;  %2008 = vperm.xlu0 %6641, %v782_v12   ;;  %v787_v63 = vld [vmem:[%s11005_s1 + $0x7b8] sm:$0xff]  ;;  %v786_v11 = vld [vmem:[%s11005_s1 + $0x7b0] sm:$0xff] }
 0x1e9   :  { %v7809_v8 = vpop.permute.xlu1 %1713  ;;  %v7811_v31 = vpop.permute.xlu0 %1708 }
 0x1ea   :  { %11190 = vst [vmem:[#allocation167_spill] sm:$0xff] %v7809_v8  ;;  %11191 = vst [vmem:[#allocation168_spill] sm:$0xff] %v7811_v31  ;;  %2023 = vperm.xlu1 %6642, %v785_v23   ;;  %2018 = vperm.xlu0 %6641, %v784_v24   ;;  %v789_v31 = vld [vmem:[%s11005_s1 + $0x7c8] sm:$0xff]  ;;  %v788_v23 = vld [vmem:[%s11005_s1 + $0x7c0] sm:$0xff] }
 0x1ed   :  { %v7819_v12 = vpop.permute.xlu1 %1723  ;;  %v7821_v4 = vpop.permute.xlu0 %1718 }
 0x1ee   :  { %11192 = vst [vmem:[#allocation169_spill] sm:$0xff] %v7819_v12  ;;  %11193 = vst [vmem:[#allocation170_spill] sm:$0xff] %v7821_v4  ;;  %2033 = vperm.xlu1 %6642, %v787_v63   ;;  %2028 = vperm.xlu0 %6641, %v786_v11   ;;  %v791_v4 = vld [vmem:[%s11005_s1 + $0x7d8] sm:$0xff]  ;;  %v790_v63 = vld [vmem:[%s11005_s1 + $0x7d0] sm:$0xff] }
 0x1f1   :  { %v7829_v24 = vpop.permute.xlu1 %1733  ;;  %v7831_v8 = vpop.permute.xlu0 %1728 }
 0x1f2   :  { %11194 = vst [vmem:[#allocation171_spill] sm:$0xff] %v7829_v24  ;;  %11195 = vst [vmem:[#allocation172_spill] sm:$0xff] %v7831_v8  ;;  %2043 = vperm.xlu1 %6642, %v789_v31   ;;  %2038 = vperm.xlu0 %6641, %v788_v23   ;;  %v793_v8 = vld [vmem:[%s11005_s1 + $0x7e8] sm:$0xff]  ;;  %v792_v31 = vld [vmem:[%s11005_s1 + $0x7e0] sm:$0xff] }
 0x1f5   :  { %v7839_v11 = vpop.permute.xlu1 %1743  ;;  %v7841_v12 = vpop.permute.xlu0 %1738 }
 0x1f6   :  { %11196 = vst [vmem:[#allocation173_spill] sm:$0xff] %v7839_v11  ;;  %11197 = vst [vmem:[#allocation174_spill] sm:$0xff] %v7841_v12  ;;  %2053 = vperm.xlu1 %6642, %v791_v4   ;;  %2048 = vperm.xlu0 %6641, %v790_v63   ;;  %v795_v12 = vld [vmem:[%s11005_s1 + $0x7f8] sm:$0xff]  ;;  %v794_v4 = vld [vmem:[%s11005_s1 + $0x7f0] sm:$0xff] }
 0x1f9   :  { %v7849_v23 = vpop.permute.xlu1 %1753  ;;  %v7851_v24 = vpop.permute.xlu0 %1748 }
 0x1fa   :  { %11198 = vst [vmem:[#allocation175_spill] sm:$0xff] %v7849_v23  ;;  %11199 = vst [vmem:[#allocation176_spill] sm:$0xff] %v7851_v24  ;;  %2063 = vperm.xlu1 %6642, %v793_v8   ;;  %2058 = vperm.xlu0 %6641, %v792_v31   ;;  %v2333_v23 = vld [vmem:[%s11006_s2 + $0x8] sm:$0xff]  ;;  %v2332_v8 = vld [vmem:[%s11006_s2] sm:$0xff] }
 0x1fd   :  { %v7859_v63 = vpop.permute.xlu1 %1763  ;;  %v7861_v11 = vpop.permute.xlu0 %1758 }
 0x1fe   :  { %11200 = vst [vmem:[#allocation177_spill] sm:$0xff] %v7859_v63  ;;  %11201 = vst [vmem:[#allocation178_spill] sm:$0xff] %v7861_v11  ;;  %2073 = vperm.xlu1 %6642, %v795_v12   ;;  %2068 = vperm.xlu0 %6641, %v794_v4   ;;  %v2335_v11 = vld [vmem:[%s11006_s2 + $0x18] sm:$0xff]  ;;  %v2334_v12 = vld [vmem:[%s11006_s2 + $0x10] sm:$0xff] }
 0x201   :  { %v7869_v31 = vpop.permute.xlu1 %1773  ;;  %v7871_v24 = vpop.permute.xlu0 %1768 }
 0x202   :  { %11202 = vst [vmem:[#allocation179_spill] sm:$0xff] %v7869_v31  ;;  %11203 = vst [vmem:[#allocation180_spill] sm:$0xff] %v7871_v24  ;;  %2595 = vperm.xlu1 %6642, %v2333_v23   ;;  %2590 = vperm.xlu0 %6641, %v2332_v8   ;;  %v2337_v24 = vld [vmem:[%s11006_s2 + $0x28] sm:$0xff]  ;;  %v2336_v23 = vld [vmem:[%s11006_s2 + $0x20] sm:$0xff] }
 0x205   :  { %v7879_v4 = vpop.permute.xlu1 %1783  ;;  %v7881_v63 = vpop.permute.xlu0 %1778 }
 0x206   :  { %11204 = vst [vmem:[#allocation181_spill] sm:$0xff] %v7879_v4  ;;  %11205 = vst [vmem:[#allocation182_spill] sm:$0xff] %v7881_v63  ;;  %2605 = vperm.xlu1 %6642, %v2335_v11   ;;  %2600 = vperm.xlu0 %6641, %v2334_v12   ;;  %v2339_v63 = vld [vmem:[%s11006_s2 + $0x38] sm:$0xff]  ;;  %v2338_v11 = vld [vmem:[%s11006_s2 + $0x30] sm:$0xff] }
 0x209   :  { %v7889_v8 = vpop.permute.xlu1 %1793  ;;  %v7891_v31 = vpop.permute.xlu0 %1788 }
 0x20a   :  { %11206 = vst [vmem:[#allocation183_spill] sm:$0xff] %v7889_v8  ;;  %11207 = vst [vmem:[#allocation184_spill] sm:$0xff] %v7891_v31  ;;  %2615 = vperm.xlu1 %6642, %v2337_v24   ;;  %2610 = vperm.xlu0 %6641, %v2336_v23   ;;  %v2341_v31 = vld [vmem:[%s11006_s2 + $0x48] sm:$0xff]  ;;  %v2340_v24 = vld [vmem:[%s11006_s2 + $0x40] sm:$0xff] }
 0x20d   :  { %v7899_v12 = vpop.permute.xlu1 %1803  ;;  %v7901_v4 = vpop.permute.xlu0 %1798 }
 0x20e   :  { %11208 = vst [vmem:[#allocation185_spill] sm:$0xff] %v7899_v12  ;;  %11209 = vst [vmem:[#allocation186_spill] sm:$0xff] %v7901_v4  ;;  %2625 = vperm.xlu1 %6642, %v2339_v63   ;;  %2620 = vperm.xlu0 %6641, %v2338_v11   ;;  %v2343_v4 = vld [vmem:[%s11006_s2 + $0x58] sm:$0xff]  ;;  %v2342_v63 = vld [vmem:[%s11006_s2 + $0x50] sm:$0xff] }
 0x211   :  { %v7909_v23 = vpop.permute.xlu1 %1813  ;;  %v7911_v8 = vpop.permute.xlu0 %1808 }
 0x212   :  { %11210 = vst [vmem:[#allocation187_spill] sm:$0xff] %v7909_v23  ;;  %11211 = vst [vmem:[#allocation188_spill] sm:$0xff] %v7911_v8  ;;  %2635 = vperm.xlu1 %6642, %v2341_v31   ;;  %2630 = vperm.xlu0 %6641, %v2340_v24   ;;  %v2345_v8 = vld [vmem:[%s11006_s2 + $0x68] sm:$0xff]  ;;  %v2344_v31 = vld [vmem:[%s11006_s2 + $0x60] sm:$0xff] }
 0x215   :  { %v7919_v11 = vpop.permute.xlu1 %1823  ;;  %v7921_v12 = vpop.permute.xlu0 %1818 }
 0x216   :  { %11212 = vst [vmem:[#allocation189_spill] sm:$0xff] %v7919_v11  ;;  %11213 = vst [vmem:[#allocation190_spill] sm:$0xff] %v7921_v12  ;;  %2645 = vperm.xlu1 %6642, %v2343_v4   ;;  %2640 = vperm.xlu0 %6641, %v2342_v63   ;;  %v2347_v12 = vld [vmem:[%s11006_s2 + $0x78] sm:$0xff]  ;;  %v2346_v4 = vld [vmem:[%s11006_s2 + $0x70] sm:$0xff] }
 0x219   :  { %v7929_v24 = vpop.permute.xlu1 %1833  ;;  %v7931_v23 = vpop.permute.xlu0 %1828 }
 0x21a   :  { %11214 = vst [vmem:[#allocation191_spill] sm:$0xff] %v7929_v24  ;;  %11215 = vst [vmem:[#allocation192_spill] sm:$0xff] %v7931_v23  ;;  %2655 = vperm.xlu1 %6642, %v2345_v8   ;;  %2650 = vperm.xlu0 %6641, %v2344_v31   ;;  %v2349_v23 = vld [vmem:[%s11006_s2 + $0x88] sm:$0xff]  ;;  %v2348_v8 = vld [vmem:[%s11006_s2 + $0x80] sm:$0xff] }
 0x21d   :  { %v7939_v63 = vpop.permute.xlu1 %1843  ;;  %v7941_v11 = vpop.permute.xlu0 %1838 }
 0x21e   :  { %11216 = vst [vmem:[#allocation193_spill] sm:$0xff] %v7939_v63  ;;  %11217 = vst [vmem:[#allocation194_spill] sm:$0xff] %v7941_v11  ;;  %2665 = vperm.xlu1 %6642, %v2347_v12   ;;  %2660 = vperm.xlu0 %6641, %v2346_v4   ;;  %v2351_v11 = vld [vmem:[%s11006_s2 + $0x98] sm:$0xff]  ;;  %v2350_v12 = vld [vmem:[%s11006_s2 + $0x90] sm:$0xff] }
 0x221   :  { %v7949_v31 = vpop.permute.xlu1 %1853  ;;  %v7951_v24 = vpop.permute.xlu0 %1848 }
 0x222   :  { %11218 = vst [vmem:[#allocation195_spill] sm:$0xff] %v7949_v31  ;;  %11219 = vst [vmem:[#allocation196_spill] sm:$0xff] %v7951_v24  ;;  %2675 = vperm.xlu1 %6642, %v2349_v23   ;;  %2670 = vperm.xlu0 %6641, %v2348_v8   ;;  %v2353_v24 = vld [vmem:[%s11006_s2 + $0xa8] sm:$0xff]  ;;  %v2352_v23 = vld [vmem:[%s11006_s2 + $0xa0] sm:$0xff] }
 0x225   :  { %v7959_v4 = vpop.permute.xlu1 %1863  ;;  %v7961_v63 = vpop.permute.xlu0 %1858 }
 0x226   :  { %11220 = vst [vmem:[#allocation197_spill] sm:$0xff] %v7959_v4  ;;  %11221 = vst [vmem:[#allocation198_spill] sm:$0xff] %v7961_v63  ;;  %2685 = vperm.xlu1 %6642, %v2351_v11   ;;  %2680 = vperm.xlu0 %6641, %v2350_v12   ;;  %v2355_v63 = vld [vmem:[%s11006_s2 + $0xb8] sm:$0xff]  ;;  %v2354_v11 = vld [vmem:[%s11006_s2 + $0xb0] sm:$0xff] }
 0x229   :  { %v7969_v8 = vpop.permute.xlu1 %1873  ;;  %v7971_v31 = vpop.permute.xlu0 %1868 }
 0x22a   :  { %11222 = vst [vmem:[#allocation199_spill] sm:$0xff] %v7969_v8  ;;  %11223 = vst [vmem:[#allocation200_spill] sm:$0xff] %v7971_v31  ;;  %2695 = vperm.xlu1 %6642, %v2353_v24   ;;  %2690 = vperm.xlu0 %6641, %v2352_v23   ;;  %v2357_v31 = vld [vmem:[%s11006_s2 + $0xc8] sm:$0xff]  ;;  %v2356_v24 = vld [vmem:[%s11006_s2 + $0xc0] sm:$0xff] }
 0x22d   :  { %v7979_v12 = vpop.permute.xlu1 %1883  ;;  %v7981_v4 = vpop.permute.xlu0 %1878 }
 0x22e   :  { %11224 = vst [vmem:[#allocation201_spill] sm:$0xff] %v7979_v12  ;;  %11225 = vst [vmem:[#allocation202_spill] sm:$0xff] %v7981_v4  ;;  %2705 = vperm.xlu1 %6642, %v2355_v63   ;;  %2700 = vperm.xlu0 %6641, %v2354_v11   ;;  %v2359_v4 = vld [vmem:[%s11006_s2 + $0xd8] sm:$0xff]  ;;  %v2358_v63 = vld [vmem:[%s11006_s2 + $0xd0] sm:$0xff] }
 0x231   :  { %v7989_v23 = vpop.permute.xlu1 %1893  ;;  %v7991_v8 = vpop.permute.xlu0 %1888 }
 0x232   :  { %11226 = vst [vmem:[#allocation203_spill] sm:$0xff] %v7989_v23  ;;  %11227 = vst [vmem:[#allocation204_spill] sm:$0xff] %v7991_v8  ;;  %2715 = vperm.xlu1 %6642, %v2357_v31   ;;  %2710 = vperm.xlu0 %6641, %v2356_v24   ;;  %v2361_v8 = vld [vmem:[%s11006_s2 + $0xe8] sm:$0xff]  ;;  %v2360_v31 = vld [vmem:[%s11006_s2 + $0xe0] sm:$0xff] }
 0x235   :  { %v7999_v11 = vpop.permute.xlu1 %1903  ;;  %v8001_v12 = vpop.permute.xlu0 %1898 }
 0x236   :  { %11228 = vst [vmem:[#allocation205_spill] sm:$0xff] %v7999_v11  ;;  %11229 = vst [vmem:[#allocation206_spill] sm:$0xff] %v8001_v12  ;;  %2725 = vperm.xlu1 %6642, %v2359_v4   ;;  %2720 = vperm.xlu0 %6641, %v2358_v63   ;;  %v2363_v12 = vld [vmem:[%s11006_s2 + $0xf8] sm:$0xff]  ;;  %v2362_v4 = vld [vmem:[%s11006_s2 + $0xf0] sm:$0xff] }
 0x239   :  { %v8009_v24 = vpop.permute.xlu1 %1913  ;;  %v8011_v23 = vpop.permute.xlu0 %1908 }
 0x23a   :  { %11230 = vst [vmem:[#allocation207_spill] sm:$0xff] %v8009_v24  ;;  %11231 = vst [vmem:[#allocation208_spill] sm:$0xff] %v8011_v23  ;;  %2735 = vperm.xlu1 %6642, %v2361_v8   ;;  %2730 = vperm.xlu0 %6641, %v2360_v31   ;;  %v2365_v23 = vld [vmem:[%s11006_s2 + $0x108] sm:$0xff]  ;;  %v2364_v8 = vld [vmem:[%s11006_s2 + $0x100] sm:$0xff] }
 0x23d   :  { %v8019_v63 = vpop.permute.xlu1 %1923  ;;  %v8021_v11 = vpop.permute.xlu0 %1918 }
 0x23e   :  { %11232 = vst [vmem:[#allocation209_spill] sm:$0xff] %v8019_v63  ;;  %11233 = vst [vmem:[#allocation210_spill] sm:$0xff] %v8021_v11  ;;  %2745 = vperm.xlu1 %6642, %v2363_v12   ;;  %2740 = vperm.xlu0 %6641, %v2362_v4   ;;  %v2367_v11 = vld [vmem:[%s11006_s2 + $0x118] sm:$0xff]  ;;  %v2366_v12 = vld [vmem:[%s11006_s2 + $0x110] sm:$0xff] }
 0x241   :  { %v8029_v31 = vpop.permute.xlu1 %1933  ;;  %v8031_v24 = vpop.permute.xlu0 %1928 }
 0x242   :  { %11234 = vst [vmem:[#allocation211_spill] sm:$0xff] %v8029_v31  ;;  %11235 = vst [vmem:[#allocation212_spill] sm:$0xff] %v8031_v24  ;;  %2755 = vperm.xlu1 %6642, %v2365_v23   ;;  %2750 = vperm.xlu0 %6641, %v2364_v8   ;;  %v2369_v24 = vld [vmem:[%s11006_s2 + $0x128] sm:$0xff]  ;;  %v2368_v23 = vld [vmem:[%s11006_s2 + $0x120] sm:$0xff] }
 0x245   :  { %v8039_v4 = vpop.permute.xlu1 %1943  ;;  %v8041_v63 = vpop.permute.xlu0 %1938 }
 0x246   :  { %11236 = vst [vmem:[#allocation213_spill] sm:$0xff] %v8039_v4  ;;  %11237 = vst [vmem:[#allocation214_spill] sm:$0xff] %v8041_v63  ;;  %2765 = vperm.xlu1 %6642, %v2367_v11   ;;  %2760 = vperm.xlu0 %6641, %v2366_v12   ;;  %v2371_v63 = vld [vmem:[%s11006_s2 + $0x138] sm:$0xff]  ;;  %v2370_v11 = vld [vmem:[%s11006_s2 + $0x130] sm:$0xff] }
 0x249   :  { %v8049_v8 = vpop.permute.xlu1 %1953  ;;  %v8051_v31 = vpop.permute.xlu0 %1948 }
 0x24a   :  { %11238 = vst [vmem:[#allocation215_spill] sm:$0xff] %v8049_v8  ;;  %11239 = vst [vmem:[#allocation216_spill] sm:$0xff] %v8051_v31  ;;  %2775 = vperm.xlu1 %6642, %v2369_v24   ;;  %2770 = vperm.xlu0 %6641, %v2368_v23   ;;  %v2373_v31 = vld [vmem:[%s11006_s2 + $0x148] sm:$0xff]  ;;  %v2372_v24 = vld [vmem:[%s11006_s2 + $0x140] sm:$0xff] }
 0x24d   :  { %v8059_v12 = vpop.permute.xlu1 %1963  ;;  %v8061_v4 = vpop.permute.xlu0 %1958 }
 0x24e   :  { %11240 = vst [vmem:[#allocation217_spill] sm:$0xff] %v8059_v12  ;;  %11241 = vst [vmem:[#allocation218_spill] sm:$0xff] %v8061_v4  ;;  %2785 = vperm.xlu1 %6642, %v2371_v63   ;;  %2780 = vperm.xlu0 %6641, %v2370_v11   ;;  %v2375_v4 = vld [vmem:[%s11006_s2 + $0x158] sm:$0xff]  ;;  %v2374_v63 = vld [vmem:[%s11006_s2 + $0x150] sm:$0xff] }
 0x251   :  { %v8069_v23 = vpop.permute.xlu1 %1973  ;;  %v8071_v8 = vpop.permute.xlu0 %1968 }
 0x252   :  { %11242 = vst [vmem:[#allocation219_spill] sm:$0xff] %v8069_v23  ;;  %11243 = vst [vmem:[#allocation220_spill] sm:$0xff] %v8071_v8  ;;  %2795 = vperm.xlu1 %6642, %v2373_v31   ;;  %2790 = vperm.xlu0 %6641, %v2372_v24   ;;  %v2377_v8 = vld [vmem:[%s11006_s2 + $0x168] sm:$0xff]  ;;  %v2376_v31 = vld [vmem:[%s11006_s2 + $0x160] sm:$0xff] }
 0x255   :  { %v8079_v11 = vpop.permute.xlu1 %1983  ;;  %v8081_v12 = vpop.permute.xlu0 %1978 }
 0x256   :  { %11244 = vst [vmem:[#allocation221_spill] sm:$0xff] %v8079_v11  ;;  %11245 = vst [vmem:[#allocation222_spill] sm:$0xff] %v8081_v12  ;;  %2805 = vperm.xlu1 %6642, %v2375_v4   ;;  %2800 = vperm.xlu0 %6641, %v2374_v63   ;;  %v2379_v12 = vld [vmem:[%s11006_s2 + $0x178] sm:$0xff]  ;;  %v2378_v4 = vld [vmem:[%s11006_s2 + $0x170] sm:$0xff] }
 0x259   :  { %v8089_v24 = vpop.permute.xlu1 %1993  ;;  %v8091_v23 = vpop.permute.xlu0 %1988 }
 0x25a   :  { %11246 = vst [vmem:[#allocation223_spill] sm:$0xff] %v8089_v24  ;;  %11247 = vst [vmem:[#allocation224_spill] sm:$0xff] %v8091_v23  ;;  %2815 = vperm.xlu1 %6642, %v2377_v8   ;;  %2810 = vperm.xlu0 %6641, %v2376_v31   ;;  %v2381_v23 = vld [vmem:[%s11006_s2 + $0x188] sm:$0xff]  ;;  %v2380_v8 = vld [vmem:[%s11006_s2 + $0x180] sm:$0xff] }
 0x25d   :  { %v8099_v63 = vpop.permute.xlu1 %2003  ;;  %v8101_v11 = vpop.permute.xlu0 %1998 }
 0x25e   :  { %11248 = vst [vmem:[#allocation225_spill] sm:$0xff] %v8099_v63  ;;  %11249 = vst [vmem:[#allocation226_spill] sm:$0xff] %v8101_v11  ;;  %2825 = vperm.xlu1 %6642, %v2379_v12   ;;  %2820 = vperm.xlu0 %6641, %v2378_v4   ;;  %v2383_v11 = vld [vmem:[%s11006_s2 + $0x198] sm:$0xff]  ;;  %v2382_v12 = vld [vmem:[%s11006_s2 + $0x190] sm:$0xff] }
 0x261   :  { %v8109_v31 = vpop.permute.xlu1 %2013  ;;  %v8111_v24 = vpop.permute.xlu0 %2008 }
 0x262   :  { %11250 = vst [vmem:[#allocation227_spill] sm:$0xff] %v8109_v31  ;;  %11251 = vst [vmem:[#allocation228_spill] sm:$0xff] %v8111_v24  ;;  %2835 = vperm.xlu1 %6642, %v2381_v23   ;;  %2830 = vperm.xlu0 %6641, %v2380_v8   ;;  %v2385_v24 = vld [vmem:[%s11006_s2 + $0x1a8] sm:$0xff]  ;;  %v2384_v23 = vld [vmem:[%s11006_s2 + $0x1a0] sm:$0xff] }
 0x265   :  { %v8119_v4 = vpop.permute.xlu1 %2023  ;;  %v8121_v63 = vpop.permute.xlu0 %2018 }
 0x266   :  { %11252 = vst [vmem:[#allocation229_spill] sm:$0xff] %v8119_v4  ;;  %11253 = vst [vmem:[#allocation230_spill] sm:$0xff] %v8121_v63  ;;  %2845 = vperm.xlu1 %6642, %v2383_v11   ;;  %2840 = vperm.xlu0 %6641, %v2382_v12   ;;  %v2387_v63 = vld [vmem:[%s11006_s2 + $0x1b8] sm:$0xff]  ;;  %v2386_v11 = vld [vmem:[%s11006_s2 + $0x1b0] sm:$0xff] }
 0x269   :  { %v8129_v8 = vpop.permute.xlu1 %2033  ;;  %v8131_v31 = vpop.permute.xlu0 %2028 }
 0x26a   :  { %11254 = vst [vmem:[#allocation231_spill] sm:$0xff] %v8129_v8  ;;  %11255 = vst [vmem:[#allocation232_spill] sm:$0xff] %v8131_v31  ;;  %2855 = vperm.xlu1 %6642, %v2385_v24   ;;  %2850 = vperm.xlu0 %6641, %v2384_v23   ;;  %v2389_v31 = vld [vmem:[%s11006_s2 + $0x1c8] sm:$0xff]  ;;  %v2388_v24 = vld [vmem:[%s11006_s2 + $0x1c0] sm:$0xff] }
 0x26d   :  { %v8139_v12 = vpop.permute.xlu1 %2043  ;;  %v8141_v4 = vpop.permute.xlu0 %2038 }
 0x26e   :  { %11256 = vst [vmem:[#allocation233_spill] sm:$0xff] %v8139_v12  ;;  %11257 = vst [vmem:[#allocation234_spill] sm:$0xff] %v8141_v4  ;;  %2865 = vperm.xlu1 %6642, %v2387_v63   ;;  %2860 = vperm.xlu0 %6641, %v2386_v11   ;;  %v2391_v4 = vld [vmem:[%s11006_s2 + $0x1d8] sm:$0xff]  ;;  %v2390_v63 = vld [vmem:[%s11006_s2 + $0x1d0] sm:$0xff] }
 0x271   :  { %v8149_v23 = vpop.permute.xlu1 %2053  ;;  %v8151_v8 = vpop.permute.xlu0 %2048 }
 0x272   :  { %11258 = vst [vmem:[#allocation235_spill] sm:$0xff] %v8149_v23  ;;  %11259 = vst [vmem:[#allocation236_spill] sm:$0xff] %v8151_v8  ;;  %2875 = vperm.xlu1 %6642, %v2389_v31   ;;  %2870 = vperm.xlu0 %6641, %v2388_v24   ;;  %v2393_v8 = vld [vmem:[%s11006_s2 + $0x1e8] sm:$0xff]  ;;  %v2392_v31 = vld [vmem:[%s11006_s2 + $0x1e0] sm:$0xff] }
 0x275   :  { %v8159_v11 = vpop.permute.xlu1 %2063  ;;  %v8161_v12 = vpop.permute.xlu0 %2058 }
 0x276   :  { %11260 = vst [vmem:[#allocation237_spill] sm:$0xff] %v8159_v11  ;;  %11261 = vst [vmem:[#allocation238_spill] sm:$0xff] %v8161_v12  ;;  %2885 = vperm.xlu1 %6642, %v2391_v4   ;;  %2880 = vperm.xlu0 %6641, %v2390_v63   ;;  %v2395_v12 = vld [vmem:[%s11006_s2 + $0x1f8] sm:$0xff]  ;;  %v2394_v4 = vld [vmem:[%s11006_s2 + $0x1f0] sm:$0xff] }
 0x279   :  { %v8169_v24 = vpop.permute.xlu1 %2073  ;;  %v8171_v23 = vpop.permute.xlu0 %2068 }
 0x27a   :  { %11262 = vst [vmem:[#allocation239_spill] sm:$0xff] %v8169_v24  ;;  %11263 = vst [vmem:[#allocation240_spill] sm:$0xff] %v8171_v23  ;;  %2895 = vperm.xlu1 %6642, %v2393_v8   ;;  %2890 = vperm.xlu0 %6641, %v2392_v31   ;;  %v2397_v23 = vld [vmem:[%s11006_s2 + $0x208] sm:$0xff]  ;;  %v2396_v8 = vld [vmem:[%s11006_s2 + $0x200] sm:$0xff] }
 0x27d   :  { %v8179_v63 = vpop.permute.xlu1 %2595  ;;  %v8181_v11 = vpop.permute.xlu0 %2590 }
 0x27e   :  { %11264 = vst [vmem:[#allocation241_spill] sm:$0xff] %v8179_v63  ;;  %11265 = vst [vmem:[#allocation242_spill] sm:$0xff] %v8181_v11  ;;  %2905 = vperm.xlu1 %6642, %v2395_v12   ;;  %2900 = vperm.xlu0 %6641, %v2394_v4   ;;  %v2398_v12 = vld [vmem:[%s11006_s2 + $0x210] sm:$0xff]  ;;  %v6198_v11 = vld [vmem:[%s11004_s0 + $0x38] sm:$0xff]  }
 0x27f   :  { %v8329_v63 = vld [vmem:[%s11004_s0 + $0x20] sm:$0xff]   ;;  %v5711_v6 = vunpack.c.h.bf16 %v6198_v11  ;;  %v5710_v33 = vunpack.c.l.bf16 %v6198_v11  ;;  %v8366_v11 = vld [vmem:[%s11004_s0 + $0x50] sm:$0xff]  }
 0x281   :  { %v8189_v31 = vpop.permute.xlu1 %2605  ;;  %v8191_v24 = vpop.permute.xlu0 %2600  ;;  %v2090_v10 = vmul.f32 %v5710_v33, %v6971_v30  ;;  %v2424_v30 = vld [vmem:[%s11006_s2 + $0x2e0] sm:$0xff] }
 0x282   :  { %11266 = vst [vmem:[#allocation243_spill] sm:$0xff] %v8189_v31  ;;  %11267 = vst [vmem:[#allocation244_spill] sm:$0xff] %v8191_v24  ;;  %2915 = vperm.xlu1 %6642, %v2397_v23   ;;  %2910 = vperm.xlu0 %6641, %v2396_v8   ;;  %v2400_v23 = vld [vmem:[%s11006_s2 + $0x220] sm:$0xff]  ;;  %v5743_v31 = vunpack.c.h.bf16 %v6206_v2 }
 0x285   :  { %v8199_v4 = vpop.permute.xlu1 %2615  ;;  %v8201_v19 = vpop.permute.xlu0 %2610 }
 0x286   :  { %11268 = vst [vmem:[#allocation245_spill] sm:$0xff] %v8199_v4  ;;  %11269 = vst [vmem:[#allocation246_spill] sm:$0xff] %v8201_v19  ;;  %2925 = vperm.xlu1 %6642, %v2399_v20   ;;  %2920 = vperm.xlu0 %6641, %v2398_v12   ;;  %v2402_v20 = vld [vmem:[%s11006_s2 + $0x230] sm:$0xff]  ;;  %v2423_v4 = vld [vmem:[%s11006_s2 + $0x2d8] sm:$0xff] }
 0x289   :  { %v8209_v8 = vpop.permute.xlu1 %2625  ;;  %v8211_v39 = vpop.permute.xlu0 %2620 }
 0x28a   :  { %11270 = vst [vmem:[#allocation247_spill] sm:$0xff] %v8209_v8  ;;  %11271 = vst [vmem:[#allocation248_spill] sm:$0xff] %v8211_v39  ;;  %2935 = vperm.xlu1 %6642, %v2401_v40   ;;  %2930 = vperm.xlu0 %6641, %v2400_v23   ;;  %v2404_v40 = vld [vmem:[%s11006_s2 + $0x240] sm:$0xff] }
 0x28d   :  { %v8219_v12 = vpop.permute.xlu1 %2635  ;;  %v8221_v27 = vpop.permute.xlu0 %2630 }
 0x28e   :  { %2945 = vperm.xlu1 %6642, %v2403_v28   ;;  %2940 = vperm.xlu0 %6641, %v2402_v20   ;;  %v2406_v28 = vld [vmem:[%s11006_s2 + $0x250] sm:$0xff] }
 0x291   :  { %v8229_v23 = vpop.permute.xlu1 %2645  ;;  %v8231_v55 = vpop.permute.xlu0 %2640 }
 0x292   :  { %2955 = vperm.xlu1 %6642, %v2405_v56   ;;  %2950 = vperm.xlu0 %6641, %v2404_v40   ;;  %v2408_v56 = vld [vmem:[%s11006_s2 + $0x260] sm:$0xff] }
 0x295   :  { %v8239_v20 = vpop.permute.xlu1 %2655  ;;  %v8241_v35 = vpop.permute.xlu0 %2650 }
 0x296   :  { %2965 = vperm.xlu1 %6642, %v2407_v36   ;;  %2960 = vperm.xlu0 %6641, %v2406_v28   ;;  %v2410_v36 = vld [vmem:[%s11006_s2 + $0x270] sm:$0xff] }
 0x299   :  { %v8249_v40 = vpop.permute.xlu1 %2665  ;;  %v8251_v15 = vpop.permute.xlu0 %2660 }
 0x29a   :  { %2975 = vperm.xlu1 %6642, %v2409_v16   ;;  %2970 = vperm.xlu0 %6641, %v2408_v56   ;;  %v2412_v16 = vld [vmem:[%s11006_s2 + $0x280] sm:$0xff] }
 0x29d   :  { %v8259_v28 = vpop.permute.xlu1 %2675  ;;  %v8261_v48 = vpop.permute.xlu0 %2670 }
 0x29e   :  { %11272 = vst [vmem:[#allocation249_spill] sm:$0xff] %v8259_v28  ;;  %11273 = vst [vmem:[#allocation250_spill] sm:$0xff] %v8261_v48  ;;  %2985 = vperm.xlu1 %6642, %v2411_v44   ;;  %2980 = vperm.xlu0 %6641, %v2410_v36   ;;  %v2414_v44 = vld [vmem:[%s11006_s2 + $0x290] sm:$0xff]  ;;  %v2421_v48 = vld [vmem:[%s11006_s2 + $0x2c8] sm:$0xff] }
 0x29f   :  { %v2420_v28 = vld [vmem:[%s11006_s2 + $0x2c0] sm:$0xff] }
 0x2a1   :  { %v8269_v56 = vpop.permute.xlu1 %2685  ;;  %v8271_v52 = vpop.permute.xlu0 %2680 }
 0x2a2   :  { %11274 = vst [vmem:[#allocation251_spill] sm:$0xff] %v8269_v56  ;;  %11275 = vst [vmem:[#allocation252_spill] sm:$0xff] %v8271_v52  ;;  %2995 = vperm.xlu1 %6642, %v2413_v47   ;;  %2990 = vperm.xlu0 %6641, %v2412_v16   ;;  %v2416_v47 = vld [vmem:[%s11006_s2 + $0x2a0] sm:$0xff] }
 0x2a5   :  { %v8279_v36 = vpop.permute.xlu1 %2695  ;;  %v8281_v32 = vpop.permute.xlu0 %2690 }
 0x2a6   :  { %11276 = vst [vmem:[#allocation253_spill] sm:$0xff] %v8279_v36  ;;  %11277 = vst [vmem:[#allocation254_spill] sm:$0xff] %v8281_v32  ;;  %3005 = vperm.xlu1 %6642, %v2415_v7   ;;  %3000 = vperm.xlu0 %6641, %v2414_v44   ;;  %v2418_v7 = vld [vmem:[%s11006_s2 + $0x2b0] sm:$0xff]  ;;  %v8302_v44 = vld [vmem:[%s11004_s0 + $0x8] sm:$0xff]   ;;  %v5706_v32 = vunpack.c.l.bf16 %v6197_v34  ;;  %v2091_v36 = vmul.f32 %v5711_v6, %v6969_v29  ;;  %v3882_v6 = vadd.f32 %v8251_v15, %v2090_v10 }
 0x2a7   :  { %11278 = vst [vmem:[#allocation255_spill] sm:$0xff] %v8302_v44  ;;  %v8371_v44 = vld [vmem:[%s11004_s0 + $0x58] sm:$0xff]   ;;  %v2425_v29 = vld [vmem:[%s11006_s2 + $0x2e8] sm:$0xff]  ;;  %v2103_v10 = vmul.f32 %v5735_v60, %v7029_v53  ;;  %v2101_v53 = vmul.f32 %v5731_v42, %v7019_v49  ;;  %v8431_v49 = vld [vmem:[%s11007_s3] sm:$0xff] }
 0x2a9   :  { %v8289_v16 = vpop.permute.xlu1 %2705  ;;  %v8291_v43 = vpop.permute.xlu0 %2700 }
 0x2aa   :  { %3015 = vperm.xlu1 %6642, %v2417_v51   ;;  %3010 = vperm.xlu0 %6641, %v2416_v47  }
 0x2ad   :  { %v8309_v51 = vpop.permute.xlu1 %2715  ;;  %v8311_v47 = vpop.permute.xlu0 %2710 }
 0x2ae   :  { %3025 = vperm.xlu1 %6642, %v2419_v3   ;;  %3020 = vperm.xlu0 %6641, %v2418_v7   ;;  %v8342_v3 = vld [vmem:[%s11004_s0 + $0x28] sm:$0xff]   ;;  %v6205_v7 = vld [vmem:[%s11004_s0 + $0x70] sm:$0xff]  }
 0x2af   :  { %v5703_v24 = vunpack.c.h.bf16 %v8342_v3  ;;  %v5739_v1 = vunpack.c.h.bf16 %v6205_v7  ;;  %v5738_v19 = vunpack.c.l.bf16 %v6205_v7 }
 0x2b1   :  { %v8355_v52 = vpop.permute.xlu1 %2725  ;;  %v8357_v56 = vpop.permute.xlu0 %2720  ;;  %v2104_v2 = vmul.f32 %v5738_v19, %v7041_v58  ;;  %v2087_v5 = vmul.f32 %v5703_v24, %v6949_v21 }
 0x2b2   :  { %3035 = vperm.xlu1 %6642, %v2421_v48   ;;  %3030 = vperm.xlu0 %6641, %v2420_v28   ;;  %v5702_v48 = vunpack.c.l.bf16 %v8342_v3  ;;  %v5707_v28 = vunpack.c.h.bf16 %v6197_v34  ;;  %v2105_v3 = vmul.f32 %v5739_v1, %v7039_v57  ;;  %v3883_v34 = vadd.f32 %v8249_v40, %v2091_v36 }
 0x2b3   :  { %v2107_v1 = vmul.f32 %v5743_v31, %v7049_v61  ;;  %v2088_v57 = vmul.f32 %v5706_v32, %v6961_v26  ;;  %v5730_v40 = vunpack.c.l.bf16 %v6203_v0  ;;  %v2102_v36 = vmul.f32 %v5734_v41, %v7031_v54  ;;  %v2427_v26 = vld [vmem:[%s11006_s2 + $0x2f8] sm:$0xff] }
 0x2b4   :  { %v2089_v33 = vmul.f32 %v5707_v28, %v6959_v25  ;;  %v4138_v61 = vmax.f32 %v3882_v6, 0.0  ;;  %v2086_v41 = vmul.f32 %v5702_v48, %v6951_v22  ;;  %v3895_v60 = vadd.f32 %v8355_v52, %v2103_v10  ;;  %v2429_v48 = vld [vmem:[%s11006_s2 + $0x308] sm:$0xff] }
 0x2b5   :  { %v2736_v7 = vpop.permute.xlu1 %2735  ;;  %v2731_v9 = vpop.permute.xlu0 %2730  ;;  %v3880_v25 = vadd.f32 %v8241_v35, %v2088_v57  ;;  %v3894_v35 = vadd.f32 %v8357_v56, %v2102_v36  ;;  %v2100_v28 = vmul.f32 %v5730_v40, %v7021_v50  ;;  %v3879_v22 = vadd.f32 %v8229_v23, %v2087_v5  ;;  %v2428_v50 = vld [vmem:[%s11006_s2 + $0x300] sm:$0xff] }
 0x2b6   :  { %3045 = vperm.xlu1 %6642, %v2423_v4   ;;  %3040 = vperm.xlu0 %6641, %v2422_v38   ;;  %v2106_v38 = vmul.f32 %v5742_v37, %v7051_v62  ;;  %v3897_v58 = vadd.f32 %v2736_v7, %v2105_v3  ;;  %v3896_v19 = vadd.f32 %v2731_v9, %v2104_v2  ;;  %v4139_v37 = vmax.f32 %v3883_v34, 0.0  ;;  %v2426_v9 = vld [vmem:[%s11006_s2 + $0x2f0] sm:$0xff]  ;;  %v8443_v23 = vld [vmem:[%s11007_s3 + $0x40] sm:$0xff] }
 0x2b7   :  { %v3881_v21 = vadd.f32 %v8239_v20, %v2089_v33  ;;  %v5726_v20 = vunpack.c.l.bf16 %v8371_v44  ;;  %v3878_v52 = vadd.f32 %v8231_v55, %v2086_v41  ;;  %v11283_v7 = vunpack.c.h.bf16 %v8329_v63 }
 0x2b8   :  { %v4153_v0 = vmax.f32 %v3897_v58, 0.0  ;;  %v4152_v32 = vmax.f32 %v3896_v19, 0.0  ;;  %v4451_v56 = vpack.c.bf16 %v4139_v37, %v4138_v61  ;;  %v11284_v3 = vunpack.c.l.bf16 %v8329_v63 }
 0x2b9   :  { %v2746_v15 = vpop.permute.xlu1 %2745  ;;  %v2741_v4 = vpop.permute.xlu0 %2740  ;;  %v2085_v55 = vmul.f32 %v11283_v7, %v6939_v17  ;;  %v3893_v34 = vadd.f32 %v8309_v51, %v2101_v53  ;;  %v5617_v6 = vcombine.high %v8431_v49, %v8443_v23  ;;  %v4151_v5 = vmax.f32 %v3895_v60, 0.0  ;;  %v11300_v7 = vld [vmem:[#allocation253_spill] sm:$0xff] }
 0x2ba   :  { %v3899_v39 = vadd.f32 %v2746_v15, %v2107_v1  ;;  %v3898_v8 = vadd.f32 %v2741_v4, %v2106_v38  ;;  %3055 = vperm.xlu1 %6642, %v2425_v29   ;;  %3050 = vperm.xlu0 %6641, %v2424_v30   ;;  %v2084_v2 = vmul.f32 %v11284_v3, %v6941_v18  ;;  %v6200_v29 = vld [vmem:[%s11004_s0 + $0x48] sm:$0xff]   ;;  %v4150_v33 = vmax.f32 %v3894_v35, 0.0  ;;  %v2431_v4 = vld [vmem:[%s11006_s2 + $0x318] sm:$0xff] }
 0x2bb   :  { %v3892_v30 = vadd.f32 %v8311_v47, %v2100_v28  ;;  %v4458_v18 = vpack.c.bf16 %v4153_v0, %v4152_v32  ;;  %v5722_v63 = vunpack.c.l.bf16 %v8366_v11  ;;  %v11287_v51 = vunpack.c.h.bf16 %v8371_v44  ;;  %4924 = vmatprep.mubr.bf16.mxu0 %v5617_v6  ;;  %v2433_v28 = vld [vmem:[%s11006_s2 + $0x328] sm:$0xff] }
 0x2bc   :  { %v4154_v54 = vmax.f32 %v3898_v8, 0.0  ;;  %v4155_v62 = vmax.f32 %v3899_v39, 0.0  ;;  %v4137_v39 = vmax.f32 %v3881_v21, 0.0  ;;  %v4136_v8 = vmax.f32 %v3880_v25, 0.0  ;;  %v6199_v21 = vld [vmem:[%s11004_s0 + $0x40] sm:$0xff]   ;;  %v11301_v3 = vld [vmem:[#allocation254_spill] sm:$0xff] }
 0x2bd   :  { %v8421_v24 = vpop.permute.xlu1 %2755  ;;  %v8423_v31 = vpop.permute.xlu0 %2750  ;;  %v2099_v38 = vmul.f32 %v11287_v51, %v7009_v45  ;;  %v2098_v57 = vmul.f32 %v5726_v20, %v7011_v46  ;;  %v3877_v10 = vadd.f32 %v8219_v12, %v2085_v55  ;;  %v3876_v47 = vadd.f32 %v8221_v27, %v2084_v2  ;;  %v2430_v45 = vld [vmem:[%s11006_s2 + $0x310] sm:$0xff] }
 0x2be   :  { %11281 = vst [vmem:[#allocation258_spill] sm:$0xff] %v8421_v24  ;;  %11282 = vst [vmem:[#allocation259_spill] sm:$0xff] %v8423_v31  ;;  %3065 = vperm.xlu1 %6642, %v2427_v26   ;;  %3060 = vperm.xlu0 %6641, %v2426_v9   ;;  %v4459_v42 = vpack.c.bf16 %v4155_v62, %v4154_v54  ;;  %v4135_v58 = vmax.f32 %v3879_v22, 0.0  ;;  %v4134_v19 = vmax.f32 %v3878_v52, 0.0  ;;  %v11288_v46 = vunpack.c.h.bf16 %v8321_v59  ;;  %v11293_v62 = vld [vmem:[#allocation247_spill] sm:$0xff]  ;;  %v11295_v22 = vld [vmem:[#allocation9_spill] sm:$0xff] }
 0x2bf   :  { %v4450_v15 = vpack.c.bf16 %v4137_v39, %v4136_v8  ;;  %v11289_v27 = vunpack.c.l.bf16 %v8321_v59  ;;  %v5719_v40 = vunpack.c.h.bf16 %v6200_v29  ;;  %v3891_v36 = vadd.f32 %v8289_v16, %v2099_v38  ;;  %v11290_v59 = vld [vmem:[#allocation15_spill] sm:$0xff]  ;;  %v11292_v16 = vld [vmem:[#allocation16_spill] sm:$0xff]  ;;  %v11298_v8 = vld [vmem:[#allocation10_spill] sm:$0xff] }
 0x2c0   :  { %6319 = vmatprep.subr.bf16.mxu0 %v4459_v42  ;;  %v2083_v12 = vmul.f32 %v11288_v46, %v6929_v13  ;;  %v3890_v25 = vadd.f32 %v8291_v43, %v2098_v57  ;;  %v4149_v37 = vmax.f32 %v3893_v34, 0.0  ;;  %v4148_v61 = vmax.f32 %v3892_v30, 0.0  ;;  %v11294_v43 = vld [vmem:[#allocation248_spill] sm:$0xff]  ;;  %v11296_v42 = vld [vmem:[#allocation257_spill] sm:$0xff]  ;;  %v11303_v51 = vld [vmem:[#allocation14_spill] sm:$0xff] }
 0x2c1   :  { %v8458_v1 = vpop.permute.xlu1 %2765  ;;  %v8460_v17 = vpop.permute.xlu0 %2760  ;;  %6320 = vmatpush3.bf16.msra.mxu0 %v4451_v56  ;;  %v2082_v44 = vmul.f32 %v11289_v27, %v6931_v14  ;;  %v4457_v13 = vpack.c.bf16 %v4151_v5, %v4150_v33  ;;  %v5718_v41 = vunpack.c.l.bf16 %v6200_v29  ;;  %v11291_v14 = vunpack.c.h.bf16 %v8366_v11  ;;  %v2432_v11 = vld [vmem:[%s11006_s2 + $0x320] sm:$0xff]  ;;  %v2434_v46 = vld [vmem:[%s11006_s2 + $0x330] sm:$0xff] }
 0x2c2   :  { %11285 = vst [vmem:[#allocation260_spill] sm:$0xff] %v8458_v1  ;;  %11286 = vst [vmem:[#allocation261_spill] sm:$0xff] %v8460_v17  ;;  %3075 = vperm.xlu1 %6642, %v2429_v48   ;;  %3070 = vperm.xlu0 %6641, %v2428_v50   ;;  %v2096_v54 = vmul.f32 %v5722_v63, %v11292_v16  ;;  %v3875_v60 = vadd.f32 %v11293_v62, %v2083_v12  ;;  %v4133_v0 = vmax.f32 %v3877_v10, 0.0  ;;  %v11304_v57 = vld [vmem:[#allocation245_spill] sm:$0xff]  ;;  %v11307_v27 = vld [vmem:[#allocation255_spill] sm:$0xff] }
 0x2c3   :  { %6321 = vmatprep.subr.bf16.mxu0 %v4458_v18  ;;  %v2097_v53 = vmul.f32 %v11291_v14, %v11290_v59  ;;  %v3874_v35 = vadd.f32 %v11294_v43, %v2082_v44  ;;  %v4132_v32 = vmax.f32 %v3876_v47, 0.0  ;;  %v4449_v20 = vpack.c.bf16 %v4135_v58, %v4134_v19  ;;  %v11302_v18 = vld [vmem:[#allocation13_spill] sm:$0xff]  ;;  %v11305_v47 = vld [vmem:[#allocation246_spill] sm:$0xff]  ;;  %v11313_v59 = vld [vmem:[#allocation252_spill] sm:$0xff] }
 0x2c4   :  { %v11297_v52 = vunpack.c.h.bf16 %v11296_v42  ;;  %v11299_v56 = vunpack.c.l.bf16 %v11296_v42  ;;  %v5715_v50 = vunpack.c.h.bf16 %v6199_v21  ;;  %v3888_v2 = vadd.f32 %v11301_v3, %v2096_v54  ;;  %v11306_v12 = vld [vmem:[#allocation5_spill] sm:$0xff]  ;;  %v11314_v43 = vld [vmem:[#allocation11_spill] sm:$0xff]  ;;  %v11332_v31 = vld [vmem:[#allocation46_spill] sm:$0xff] }
 0x2c5   :  { %v8486_v26 = vpop.permute.xlu1 %2775  ;;  %v8488_v9 = vpop.permute.xlu0 %2770  ;;  %6322 = vmatpush3.bf16.msra.mxu0 %v4450_v15  ;;  %v3889_v55 = vadd.f32 %v11300_v7, %v2097_v53  ;;  %v4147_v34 = vmax.f32 %v3891_v36, 0.0  ;;  %v4146_v6 = vmax.f32 %v3890_v25, 0.0  ;;  %v4456_v5 = vpack.c.bf16 %v4149_v37, %v4148_v61  ;;  %v11309_v36 = vld [vmem:[#allocation7_spill] sm:$0xff]  ;;  %v11311_v37 = vld [vmem:[#allocation256_spill] sm:$0xff] }
 0x2c6   :  { %3085 = vperm.xlu1 %6642, %v2431_v4   ;;  %3080 = vperm.xlu0 %6641, %v2430_v45   ;;  %v2081_v39 = vmul.f32 %v11297_v52, %v11295_v22  ;;  %v2080_v48 = vmul.f32 %v11299_v56, %v11298_v8  ;;  %v5714_v33 = vunpack.c.l.bf16 %v6199_v21  ;;  %v2095_v63 = vmul.f32 %v5719_v40, %v11302_v18  ;;  %v2435_v45 = vld [vmem:[%s11006_s2 + $0x338] sm:$0xff]  ;;  %v2437_v8 = vld [vmem:[%s11006_s2 + $0x348] sm:$0xff]  ;;  %v2436_v56 = vld [vmem:[%s11006_s2 + $0x340] sm:$0xff] }
 0x2c7   :  { %6323 = vmatprep.subr.bf16.mxu0 %v4457_v13  ;;  %v2094_v38 = vmul.f32 %v5718_v41, %v11303_v51  ;;  %v4131_v19 = vmax.f32 %v3875_v60, 0.0  ;;  %v4130_v15 = vmax.f32 %v3874_v35, 0.0  ;;  %v4448_v4 = vpack.c.bf16 %v4133_v0, %v4132_v32  ;;  %v11312_v13 = vld [vmem:[#allocation251_spill] sm:$0xff]  ;;  %v11315_v0 = vld [vmem:[#allocation12_spill] sm:$0xff] }
 0x2c8   :  { %v3873_v10 = vadd.f32 %v11304_v57, %v2081_v39  ;;  %v3872_v58 = vadd.f32 %v11305_v47, %v2080_v48  ;;  %v11308_v44 = vunpack.c.l.bf16 %v11307_v27  ;;  %v11310_v21 = vunpack.c.h.bf16 %v11307_v27  ;;  %v11318_v48 = vld [vmem:[#allocation6_spill] sm:$0xff]  ;;  %v11323_v57 = vld [vmem:[#allocation241_spill] sm:$0xff]  ;;  %v11339_v17 = vld [vmem:[#allocation44_spill] sm:$0xff] }
 0x2c9   :  { %v8510_v29 = vpop.permute.xlu1 %2785  ;;  %v8512_v30 = vpop.permute.xlu0 %2780  ;;  %6324 = vmatpush3.bf16.msra.mxu0 %v4449_v20  ;;  %v5683_v61 = vunpack.c.h.bf16 %v11311_v37  ;;  %v3887_v41 = vadd.f32 %v11312_v13, %v2095_v63  ;;  %v3886_v14 = vadd.f32 %v11313_v59, %v2094_v38  ;;  %v4145_v53 = vmax.f32 %v3889_v55, 0.0  ;;  %v11316_v20 = vld [vmem:[#allocation243_spill] sm:$0xff]  ;;  %v11320_v55 = vld [vmem:[#allocation8_spill] sm:$0xff]  ;;  %v11324_v47 = vld [vmem:[#allocation242_spill] sm:$0xff] }
 0x2ca   :  { %3095 = vperm.xlu1 %6642, %v2433_v28   ;;  %3090 = vperm.xlu0 %6641, %v2432_v11   ;;  %v2078_v40 = vmul.f32 %v11308_v44, %v11306_v12  ;;  %v2079_v25 = vmul.f32 %v11310_v21, %v11309_v36  ;;  %v4144_v16 = vmax.f32 %v3888_v2, 0.0  ;;  %v4455_v60 = vpack.c.bf16 %v4147_v34, %v4146_v6  ;;  %v11317_v11 = vld [vmem:[#allocation244_spill] sm:$0xff]  ;;  %v11321_v2 = vld [vmem:[#allocation249_spill] sm:$0xff]  ;;  %v11322_v6 = vld [vmem:[#allocation250_spill] sm:$0xff] }
 0x2cb   :  { %6325 = vmatprep.subr.bf16.mxu0 %v4456_v5  ;;  %v2093_v35 = vmul.f32 %v5715_v50, %v11314_v43  ;;  %v2092_v32 = vmul.f32 %v5714_v33, %v11315_v0  ;;  %v4129_v42 = vmax.f32 %v3873_v10, 0.0  ;;  %v4128_v52 = vmax.f32 %v3872_v58, 0.0  ;;  %v2440_v13 = vld [vmem:[%s11006_s2 + $0x360] sm:$0xff] }
 0x2cc   :  { %v3871_v28 = vadd.f32 %v11316_v20, %v2079_v25  ;;  %v3870_v22 = vadd.f32 %v11317_v11, %v2078_v40  ;;  %v4447_v39 = vpack.c.bf16 %v4131_v19, %v4130_v15  ;;  %v11319_v50 = vunpack.c.l.bf16 %v11311_v37  ;;  %v2444_v20 = vld [vmem:[%s11006_s2 + $0x380] sm:$0xff] }
 0x2cd   :  { %v8533_v54 = vpop.permute.xlu1 %2795  ;;  %v8535_v62 = vpop.permute.xlu0 %2790  ;;  %6326 = vmatpush3.bf16.msra.mxu0 %v4448_v4  ;;  %v2077_v3 = vmul.f32 %v5683_v61, %v11320_v55  ;;  %v3885_v34 = vadd.f32 %v11321_v2, %v2093_v35  ;;  %v3884_v5 = vadd.f32 %v11322_v6, %v2092_v32  ;;  %v4143_v33 = vmax.f32 %v3887_v41, 0.0  ;;  %v2441_v61 = vld [vmem:[%s11006_s2 + $0x368] sm:$0xff]  ;;  %v8649_v6 = vld [vmem:[%s11004_s0 + $0x98] sm:$0xff]  }
 0x2ce   :  { %3105 = vperm.xlu1 %6642, %v2435_v45   ;;  %3100 = vperm.xlu0 %6641, %v2434_v46   ;;  %v2076_v7 = vmul.f32 %v11319_v50, %v11318_v48  ;;  %v4142_v18 = vmax.f32 %v3886_v14, 0.0  ;;  %v4454_v38 = vpack.c.bf16 %v4145_v53, %v4144_v16  ;;  %v4127_v19 = vmax.f32 %v3871_v28, 0.0  ;;  %v2439_v45 = vld [vmem:[%s11006_s2 + $0x358] sm:$0xff]  ;;  %v2438_v46 = vld [vmem:[%s11006_s2 + $0x350] sm:$0xff]  ;;  %v2445_v32 = vld [vmem:[%s11006_s2 + $0x388] sm:$0xff] }
 0x2cf   :  { %6327 = vmatprep.subr.bf16.mxu0 %v4455_v60  ;;  %v3869_v10 = vadd.f32 %v11323_v57, %v2077_v3  ;;  %v4126_v15 = vmax.f32 %v3870_v22, 0.0  ;;  %v4446_v4 = vpack.c.bf16 %v4129_v42, %v4128_v52  ;;  %v4141_v12 = vmax.f32 %v3885_v34, 0.0  ;;  %v2443_v16 = vld [vmem:[%s11006_s2 + $0x378] sm:$0xff]  ;;  %v2442_v60 = vld [vmem:[%s11006_s2 + $0x370] sm:$0xff]  ;;  %v2449_v52 = vld [vmem:[%s11006_s2 + $0x3a8] sm:$0xff] }
 0x2d0   :  { %v3868_v58 = vadd.f32 %v11324_v47, %v2076_v7  ;;  %v4140_v27 = vmax.f32 %v3884_v5, 0.0  ;;  %v4453_v36 = vpack.c.bf16 %v4143_v33, %v4142_v18  ;;  %v5616_v43 = vcombine.low %v8431_v49, %v8443_v23  ;;  %v2447_v49 = vld [vmem:[%s11006_s2 + $0x398] sm:$0xff]  ;;  %v2446_v23 = vld [vmem:[%s11006_s2 + $0x390] sm:$0xff]  ;;  %v8630_v7 = vld [vmem:[%s11004_s0 + $0x80] sm:$0xff]  }
 0x2d1   :  { %v8553_v63 = vpop.permute.xlu1 %2805  ;;  %v8555_v51 = vpop.permute.xlu0 %2800  ;;  %6328 = vmatpush3.bf16.msra.mxu0 %v4447_v39  ;;  %v4125_v21 = vmax.f32 %v3869_v10, 0.0  ;;  %v4445_v37 = vpack.c.bf16 %v4127_v19, %v4126_v15  ;;  %v2448_v39 = vld [vmem:[%s11006_s2 + $0x3a0] sm:$0xff]  ;;  %v2451_v48 = vld [vmem:[%s11006_s2 + $0x3b8] sm:$0xff]  ;;  %v2450_v50 = vld [vmem:[%s11006_s2 + $0x3b0] sm:$0xff] }
 0x2d2   :  { %3115 = vperm.xlu1 %6642, %v2437_v8   ;;  %3110 = vperm.xlu0 %6641, %v2436_v56   ;;  %v4124_v25 = vmax.f32 %v3868_v58, 0.0  ;;  %v4452_v14 = vpack.c.bf16 %v4141_v12, %v4140_v27  ;;  %v8635_v55 = vld [vmem:[%s11004_s0 + $0x88] sm:$0xff]   ;;  %v8644_v34 = vld [vmem:[%s11004_s0 + $0x90] sm:$0xff]   ;;  %v6214_v5 = vld [vmem:[%s11004_s0 + $0xb8] sm:$0xff]  }
 0x2d3   :  { %6329 = vmatprep.subr.bf16.mxu0 %v4454_v38  ;;  %v8657_v33 = vld [vmem:[%s11004_s0 + $0xa0] sm:$0xff]   ;;  %v2453_v18 = vld [vmem:[%s11006_s2 + $0x3c8] sm:$0xff]  ;;  %v6221_v58 = vld [vmem:[%s11004_s0 + $0xf0] sm:$0xff]  }
 0x2d4   :  { %v4444_v53 = vpack.c.bf16 %v4125_v21, %v4124_v25  ;;  %v2452_v38 = vld [vmem:[%s11006_s2 + $0x3c0] sm:$0xff]  ;;  %v8670_v47 = vld [vmem:[%s11004_s0 + $0xa8] sm:$0xff]   ;;  %v6222_v12 = vld [vmem:[%s11004_s0 + $0xf8] sm:$0xff]  }
 0x2d5   :  { %v8565_v44 = vpop.permute.xlu1 %2815  ;;  %v8567_v40 = vpop.permute.xlu0 %2810  ;;  %6330 = vmatpush3.bf16.msra.mxu0 %v4446_v4  ;;  %v6213_v4 = vld [vmem:[%s11004_s0 + $0xb0] sm:$0xff]   ;;  %v11330_v57 = vld [vmem:[#allocation32_spill] sm:$0xff] }
 0x2d6   :  { %3125 = vperm.xlu1 %6642, %v2439_v45   ;;  %3120 = vperm.xlu0 %6641, %v2438_v46   ;;  %v5775_v45 = vunpack.c.h.bf16 %v6214_v5  ;;  %v5774_v46 = vunpack.c.l.bf16 %v6214_v5  ;;  %v5770_v5 = vunpack.c.l.bf16 %v6213_v4  ;;  %v11335_v15 = vld [vmem:[#allocation47_spill] sm:$0xff] }
 0x2d7   :  { %6331 = vmatprep.subr.bf16.mxu0 %v4453_v36 }
 0x2d8   :  { %v2122_v19 = vmul.f32 %v5774_v46, %v11330_v57  ;;  %v2457_v57 = vld [vmem:[%s11006_s2 + $0x3e8] sm:$0xff]  ;;  %v2456_v46 = vld [vmem:[%s11006_s2 + $0x3e0] sm:$0xff] }
 0x2d9   :  { %v8575_v41 = vpop.permute.xlu1 %2825  ;;  %v8577_v59 = vpop.permute.xlu0 %2820  ;;  %6332 = vmatpush3.bf16.msra.mxu0 %v4445_v37 }
 0x2da   :  { %3135 = vperm.xlu1 %6642, %v2441_v61   ;;  %3130 = vperm.xlu0 %6641, %v2440_v13   ;;  %v8694_v13 = vld [vmem:[%s11004_s0 + $0xd0] sm:$0xff]  }
 0x2db   :  { %6333 = vmatprep.subr.bf16.mxu0 %v4452_v14  ;;  %v8699_v14 = vld [vmem:[%s11004_s0 + $0xd8] sm:$0xff]  }
 0x2dd   :  { %v8587_v35 = vpop.permute.xlu1 %2835  ;;  %v8589_v0 = vpop.permute.xlu0 %2830  ;;  %6334 = vmatpush3.bf16.msra.mxu0 %v4444_v53  ;;  %v6220_v53 = vld [vmem:[%s11004_s0 + $0xe8] sm:$0xff]  }
 0x2de   :  { %11325 = vst [vmem:[#allocation15_spill] sm:$0xff] %v8587_v35  ;;  %11326 = vst [vmem:[#allocation16_spill] sm:$0xff] %v8589_v0  ;;  %3145 = vperm.xlu1 %6642, %v2443_v16   ;;  %3140 = vperm.xlu0 %6641, %v2442_v60   ;;  %v5767_v60 = vunpack.c.h.bf16 %v8670_v47  ;;  %v5799_v10 = vunpack.c.h.bf16 %v6220_v53  ;;  %v5798_v16 = vunpack.c.l.bf16 %v6220_v53 }
 0x2e0   :  { %4925 = vmatmul.mubr.bf16.vlgmr.msra.gmra.mxu0 %v5616_v43  ;;  %v6219_v43 = vld [vmem:[%s11004_s0 + $0xe0] sm:$0xff]   ;;  %v2134_v1 = vmul.f32 %v5798_v16, %v11339_v17 }
 0x2e1   :  { %v8597_v28 = vpop.permute.xlu1 %2845  ;;  %v8599_v11 = vpop.permute.xlu0 %2840  ;;  %v5795_v25 = vunpack.c.h.bf16 %v6219_v43  ;;  %v5794_v35 = vunpack.c.l.bf16 %v6219_v43 }
 0x2e2   :  { %11327 = vst [vmem:[#allocation247_spill] sm:$0xff] %v8597_v28  ;;  %11328 = vst [vmem:[#allocation248_spill] sm:$0xff] %v8599_v11  ;;  %3155 = vperm.xlu1 %6642, %v2445_v32   ;;  %3150 = vperm.xlu0 %6641, %v2444_v20   ;;  %v5803_v32 = vunpack.c.h.bf16 %v6221_v58  ;;  %v5802_v20 = vunpack.c.l.bf16 %v6221_v58 }
 0x2e5   :  { %v8607_v22 = vpop.permute.xlu1 %2855  ;;  %v8609_v42 = vpop.permute.xlu0 %2850 }
 0x2e6   :  { %3165 = vperm.xlu1 %6642, %v2447_v49   ;;  %3160 = vperm.xlu0 %6641, %v2446_v23   ;;  %v2455_v49 = vld [vmem:[%s11006_s2 + $0x3d8] sm:$0xff]  ;;  %v2454_v23 = vld [vmem:[%s11006_s2 + $0x3d0] sm:$0xff] }
 0x2e9   :  { %v8617_v8 = vpop.permute.xlu1 %2865  ;;  %v8619_v56 = vpop.permute.xlu0 %2860 }
 0x2ea   :  { %3175 = vperm.xlu1 %6642, %v2449_v52   ;;  %3170 = vperm.xlu0 %6641, %v2448_v39   ;;  %v5766_v52 = vunpack.c.l.bf16 %v8670_v47  ;;  %v5771_v39 = vunpack.c.h.bf16 %v6213_v4  ;;  %v11331_v47 = vld [vmem:[#allocation45_spill] sm:$0xff] }
 0x2eb   :  { %v2137_v61 = vmul.f32 %v5803_v32, %v11331_v47  ;;  %v11336_v47 = vld [vmem:[#allocation48_spill] sm:$0xff] }
 0x2ed   :  { %v8637_v3 = vpop.permute.xlu1 %2875  ;;  %v8639_v2 = vpop.permute.xlu0 %2870 }
 0x2ee   :  { %3185 = vperm.xlu1 %6642, %v2451_v48   ;;  %3180 = vperm.xlu0 %6641, %v2450_v50   ;;  %v5807_v48 = vunpack.c.h.bf16 %v6222_v12  ;;  %v5806_v50 = vunpack.c.l.bf16 %v6222_v12  ;;  %v2136_v12 = vmul.f32 %v5802_v20, %v11332_v31  ;;  %v11337_v20 = vld [vmem:[#allocation30_spill] sm:$0xff] }
 0x2f0   :  { %v2139_v32 = vmul.f32 %v5807_v48, %v11335_v15  ;;  %v2138_v31 = vmul.f32 %v5806_v50, %v11336_v47 }
 0x2f1   :  { %v8683_v27 = vpop.permute.xlu1 %2885  ;;  %v8685_v36 = vpop.permute.xlu0 %2880 }
 0x2f2   :  { %3195 = vperm.xlu1 %6642, %v2453_v18   ;;  %3190 = vperm.xlu0 %6641, %v2452_v38   ;;  %v11329_v18 = vld [vmem:[#allocation31_spill] sm:$0xff] }
 0x2f3   :  { %v2123_v38 = vmul.f32 %v5775_v45, %v11329_v18  ;;  %v3914_v45 = vadd.f32 %v8577_v59, %v2122_v19  ;;  %v11333_v18 = vld [vmem:[#allocation27_spill] sm:$0xff] }
 0x2f4   :  { %v2119_v53 = vmul.f32 %v5767_v60, %v11333_v18  ;;  %v11346_v18 = vunpack.c.h.bf16 %v8657_v33 }
 0x2f5   :  { %v2896_v58 = vpop.permute.xlu1 %2895  ;;  %v2891_v21 = vpop.permute.xlu0 %2890  ;;  %v3915_v4 = vadd.f32 %v8575_v41, %v2123_v38  ;;  %v2120_v41 = vmul.f32 %v5770_v5, %v11337_v20  ;;  %v11338_v38 = vld [vmem:[#allocation43_spill] sm:$0xff]  ;;  %v4170_v48 = vmax.f32 %v3914_v45, 0.0  ;;  %v11344_v45 = vld [vmem:[#allocation42_spill] sm:$0xff] }
 0x2f6   :  { %3205 = vperm.xlu1 %6642, %v2455_v49   ;;  %3200 = vperm.xlu0 %6641, %v2454_v23   ;;  %v11334_v49 = vld [vmem:[#allocation29_spill] sm:$0xff]  ;;  %v2135_v59 = vmul.f32 %v5799_v10, %v11338_v38  ;;  %v3929_v19 = vadd.f32 %v2896_v58, %v2137_v61  ;;  %v3928_v37 = vadd.f32 %v2891_v21, %v2136_v12  ;;  %v2459_v10 = vld [vmem:[%s11006_s2 + $0x3f8] sm:$0xff]  ;;  %v2458_v21 = vld [vmem:[%s11006_s2 + $0x3f0] sm:$0xff] }
 0x2f7   :  { %v2121_v23 = vmul.f32 %v5771_v39, %v11334_v49  ;;  %v3912_v15 = vadd.f32 %v8567_v40, %v2120_v41  ;;  %v4171_v39 = vmax.f32 %v3915_v4, 0.0  ;;  %v11340_v61 = vld [vmem:[#allocation28_spill] sm:$0xff]  ;;  %v3926_v40 = vadd.f32 %v8685_v36, %v2134_v1 }
 0x2f8   :  { %v2118_v17 = vmul.f32 %v5766_v52, %v11340_v61  ;;  %v4185_v50 = vmax.f32 %v3929_v19, 0.0  ;;  %v4184_v5 = vmax.f32 %v3928_v37, 0.0  ;;  %v5790_v4 = vunpack.c.l.bf16 %v8699_v14  ;;  %v2461_v37 = vld [vmem:[%s11006_s2 + $0x408] sm:$0xff] }
 0x2f9   :  { %v2906_v24 = vpop.permute.xlu1 %2905  ;;  %v2901_v0 = vpop.permute.xlu0 %2900  ;;  %v3913_v60 = vadd.f32 %v8565_v44, %v2121_v23  ;;  %v3927_v44 = vadd.f32 %v8683_v27, %v2135_v59  ;;  %v3911_v52 = vadd.f32 %v8553_v63, %v2119_v53  ;;  %v4168_v36 = vmax.f32 %v3912_v15, 0.0  ;;  %v2460_v63 = vld [vmem:[%s11006_s2 + $0x400] sm:$0xff]  ;;  %v11347_v53 = vld [vmem:[#allocation26_spill] sm:$0xff] }
 0x2fa   :  { %v3931_v11 = vadd.f32 %v2906_v24, %v2139_v32  ;;  %v3930_v28 = vadd.f32 %v2901_v0, %v2138_v31  ;;  %3215 = vperm.xlu1 %6642, %v2457_v57   ;;  %3210 = vperm.xlu0 %6641, %v2456_v46   ;;  %v11341_v24 = vld [vmem:[#allocation41_spill] sm:$0xff]  ;;  %v2132_v57 = vmul.f32 %v5794_v35, %v11344_v45  ;;  %v11348_v49 = vunpack.c.l.bf16 %v8657_v33 }
 0x2fb   :  { %v2133_v0 = vmul.f32 %v5795_v25, %v11341_v24  ;;  %v3910_v1 = vadd.f32 %v8555_v51, %v2118_v17  ;;  %v4169_v27 = vmax.f32 %v3913_v60, 0.0  ;;  %v4467_v25 = vpack.c.bf16 %v4171_v39, %v4170_v48  ;;  %v8771_v35 = vld [vmem:[%s11007_s3 + $0x48] sm:$0xff]  ;;  %v11351_v60 = vld [vmem:[#allocation39_spill] sm:$0xff]  ;;  %v11353_v48 = vld [vmem:[#allocation40_spill] sm:$0xff] }
 0x2fc   :  { %v4186_v16 = vmax.f32 %v3930_v28, 0.0  ;;  %v4187_v43 = vmax.f32 %v3931_v11, 0.0  ;;  %v8759_v11 = vld [vmem:[%s11007_s3 + $0x8] sm:$0xff]  ;;  %v2116_v23 = vmul.f32 %v11348_v49, %v11347_v53  ;;  %v3924_v20 = vadd.f32 %v8639_v2, %v2132_v57 }
 0x2fd   :  { %v8749_v58 = vpop.permute.xlu1 %2915  ;;  %v8751_v12 = vpop.permute.xlu0 %2910  ;;  %v11345_v46 = vld [vmem:[#allocation25_spill] sm:$0xff]  ;;  %v3925_v32 = vadd.f32 %v8637_v3, %v2133_v0  ;;  %v5619_v47 = vcombine.high %v8759_v11, %v8771_v35  ;;  %v4183_v41 = vmax.f32 %v3927_v44, 0.0  ;;  %v4182_v38 = vmax.f32 %v3926_v40, 0.0  ;;  %v2463_v0 = vld [vmem:[%s11006_s2 + $0x418] sm:$0xff] }
 0x2fe   :  { %11342 = vst [vmem:[#allocation9_spill] sm:$0xff] %v8749_v58  ;;  %11343 = vst [vmem:[#allocation257_spill] sm:$0xff] %v8751_v12  ;;  %3225 = vperm.xlu1 %6642, %v2459_v10   ;;  %3220 = vperm.xlu0 %6641, %v2458_v21   ;;  %v4475_v28 = vpack.c.bf16 %v4187_v43, %v4186_v16  ;;  %v2117_v51 = vmul.f32 %v11346_v18, %v11345_v46  ;;  %v6216_v31 = vld [vmem:[%s11004_s0 + $0xc8] sm:$0xff]   ;;  %v5786_v3 = vunpack.c.l.bf16 %v8694_v13  ;;  %v11354_v16 = vld [vmem:[#allocation23_spill] sm:$0xff] }
 0x2ff   :  { %v4474_v33 = vpack.c.bf16 %v4185_v50, %v4184_v5  ;;  %v11352_v15 = vunpack.c.h.bf16 %v8699_v14  ;;  %v2130_v10 = vmul.f32 %v5790_v4, %v11353_v48  ;;  %v3908_v2 = vadd.f32 %v8535_v62, %v2116_v23  ;;  %v2462_v14 = vld [vmem:[%s11006_s2 + $0x410] sm:$0xff]  ;;  %4989 = vmatprep.mubr.bf16.mxu1 %v5619_v47  ;;  %v11356_v44 = vld [vmem:[#allocation24_spill] sm:$0xff]  ;;  %v2465_v49 = vld [vmem:[%s11006_s2 + $0x428] sm:$0xff] }
 0x300   :  { %6359 = vmatprep.subr.bf16.mxu1 %v4475_v28  ;;  %v3909_v21 = vadd.f32 %v8533_v54, %v2117_v51  ;;  %v4167_v61 = vmax.f32 %v3911_v52, 0.0  ;;  %v4166_v17 = vmax.f32 %v3910_v1, 0.0  ;;  %v4466_v24 = vpack.c.bf16 %v4169_v27, %v4168_v36  ;;  %v6215_v4 = vld [vmem:[%s11004_s0 + $0xc0] sm:$0xff]   ;;  %v11363_v47 = vld [vmem:[#allocation22_spill] sm:$0xff] }
 0x301   :  { %v8786_v59 = vpop.permute.xlu1 %2925  ;;  %v8788_v19 = vpop.permute.xlu0 %2920  ;;  %6360 = vmatpush3.bf16.msra.mxu1 %v4467_v25  ;;  %v2131_v39 = vmul.f32 %v11352_v15, %v11351_v60  ;;  %v11355_v54 = vunpack.c.h.bf16 %v8649_v6  ;;  %v11357_v62 = vunpack.c.l.bf16 %v8649_v6  ;;  %v5783_v50 = vunpack.c.h.bf16 %v6216_v31  ;;  %v11358_v6 = vld [vmem:[#allocation37_spill] sm:$0xff] }
 0x302   :  { %11349 = vst [vmem:[#allocation10_spill] sm:$0xff] %v8786_v59  ;;  %11350 = vst [vmem:[#allocation253_spill] sm:$0xff] %v8788_v19  ;;  %3235 = vperm.xlu1 %6642, %v2461_v37   ;;  %3230 = vperm.xlu0 %6641, %v2460_v63   ;;  %v3922_v45 = vadd.f32 %v8619_v56, %v2130_v10  ;;  %v4181_v57 = vmax.f32 %v3925_v32, 0.0  ;;  %v4180_v52 = vmax.f32 %v3924_v20, 0.0  ;;  %v5782_v36 = vunpack.c.l.bf16 %v6216_v31  ;;  %v11361_v23 = vld [vmem:[#allocation21_spill] sm:$0xff]  ;;  %v11365_v10 = vld [vmem:[#allocation35_spill] sm:$0xff] }
 0x303   :  { %6361 = vmatprep.subr.bf16.mxu1 %v4474_v33  ;;  %v2115_v43 = vmul.f32 %v11355_v54, %v11354_v16  ;;  %v2114_v40 = vmul.f32 %v11357_v62, %v11356_v44  ;;  %v3923_v5 = vadd.f32 %v8617_v8, %v2131_v39  ;;  %v4473_v27 = vpack.c.bf16 %v4183_v41, %v4182_v38  ;;  %v11360_v8 = vld [vmem:[#allocation38_spill] sm:$0xff]  ;;  %v11367_v54 = vld [vmem:[#allocation19_spill] sm:$0xff]  ;;  %v11369_v44 = vld [vmem:[#allocation20_spill] sm:$0xff] }
 0x304   :  { %v11359_v25 = vunpack.c.h.bf16 %v8694_v13  ;;  %v2128_v63 = vmul.f32 %v5786_v3, %v11360_v8  ;;  %v4165_v18 = vmax.f32 %v3909_v21, 0.0  ;;  %v4164_v51 = vmax.f32 %v3908_v2, 0.0  ;;  %v2464_v13 = vld [vmem:[%s11006_s2 + $0x420] sm:$0xff] }
 0x305   :  { %v8814_v28 = vpop.permute.xlu1 %2935  ;;  %v8816_v1 = vpop.permute.xlu0 %2930  ;;  %6362 = vmatpush3.bf16.msra.mxu1 %v4466_v24  ;;  %v3907_v46 = vadd.f32 %v8510_v29, %v2115_v43  ;;  %v3906_v56 = vadd.f32 %v8512_v30, %v2114_v40  ;;  %v4465_v53 = vpack.c.bf16 %v4167_v61, %v4166_v17  ;;  %v11362_v32 = vunpack.c.h.bf16 %v8644_v34  ;;  %v11366_v2 = vld [vmem:[#allocation36_spill] sm:$0xff]  ;;  %v11371_v40 = vld [vmem:[#allocation247_spill] sm:$0xff]  ;;  %v11391_v12 = vld [vmem:[#allocation61_spill] sm:$0xff] }
 0x306   :  { %v2129_v37 = vmul.f32 %v11359_v25, %v11358_v6  ;;  %3245 = vperm.xlu1 %6642, %v2463_v0   ;;  %3240 = vperm.xlu0 %6641, %v2462_v14   ;;  %v11364_v31 = vunpack.c.l.bf16 %v8644_v34  ;;  %v5779_v20 = vunpack.c.h.bf16 %v6215_v4  ;;  %v3920_v38 = vadd.f32 %v8609_v42, %v2128_v63  ;;  %v2467_v0 = vld [vmem:[%s11006_s2 + $0x438] sm:$0xff]  ;;  %v2466_v14 = vld [vmem:[%s11006_s2 + $0x430] sm:$0xff]  ;;  %v11373_v6 = vld [vmem:[#allocation33_spill] sm:$0xff] }
 0x307   :  { %6363 = vmatprep.subr.bf16.mxu1 %v4473_v27  ;;  %v2113_v29 = vmul.f32 %v11362_v32, %v11361_v23  ;;  %v4179_v33 = vmax.f32 %v3923_v5, 0.0  ;;  %v4178_v3 = vmax.f32 %v3922_v45, 0.0  ;;  %v4472_v39 = vpack.c.bf16 %v4181_v57, %v4180_v52  ;;  %v11372_v5 = vld [vmem:[#allocation248_spill] sm:$0xff]  ;;  %v11377_v23 = vld [vmem:[#allocation17_spill] sm:$0xff] }
 0x308   :  { %v2112_v30 = vmul.f32 %v11364_v31, %v11363_v47  ;;  %v3921_v41 = vadd.f32 %v8607_v22, %v2129_v37  ;;  %v5778_v48 = vunpack.c.l.bf16 %v6215_v4  ;;  %v2127_v21 = vmul.f32 %v5783_v50, %v11365_v10  ;;  %v11374_v37 = vld [vmem:[#allocation34_spill] sm:$0xff]  ;;  %v11375_v63 = vld [vmem:[#allocation260_spill] sm:$0xff] }
 0x309   :  { %v8838_v60 = vpop.permute.xlu1 %2945  ;;  %v8840_v15 = vpop.permute.xlu0 %2940  ;;  %6364 = vmatpush3.bf16.msra.mxu1 %v4465_v53  ;;  %v2126_v61 = vmul.f32 %v5782_v36, %v11366_v2  ;;  %v3905_v34 = vadd.f32 %v8486_v26, %v2113_v29  ;;  %v4163_v42 = vmax.f32 %v3907_v46, 0.0  ;;  %v4162_v17 = vmax.f32 %v3906_v56, 0.0  ;;  %v11379_v47 = vld [vmem:[#allocation18_spill] sm:$0xff]  ;;  %v11398_v19 = vld [vmem:[#allocation76_spill] sm:$0xff] }
 0x30a   :  { %3255 = vperm.xlu1 %6642, %v2465_v49   ;;  %3250 = vperm.xlu0 %6641, %v2464_v13   ;;  %v3904_v22 = vadd.f32 %v8488_v9, %v2112_v30  ;;  %v4464_v24 = vpack.c.bf16 %v4165_v18, %v4164_v51  ;;  %v5746_v16 = vunpack.c.l.bf16 %v8630_v7  ;;  %v11368_v26 = vunpack.c.h.bf16 %v8635_v55  ;;  %v2469_v49 = vld [vmem:[%s11006_s2 + $0x448] sm:$0xff]  ;;  %v2468_v13 = vld [vmem:[%s11006_s2 + $0x440] sm:$0xff]  ;;  %v11380_v30 = vld [vmem:[#allocation15_spill] sm:$0xff] }
 0x30b   :  { %6365 = vmatprep.subr.bf16.mxu1 %v4472_v39  ;;  %v11370_v9 = vunpack.c.l.bf16 %v8635_v55  ;;  %v3919_v50 = vadd.f32 %v11371_v40, %v2127_v21  ;;  %v3918_v4 = vadd.f32 %v11372_v5, %v2126_v61  ;;  %v4177_v45 = vmax.f32 %v3921_v41, 0.0  ;;  %v11376_v55 = vld [vmem:[#allocation261_spill] sm:$0xff]  ;;  %v11381_v41 = vld [vmem:[#allocation16_spill] sm:$0xff]  ;;  %v11382_v21 = vld [vmem:[#allocation258_spill] sm:$0xff] }
 0x30c   :  { %v2111_v43 = vmul.f32 %v11368_v26, %v11367_v54  ;;  %v4176_v57 = vmax.f32 %v3920_v38, 0.0  ;;  %v4471_v36 = vpack.c.bf16 %v4179_v33, %v4178_v3  ;;  %v2125_v25 = vmul.f32 %v5779_v20, %v11373_v6  ;;  %v2472_v40 = vld [vmem:[%s11006_s2 + $0x460] sm:$0xff] }
 0x30d   :  { %v2110_v62 = vmul.f32 %v11370_v9, %v11369_v44  ;;  %v8861_v52 = vpop.permute.xlu1 %2955  ;;  %v8863_v27 = vpop.permute.xlu0 %2950  ;;  %6366 = vmatpush3.bf16.msra.mxu1 %v4464_v24  ;;  %v2124_v8 = vmul.f32 %v5778_v48, %v11374_v37  ;;  %v4161_v18 = vmax.f32 %v3905_v34, 0.0  ;;  %v4160_v51 = vmax.f32 %v3904_v22, 0.0  ;;  %v2470_v24 = vld [vmem:[%s11006_s2 + $0x450] sm:$0xff] }
 0x30e   :  { %v3903_v46 = vadd.f32 %v11375_v63, %v2111_v43  ;;  %3265 = vperm.xlu1 %6642, %v2467_v0   ;;  %3260 = vperm.xlu0 %6641, %v2466_v14   ;;  %v4463_v53 = vpack.c.bf16 %v4163_v42, %v4162_v17  ;;  %v11378_v32 = vunpack.c.h.bf16 %v8630_v7  ;;  %v2108_v31 = vmul.f32 %v5746_v16, %v11379_v47  ;;  %v11383_v7 = vld [vmem:[#allocation259_spill] sm:$0xff]  ;;  %v2476_v63 = vld [vmem:[%s11006_s2 + $0x480] sm:$0xff] }
 0x30f   :  { %v3902_v56 = vadd.f32 %v11376_v55, %v2110_v62  ;;  %6367 = vmatprep.subr.bf16.mxu1 %v4471_v36  ;;  %v3917_v20 = vadd.f32 %v11380_v30, %v2125_v25  ;;  %v3916_v38 = vadd.f32 %v11381_v41, %v2124_v8  ;;  %v4175_v33 = vmax.f32 %v3919_v50, 0.0  ;;  %v2471_v17 = vld [vmem:[%s11006_s2 + $0x458] sm:$0xff]  ;;  %v2473_v62 = vld [vmem:[%s11006_s2 + $0x468] sm:$0xff]  ;;  %v2474_v36 = vld [vmem:[%s11006_s2 + $0x470] sm:$0xff] }
 0x310   :  { %v2109_v29 = vmul.f32 %v11378_v32, %v11377_v23  ;;  %v4174_v3 = vmax.f32 %v3918_v4, 0.0  ;;  %v4470_v10 = vpack.c.bf16 %v4177_v45, %v4176_v57  ;;  %v3900_v61 = vadd.f32 %v11383_v7, %v2108_v31  ;;  %v2475_v57 = vld [vmem:[%s11006_s2 + $0x478] sm:$0xff]  ;;  %v2477_v8 = vld [vmem:[%s11006_s2 + $0x488] sm:$0xff]  ;;  %v2482_v30 = vld [vmem:[%s11006_s2 + $0x4b0] sm:$0xff] }
 0x311   :  { %v8881_v39 = vpop.permute.xlu1 %2965  ;;  %v8883_v48 = vpop.permute.xlu0 %2960  ;;  %6368 = vmatpush3.bf16.msra.mxu1 %v4463_v53  ;;  %v4159_v34 = vmax.f32 %v3903_v46, 0.0  ;;  %v4158_v22 = vmax.f32 %v3902_v56, 0.0  ;;  %v4462_v42 = vpack.c.bf16 %v4161_v18, %v4160_v51  ;;  %v4173_v0 = vmax.f32 %v3917_v20, 0.0  ;;  %v4396_v51 = vld [vmem:[%s11007_s3 + $0x80] sm:$0xff]  ;;  %v2481_v53 = vld [vmem:[%s11006_s2 + $0x4a8] sm:$0xff]  ;;  %v2483_v31 = vld [vmem:[%s11006_s2 + $0x4b8] sm:$0xff] }
 0x312   :  { %v3901_v2 = vadd.f32 %v11382_v21, %v2109_v29  ;;  %3275 = vperm.xlu1 %6642, %v2469_v49   ;;  %3270 = vperm.xlu0 %6641, %v2468_v13   ;;  %v4172_v14 = vmax.f32 %v3916_v38, 0.0  ;;  %v4469_v26 = vpack.c.bf16 %v4175_v33, %v4174_v3  ;;  %v4156_v44 = vmax.f32 %v3900_v61, 0.0  ;;  %v2480_v49 = vld [vmem:[%s11006_s2 + $0x4a0] sm:$0xff]  ;;  %v8969_v41 = vld [vmem:[%s11004_s0 + $0x108] sm:$0xff]   ;;  %v8974_v38 = vld [vmem:[%s11004_s0 + $0x110] sm:$0xff]  }
 0x313   :  { %6369 = vmatprep.subr.bf16.mxu1 %v4470_v10  ;;  %v4461_v9 = vpack.c.bf16 %v4159_v34, %v4158_v22  ;;  %v5618_v6 = vcombine.low %v8759_v11, %v8771_v35  ;;  %v2479_v11 = vld [vmem:[%s11006_s2 + $0x498] sm:$0xff]  ;;  %v2478_v35 = vld [vmem:[%s11006_s2 + $0x490] sm:$0xff]  ;;  %v4404_v13 = vld [vmem:[%s11007_s3 + $0xc0] sm:$0xff] }
 0x314   :  { %v4157_v43 = vmax.f32 %v3901_v2, 0.0  ;;  %v4468_v4 = vpack.c.bf16 %v4173_v0, %v4172_v14  ;;  %v5633_v23 = vcombine.high %v4396_v51, %v4404_v13  ;;  %v5632_v32 = vcombine.low %v4396_v51, %v4404_v13  ;;  %v8964_v20 = vld [vmem:[%s11004_s0 + $0x100] sm:$0xff]   ;;  %v8979_v33 = vld [vmem:[%s11004_s0 + $0x118] sm:$0xff]   ;;  %v8989_v10 = vld [vmem:[%s11004_s0 + $0x128] sm:$0xff]  }
 0x315   :  { %v8893_v16 = vpop.permute.xlu1 %2975  ;;  %v8895_v54 = vpop.permute.xlu0 %2970  ;;  %6370 = vmatpush3.bf16.msra.mxu1 %v4462_v42  ;;  %v8984_v3 = vld [vmem:[%s11004_s0 + $0x120] sm:$0xff]   ;;  %v8998_v7 = vld [vmem:[%s11004_s0 + $0x130] sm:$0xff]   ;;  %v6230_v61 = vld [vmem:[%s11004_s0 + $0x138] sm:$0xff]  }
 0x316   :  { %3285 = vperm.xlu1 %6642, %v2471_v17   ;;  %3280 = vperm.xlu0 %6641, %v2470_v24   ;;  %v4460_v45 = vpack.c.bf16 %v4157_v43, %v4156_v44  ;;  %v4412_v34 = vld [vmem:[%s11007_s3 + $0x100] sm:$0xff]  ;;  %v2485_v17 = vld [vmem:[%s11006_s2 + $0x4c8] sm:$0xff]  ;;  %v6237_v43 = vld [vmem:[%s11004_s0 + $0x170] sm:$0xff]   ;;  %v5835_v51 = vunpack.c.h.bf16 %v8998_v7 }
 0x317   :  { %6371 = vmatprep.subr.bf16.mxu1 %v4469_v26  ;;  %4932 = vmatprep.mubr.bf16.mxu0 %v5633_v23  ;;  %v2484_v24 = vld [vmem:[%s11006_s2 + $0x4c0] sm:$0xff]  ;;  %v5830_v23 = vunpack.c.l.bf16 %v8989_v10  ;;  %v11388_v22 = vld [vmem:[#allocation63_spill] sm:$0xff] }
 0x318   :  { %4933 = vmatmul.mubr.bf16.gmra.mxu0 %v5632_v32  ;;  %v4420_v0 = vld [vmem:[%s11007_s3 + $0x140] sm:$0xff]  ;;  %v11390_v13 = vld [vmem:[#allocation59_spill] sm:$0xff] }
 0x319   :  { %v8903_v50 = vpop.permute.xlu1 %2985  ;;  %v8905_v5 = vpop.permute.xlu0 %2980  ;;  %6372 = vmatpush3.bf16.msra.mxu1 %v4461_v9  ;;  %v5649_v44 = vcombine.high %v4412_v34, %v4420_v0  ;;  %v5648_v9 = vcombine.low %v4412_v34, %v4420_v0  ;;  %v9053_v32 = vld [vmem:[%s11004_s0 + $0x160] sm:$0xff]   ;;  %v2486_v34 = vld [vmem:[%s11006_s2 + $0x4d0] sm:$0xff] }
 0x31a   :  { %3295 = vperm.xlu1 %6642, %v2473_v62   ;;  %3290 = vperm.xlu0 %6641, %v2472_v40   ;;  %v11389_v42 = vld [vmem:[#allocation64_spill] sm:$0xff] }
 0x31b   :  { %6373 = vmatprep.subr.bf16.mxu1 %v4468_v4  ;;  %v5839_v4 = vunpack.c.h.bf16 %v6230_v61  ;;  %4940 = vmatprep.mubr.bf16.mxu0 %v5649_v44  ;;  %v2153_v44 = vmul.f32 %v5835_v51, %v11391_v12  ;;  %v2489_v12 = vld [vmem:[%s11006_s2 + $0x4e8] sm:$0xff]  ;;  %v4436_v51 = vld [vmem:[%s11007_s3 + $0x1c0] sm:$0xff] }
 0x31d   :  { %v8915_v25 = vpop.permute.xlu1 %2995  ;;  %v8917_v37 = vpop.permute.xlu0 %2990  ;;  %6374 = vmatpush3.bf16.msra.mxu1 %v4460_v45  ;;  %v5838_v45 = vunpack.c.l.bf16 %v6230_v61  ;;  %v2487_v61 = vld [vmem:[%s11006_s2 + $0x4d8] sm:$0xff]  ;;  %v2155_v14 = vmul.f32 %v5839_v4, %v11388_v22  ;;  %v4428_v22 = vld [vmem:[%s11007_s3 + $0x180] sm:$0xff]  ;;  %v11393_v4 = vld [vmem:[#allocation78_spill] sm:$0xff] }
 0x31e   :  { %11384 = vst [vmem:[#allocation254_spill] sm:$0xff] %v8915_v25  ;;  %11385 = vst [vmem:[#allocation13_spill] sm:$0xff] %v8917_v37  ;;  %3305 = vperm.xlu1 %6642, %v2475_v57   ;;  %3300 = vperm.xlu0 %6641, %v2474_v36   ;;  %v9027_v57 = vld [vmem:[%s11004_s0 + $0x150] sm:$0xff]   ;;  %v6238_v36 = vld [vmem:[%s11004_s0 + $0x178] sm:$0xff]   ;;  %v5858_v25 = vunpack.c.l.bf16 %v9053_v32 }
 0x31f   :  { %v5870_v0 = vunpack.c.l.bf16 %v6238_v36 }
 0x320   :  { %4990 = vmatmul.mubr.bf16.vlgmr.msra.gmra.mxu1 %v5618_v6  ;;  %4941 = vmatmul.mubr.bf16.gmra.mxu0 %v5648_v9  ;;  %v11392_v9 = vld [vmem:[#allocation77_spill] sm:$0xff] }
 0x321   :  { %v8925_v46 = vpop.permute.xlu1 %3005  ;;  %v8927_v55 = vpop.permute.xlu0 %3000 }
 0x322   :  { %11386 = vst [vmem:[#allocation14_spill] sm:$0xff] %v8925_v46  ;;  %11387 = vst [vmem:[#allocation245_spill] sm:$0xff] %v8927_v55  ;;  %3315 = vperm.xlu1 %6642, %v2477_v8   ;;  %3310 = vperm.xlu0 %6641, %v2476_v63  }
 0x325   :  { %v8935_v56 = vpop.permute.xlu1 %3015  ;;  %v8937_v18 = vpop.permute.xlu0 %3010 }
 0x326   :  { %3325 = vperm.xlu1 %6642, %v2479_v11   ;;  %3320 = vperm.xlu0 %6641, %v2478_v35   ;;  %v5831_v35 = vunpack.c.h.bf16 %v8989_v10 }
 0x328   :  { %v2151_v11 = vmul.f32 %v5831_v35, %v11390_v13  ;;  %v2488_v35 = vld [vmem:[%s11006_s2 + $0x4e0] sm:$0xff] }
 0x329   :  { %v8951_v29 = vpop.permute.xlu1 %3025  ;;  %v8953_v47 = vpop.permute.xlu0 %3020 }
 0x32a   :  { %3335 = vperm.xlu1 %6642, %v2481_v53   ;;  %3330 = vperm.xlu0 %6641, %v2480_v49   ;;  %v9043_v53 = vld [vmem:[%s11004_s0 + $0x158] sm:$0xff]   ;;  %v6236_v49 = vld [vmem:[%s11004_s0 + $0x168] sm:$0xff]  }
 0x32b   :  { %v5863_v26 = vunpack.c.h.bf16 %v6236_v49  ;;  %v5862_v58 = vunpack.c.l.bf16 %v6236_v49  ;;  %v11394_v49 = vld [vmem:[#allocation79_spill] sm:$0xff] }
 0x32d   :  { %v8991_v21 = vpop.permute.xlu1 %3035  ;;  %v8993_v2 = vpop.permute.xlu0 %3030  ;;  %v2166_v59 = vmul.f32 %v5862_v58, %v11398_v19  ;;  %v11399_v58 = vld [vmem:[#allocation60_spill] sm:$0xff] }
 0x32e   :  { %3345 = vperm.xlu1 %6642, %v2483_v31   ;;  %3340 = vperm.xlu0 %6641, %v2482_v30   ;;  %v5867_v31 = vunpack.c.h.bf16 %v6237_v43  ;;  %v5866_v30 = vunpack.c.l.bf16 %v6237_v43  ;;  %v2154_v43 = vmul.f32 %v5838_v45, %v11389_v42  ;;  %v2150_v19 = vmul.f32 %v5830_v23, %v11399_v58 }
 0x32f   :  { %v3943_v23 = vadd.f32 %v8881_v39, %v2151_v11  ;;  %v2492_v39 = vld [vmem:[%s11006_s2 + $0x500] sm:$0xff] }
 0x330   :  { %v2169_v42 = vmul.f32 %v5867_v31, %v11392_v9  ;;  %v2168_v45 = vmul.f32 %v5866_v30, %v11393_v4  ;;  %v3946_v10 = vadd.f32 %v8905_v5, %v2154_v43  ;;  %v11395_v31 = vld [vmem:[#allocation80_spill] sm:$0xff]  ;;  %v11404_v11 = vld [vmem:[#allocation57_spill] sm:$0xff] }
 0x331   :  { %v9032_v6 = vpop.permute.xlu1 %3045  ;;  %v9034_v8 = vpop.permute.xlu0 %3040  ;;  %v2170_v30 = vmul.f32 %v5870_v0, %v11395_v31  ;;  %v11407_v31 = vunpack.c.l.bf16 %v8984_v3  ;;  %v4199_v58 = vmax.f32 %v3943_v23, 0.0 }
 0x332   :  { %3355 = vperm.xlu1 %6642, %v2485_v17   ;;  %3350 = vperm.xlu0 %6641, %v2484_v24   ;;  %v5834_v17 = vunpack.c.l.bf16 %v8998_v7  ;;  %v5871_v24 = vunpack.c.h.bf16 %v6238_v36  ;;  %v5859_v7 = vunpack.c.h.bf16 %v9053_v32  ;;  %v3947_v36 = vadd.f32 %v8903_v50, %v2155_v14  ;;  %v11396_v14 = vld [vmem:[#allocation62_spill] sm:$0xff] }
 0x333   :  { %v5664_v50 = vcombine.low %v4428_v22, %v4436_v51 }
 0x334   :  { %v2171_v13 = vmul.f32 %v5871_v24, %v11394_v49  ;;  %v2152_v5 = vmul.f32 %v5834_v17, %v11396_v14  ;;  %v3945_v24 = vadd.f32 %v8893_v16, %v2153_v44  ;;  %v4202_v17 = vmax.f32 %v3946_v10, 0.0  ;;  %v6232_v14 = vld [vmem:[%s11004_s0 + $0x148] sm:$0xff]  }
 0x335   :  { %v3056_v63 = vpop.permute.xlu1 %3055  ;;  %v3051_v40 = vpop.permute.xlu0 %3050  ;;  %v11405_v49 = vunpack.c.h.bf16 %v8984_v3 }
 0x336   :  { %3365 = vperm.xlu1 %6642, %v2487_v61   ;;  %3360 = vperm.xlu0 %6641, %v2486_v34   ;;  %v5665_v61 = vcombine.high %v4428_v22, %v4436_v51  ;;  %v11397_v34 = vld [vmem:[#allocation75_spill] sm:$0xff]  ;;  %v3961_v9 = vadd.f32 %v3056_v63, %v2169_v42  ;;  %v3960_v4 = vadd.f32 %v3051_v40, %v2168_v45  ;;  %v4203_v22 = vmax.f32 %v3947_v36, 0.0  ;;  %v2493_v51 = vld [vmem:[%s11006_s2 + $0x508] sm:$0xff] }
 0x337   :  { %v2167_v43 = vmul.f32 %v5863_v26, %v11397_v34  ;;  %v3944_v0 = vadd.f32 %v8895_v54, %v2152_v5  ;;  %v2491_v26 = vld [vmem:[%s11006_s2 + $0x4f8] sm:$0xff]  ;;  %v2490_v40 = vld [vmem:[%s11006_s2 + $0x4f0] sm:$0xff]  ;;  %v3958_v54 = vadd.f32 %v9034_v8, %v2166_v59  ;;  %v5854_v36 = vunpack.c.l.bf16 %v9043_v53 }
 0x338   :  { %4948 = vmatprep.mubr.bf16.mxu0 %v5665_v61  ;;  %v4217_v10 = vmax.f32 %v3961_v9, 0.0  ;;  %v4216_v44 = vmax.f32 %v3960_v4, 0.0  ;;  %v3942_v59 = vadd.f32 %v8883_v48, %v2150_v19  ;;  %v2149_v48 = vmul.f32 %v11405_v49, %v11404_v11 }
 0x339   :  { %v3066_v62 = vpop.permute.xlu1 %3065  ;;  %v3061_v37 = vpop.permute.xlu0 %3060  ;;  %4949 = vmatmul.mubr.bf16.gmra.mxu0 %v5664_v50  ;;  %v3959_v16 = vadd.f32 %v9032_v6, %v2167_v43  ;;  %v4201_v6 = vmax.f32 %v3945_v24, 0.0  ;;  %v4200_v8 = vmax.f32 %v3944_v0, 0.0  ;;  %v4214_v43 = vmax.f32 %v3958_v54, 0.0  ;;  %v11410_v24 = vld [vmem:[#allocation71_spill] sm:$0xff] }
 0x33a   :  { %v3963_v55 = vadd.f32 %v3066_v62, %v2171_v13  ;;  %v3962_v46 = vadd.f32 %v3061_v37, %v2170_v30  ;;  %3375 = vperm.xlu1 %6642, %v2489_v12   ;;  %3370 = vperm.xlu0 %6641, %v2488_v35   ;;  %v11400_v37 = vld [vmem:[#allocation73_spill] sm:$0xff]  ;;  %v11403_v12 = vld [vmem:[#allocation74_spill] sm:$0xff]  ;;  %v4490_v3 = vpack.c.bf16 %v4217_v10, %v4216_v44  ;;  %v11411_v0 = vunpack.c.h.bf16 %v9043_v53 }
 0x33b   :  { %v2165_v62 = vmul.f32 %v5859_v7, %v11400_v37  ;;  %v2164_v35 = vmul.f32 %v5858_v25, %v11403_v12  ;;  %v4483_v7 = vpack.c.bf16 %v4203_v22, %v4202_v17  ;;  %v9125_v25 = vld [vmem:[%s11007_s3 + $0x50] sm:$0xff]  ;;  %v4215_v34 = vmax.f32 %v3959_v16, 0.0  ;;  %v11412_v17 = vld [vmem:[#allocation72_spill] sm:$0xff] }
 0x33c   :  { %v4219_v63 = vmax.f32 %v3963_v55, 0.0  ;;  %v4218_v32 = vmax.f32 %v3962_v46, 0.0  ;;  %v9113_v55 = vld [vmem:[%s11007_s3 + $0x10] sm:$0xff]  ;;  %v2163_v22 = vmul.f32 %v11411_v0, %v11410_v24  ;;  %v4198_v19 = vmax.f32 %v3942_v59, 0.0  ;;  %v11415_v16 = vld [vmem:[#allocation56_spill] sm:$0xff] }
 0x33d   :  { %v9103_v42 = vpop.permute.xlu1 %3075  ;;  %v9105_v45 = vpop.permute.xlu0 %3070  ;;  %v11406_v13 = vld [vmem:[#allocation58_spill] sm:$0xff]  ;;  %v3957_v61 = vadd.f32 %v8991_v21, %v2165_v62  ;;  %v5621_v50 = vcombine.high %v9113_v55, %v9125_v25  ;;  %v3956_v5 = vadd.f32 %v8993_v2, %v2164_v35  ;;  %v5850_v21 = vunpack.c.l.bf16 %v9027_v57  ;;  %v2495_v62 = vld [vmem:[%s11006_s2 + $0x518] sm:$0xff] }
 0x33e   :  { %11401 = vst [vmem:[#allocation246_spill] sm:$0xff] %v9103_v42  ;;  %11402 = vst [vmem:[#allocation5_spill] sm:$0xff] %v9105_v45  ;;  %3385 = vperm.xlu1 %6642, %v2491_v26   ;;  %3380 = vperm.xlu0 %6641, %v2490_v40   ;;  %v4491_v46 = vpack.c.bf16 %v4219_v63, %v4218_v32  ;;  %v2148_v30 = vmul.f32 %v11407_v31, %v11406_v13  ;;  %v2494_v53 = vld [vmem:[%s11006_s2 + $0x510] sm:$0xff]  ;;  %v5847_v10 = vunpack.c.h.bf16 %v6232_v14  ;;  %v2497_v31 = vld [vmem:[%s11006_s2 + $0x528] sm:$0xff] }
 0x33f   :  { %v2162_v26 = vmul.f32 %v5854_v36, %v11412_v17  ;;  %v3941_v40 = vadd.f32 %v8861_v52, %v2149_v48  ;;  %v4482_v37 = vpack.c.bf16 %v4201_v6, %v4200_v8  ;;  %5054 = vmatprep.mubr.bf16.mxu0 %v5621_v50  ;;  %v11413_v63 = vld [vmem:[#allocation55_spill] sm:$0xff]  ;;  %v11414_v52 = vunpack.c.h.bf16 %v8979_v33  ;;  %v6231_v36 = vld [vmem:[%s11004_s0 + $0x140] sm:$0xff]   ;;  %v11422_v50 = vld [vmem:[#allocation54_spill] sm:$0xff] }
 0x340   :  { %6399 = vmatprep.subr.bf16.mxu0 %v4491_v46  ;;  %v3940_v2 = vadd.f32 %v8863_v27, %v2148_v30  ;;  %v11416_v27 = vunpack.c.l.bf16 %v8979_v33  ;;  %v3955_v44 = vadd.f32 %v8951_v29, %v2163_v22  ;;  %v4213_v35 = vmax.f32 %v3957_v61, 0.0  ;;  %v11417_v33 = vld [vmem:[#allocation69_spill] sm:$0xff]  ;;  %v11419_v29 = vld [vmem:[#allocation70_spill] sm:$0xff] }
 0x341   :  { %v9140_v9 = vpop.permute.xlu1 %3085  ;;  %v9142_v4 = vpop.permute.xlu0 %3080  ;;  %6400 = vmatpush3.bf16.msra.mxu0 %v4483_v7  ;;  %v2147_v32 = vmul.f32 %v11414_v52, %v11413_v63  ;;  %v3954_v12 = vadd.f32 %v8953_v47, %v2162_v26  ;;  %v4212_v23 = vmax.f32 %v3956_v5, 0.0  ;;  %v4489_v6 = vpack.c.bf16 %v4215_v34, %v4214_v43  ;;  %v11420_v30 = vld [vmem:[#allocation53_spill] sm:$0xff]  ;;  %v11424_v26 = vld [vmem:[#allocation67_spill] sm:$0xff] }
 0x342   :  { %11408 = vst [vmem:[#allocation255_spill] sm:$0xff] %v9140_v9  ;;  %11409 = vst [vmem:[#allocation7_spill] sm:$0xff] %v9142_v4  ;;  %3395 = vperm.xlu1 %6642, %v2493_v51   ;;  %3390 = vperm.xlu0 %6641, %v2492_v39   ;;  %v2146_v54 = vmul.f32 %v11416_v27, %v11415_v16  ;;  %v5846_v8 = vunpack.c.l.bf16 %v6232_v14  ;;  %v11418_v7 = vunpack.c.h.bf16 %v9027_v57  ;;  %v4197_v49 = vmax.f32 %v3941_v40, 0.0  ;;  %v2496_v57 = vld [vmem:[%s11006_s2 + $0x520] sm:$0xff]  ;;  %v11426_v52 = vld [vmem:[#allocation51_spill] sm:$0xff] }
 0x343   :  { %6401 = vmatprep.subr.bf16.mxu0 %v4490_v3  ;;  %v2160_v39 = vmul.f32 %v5850_v21, %v11419_v29  ;;  %v3939_v11 = vadd.f32 %v8838_v60, %v2147_v32  ;;  %v4196_v48 = vmax.f32 %v3940_v2, 0.0  ;;  %v4481_v13 = vpack.c.bf16 %v4199_v58, %v4198_v19  ;;  %v11425_v2 = vld [vmem:[#allocation68_spill] sm:$0xff]  ;;  %v11450_v45 = vld [vmem:[#allocation109_spill] sm:$0xff] }
 0x344   :  { %v2161_v51 = vmul.f32 %v11418_v7, %v11417_v33  ;;  %v3938_v47 = vadd.f32 %v8840_v15, %v2146_v54  ;;  %v11421_v61 = vunpack.c.h.bf16 %v8974_v38  ;;  %v11423_v14 = vunpack.c.l.bf16 %v8974_v38  ;;  %v11428_v16 = vld [vmem:[#allocation52_spill] sm:$0xff]  ;;  %v11430_v54 = vld [vmem:[#allocation14_spill] sm:$0xff]  ;;  %v11432_v33 = vld [vmem:[#allocation65_spill] sm:$0xff] }
 0x345   :  { %v9168_v46 = vpop.permute.xlu1 %3095  ;;  %v9170_v59 = vpop.permute.xlu0 %3090  ;;  %6402 = vmatpush3.bf16.msra.mxu0 %v4482_v37  ;;  %v5843_v5 = vunpack.c.h.bf16 %v6231_v36  ;;  %v3952_v43 = vadd.f32 %v8937_v18, %v2160_v39  ;;  %v4211_v3 = vmax.f32 %v3955_v44, 0.0  ;;  %v4210_v21 = vmax.f32 %v3954_v12, 0.0  ;;  %v11431_v44 = vld [vmem:[#allocation245_spill] sm:$0xff]  ;;  %v11434_v39 = vld [vmem:[#allocation10_spill] sm:$0xff] }
 0x346   :  { %3405 = vperm.xlu1 %6642, %v2495_v62   ;;  %3400 = vperm.xlu0 %6641, %v2494_v53   ;;  %v2145_v60 = vmul.f32 %v11421_v61, %v11420_v30  ;;  %v2144_v15 = vmul.f32 %v11423_v14, %v11422_v50  ;;  %v3953_v34 = vadd.f32 %v8935_v56, %v2161_v51  ;;  %v5842_v17 = vunpack.c.l.bf16 %v6231_v36  ;;  %v2499_v62 = vld [vmem:[%s11006_s2 + $0x538] sm:$0xff]  ;;  %v2498_v53 = vld [vmem:[%s11006_s2 + $0x530] sm:$0xff]  ;;  %v11436_v30 = vld [vmem:[#allocation49_spill] sm:$0xff] }
 0x347   :  { %6403 = vmatprep.subr.bf16.mxu0 %v4489_v6  ;;  %v4488_v22 = vpack.c.bf16 %v4213_v35, %v4212_v23  ;;  %v2159_v40 = vmul.f32 %v5847_v10, %v11424_v26  ;;  %v2158_v58 = vmul.f32 %v5846_v8, %v11425_v2  ;;  %v4195_v18 = vmax.f32 %v3939_v11, 0.0  ;;  %v11433_v51 = vld [vmem:[#allocation66_spill] sm:$0xff] }
 0x348   :  { %v3937_v38 = vadd.f32 %v8814_v28, %v2145_v60  ;;  %v3936_v56 = vadd.f32 %v8816_v1, %v2144_v15  ;;  %v4194_v19 = vmax.f32 %v3938_v47, 0.0  ;;  %v4480_v37 = vpack.c.bf16 %v4197_v49, %v4196_v48  ;;  %v11438_v50 = vld [vmem:[#allocation50_spill] sm:$0xff] }
 0x349   :  { %v9192_v24 = vpop.permute.xlu1 %3105  ;;  %v9194_v0 = vpop.permute.xlu0 %3100  ;;  %6404 = vmatpush3.bf16.msra.mxu0 %v4481_v13  ;;  %v5810_v63 = vunpack.c.l.bf16 %v8964_v20  ;;  %v11427_v28 = vunpack.c.h.bf16 %v8969_v41  ;;  %v11429_v1 = vunpack.c.l.bf16 %v8969_v41  ;;  %v3951_v10 = vadd.f32 %v11430_v54, %v2159_v40  ;;  %v11435_v41 = vld [vmem:[#allocation253_spill] sm:$0xff]  ;;  %v11439_v15 = vld [vmem:[#allocation254_spill] sm:$0xff] }
 0x34a   :  { %3415 = vperm.xlu1 %6642, %v2497_v31   ;;  %3410 = vperm.xlu0 %6641, %v2496_v57   ;;  %v3950_v36 = vadd.f32 %v11431_v44, %v2158_v58  ;;  %v4209_v12 = vmax.f32 %v3953_v34, 0.0  ;;  %v4208_v35 = vmax.f32 %v3952_v43, 0.0  ;;  %v4487_v8 = vpack.c.bf16 %v4211_v3, %v4210_v21  ;;  %v2501_v31 = vld [vmem:[%s11006_s2 + $0x548] sm:$0xff]  ;;  %v2500_v57 = vld [vmem:[%s11006_s2 + $0x540] sm:$0xff] }
 0x34b   :  { %6405 = vmatprep.subr.bf16.mxu0 %v4488_v22  ;;  %v2143_v32 = vmul.f32 %v11427_v28, %v11426_v52  ;;  %v2142_v27 = vmul.f32 %v11429_v1, %v11428_v16  ;;  %v2157_v7 = vmul.f32 %v5843_v5, %v11432_v33  ;;  %v2156_v29 = vmul.f32 %v5842_v17, %v11433_v51  ;;  %v11440_v34 = vld [vmem:[#allocation13_spill] sm:$0xff] }
 0x34c   :  { %v4193_v49 = vmax.f32 %v3937_v38, 0.0  ;;  %v4192_v48 = vmax.f32 %v3936_v56, 0.0  ;;  %v4479_v13 = vpack.c.bf16 %v4195_v18, %v4194_v19  ;;  %v11437_v61 = vunpack.c.h.bf16 %v8964_v20  ;;  %v11441_v40 = vld [vmem:[#allocation9_spill] sm:$0xff]  ;;  %v2503_v19 = vld [vmem:[%s11006_s2 + $0x558] sm:$0xff] }
 0x34d   :  { %v9215_v23 = vpop.permute.xlu1 %3115  ;;  %v9217_v6 = vpop.permute.xlu0 %3110  ;;  %6406 = vmatpush3.bf16.msra.mxu0 %v4480_v37  ;;  %v3935_v11 = vadd.f32 %v11434_v39, %v2143_v32  ;;  %v3934_v47 = vadd.f32 %v11435_v41, %v2142_v27  ;;  %v2140_v14 = vmul.f32 %v5810_v63, %v11438_v50  ;;  %v3949_v5 = vadd.f32 %v11439_v15, %v2157_v7  ;;  %v11442_v20 = vld [vmem:[#allocation257_spill] sm:$0xff]  ;;  %v2502_v37 = vld [vmem:[%s11006_s2 + $0x550] sm:$0xff] }
 0x34e   :  { %3425 = vperm.xlu1 %6642, %v2499_v62   ;;  %3420 = vperm.xlu0 %6641, %v2498_v53   ;;  %v2141_v60 = vmul.f32 %v11437_v61, %v11436_v30  ;;  %v3948_v43 = vadd.f32 %v11440_v34, %v2156_v29  ;;  %v4207_v3 = vmax.f32 %v3951_v10, 0.0  ;;  %v4206_v21 = vmax.f32 %v3950_v36, 0.0  ;;  %v2505_v27 = vld [vmem:[%s11006_s2 + $0x568] sm:$0xff]  ;;  %v2504_v54 = vld [vmem:[%s11006_s2 + $0x560] sm:$0xff] }
 0x34f   :  { %6407 = vmatprep.subr.bf16.mxu0 %v4487_v8  ;;  %v4486_v26 = vpack.c.bf16 %v4209_v12, %v4208_v35  ;;  %v3932_v58 = vadd.f32 %v11442_v20, %v2140_v14  ;;  %v4191_v38 = vmax.f32 %v3935_v11, 0.0  ;;  %v4190_v56 = vmax.f32 %v3934_v47, 0.0  ;;  %v2507_v35 = vld [vmem:[%s11006_s2 + $0x578] sm:$0xff]  ;;  %v2506_v8 = vld [vmem:[%s11006_s2 + $0x570] sm:$0xff]  ;;  %v4397_v29 = vld [vmem:[%s11007_s3 + $0x88] sm:$0xff] }
 0x350   :  { %v3933_v2 = vadd.f32 %v11441_v40, %v2141_v60  ;;  %v4478_v18 = vpack.c.bf16 %v4193_v49, %v4192_v48  ;;  %v4205_v62 = vmax.f32 %v3949_v5, 0.0  ;;  %v4204_v53 = vmax.f32 %v3948_v43, 0.0  ;;  %v2509_v39 = vld [vmem:[%s11006_s2 + $0x588] sm:$0xff]  ;;  %v2508_v11 = vld [vmem:[%s11006_s2 + $0x580] sm:$0xff]  ;;  %v2511_v48 = vld [vmem:[%s11006_s2 + $0x598] sm:$0xff] }
 0x351   :  { %v9235_v22 = vpop.permute.xlu1 %3125  ;;  %v9237_v17 = vpop.permute.xlu0 %3120  ;;  %6408 = vmatpush3.bf16.msra.mxu0 %v4479_v13  ;;  %v4485_v28 = vpack.c.bf16 %v4207_v3, %v4206_v21  ;;  %v4188_v16 = vmax.f32 %v3932_v58, 0.0  ;;  %v4477_v1 = vpack.c.bf16 %v4191_v38, %v4190_v56  ;;  %v5620_v33 = vcombine.low %v9113_v55, %v9125_v25  ;;  %v4405_v55 = vld [vmem:[%s11007_s3 + $0xc8] sm:$0xff]  ;;  %v2510_v13 = vld [vmem:[%s11006_s2 + $0x590] sm:$0xff]  ;;  %v2512_v60 = vld [vmem:[%s11006_s2 + $0x5a0] sm:$0xff] }
 0x352   :  { %3435 = vperm.xlu1 %6642, %v2501_v31   ;;  %3430 = vperm.xlu0 %6641, %v2500_v57   ;;  %v4189_v32 = vmax.f32 %v3933_v2, 0.0  ;;  %v4484_v36 = vpack.c.bf16 %v4205_v62, %v4204_v53  ;;  %v5635_v25 = vcombine.high %v4397_v29, %v4405_v55  ;;  %v5634_v41 = vcombine.low %v4397_v29, %v4405_v55  ;;  %v4413_v30 = vld [vmem:[%s11007_s3 + $0x108] sm:$0xff]  ;;  %v9318_v43 = vld [vmem:[%s11004_s0 + $0x180] sm:$0xff]   ;;  %v9328_v21 = vld [vmem:[%s11004_s0 + $0x190] sm:$0xff]  }
 0x353   :  { %6409 = vmatprep.subr.bf16.mxu0 %v4486_v26  ;;  %v2513_v61 = vld [vmem:[%s11006_s2 + $0x5a8] sm:$0xff]  ;;  %v2515_v26 = vld [vmem:[%s11006_s2 + $0x5b8] sm:$0xff]  ;;  %v2514_v40 = vld [vmem:[%s11006_s2 + $0x5b0] sm:$0xff] }
 0x354   :  { %v4476_v12 = vpack.c.bf16 %v4189_v32, %v4188_v16  ;;  %4997 = vmatprep.mubr.bf16.mxu1 %v5635_v25  ;;  %v4421_v50 = vld [vmem:[%s11007_s3 + $0x148] sm:$0xff]  ;;  %v9339_v2 = vld [vmem:[%s11004_s0 + $0x198] sm:$0xff]   ;;  %v9344_v20 = vld [vmem:[%s11004_s0 + $0x1a0] sm:$0xff]  }
 0x355   :  { %v9247_v63 = vpop.permute.xlu1 %3135  ;;  %v9249_v52 = vpop.permute.xlu0 %3130  ;;  %6410 = vmatpush3.bf16.msra.mxu0 %v4478_v18  ;;  %4998 = vmatmul.mubr.bf16.gmra.mxu1 %v5634_v41  ;;  %v5651_v14 = vcombine.high %v4413_v30, %v4421_v50  ;;  %v5650_v15 = vcombine.low %v4413_v30, %v4421_v50  ;;  %v9323_v3 = vld [vmem:[%s11004_s0 + $0x188] sm:$0xff]   ;;  %v9354_v38 = vld [vmem:[%s11004_s0 + $0x1b0] sm:$0xff]   ;;  %v6246_v16 = vld [vmem:[%s11004_s0 + $0x1b8] sm:$0xff]  }
 0x356   :  { %3445 = vperm.xlu1 %6642, %v2503_v19   ;;  %3440 = vperm.xlu0 %6641, %v2502_v37   ;;  %v9349_v58 = vld [vmem:[%s11004_s0 + $0x1a8] sm:$0xff]   ;;  %v4398_v19 = vld [vmem:[%s11007_s3 + $0x90] sm:$0xff]  ;;  %v9400_v25 = vld [vmem:[%s11004_s0 + $0x1d8] sm:$0xff]  }
 0x357   :  { %6411 = vmatprep.subr.bf16.mxu0 %v4485_v28  ;;  %5005 = vmatprep.mubr.bf16.mxu1 %v5651_v14  ;;  %v4406_v37 = vld [vmem:[%s11007_s3 + $0xd0] sm:$0xff]  ;;  %v9395_v55 = vld [vmem:[%s11004_s0 + $0x1c8] sm:$0xff]   ;;  %v5895_v30 = vunpack.c.h.bf16 %v9349_v58  ;;  %v9407_v50 = vld [vmem:[%s11004_s0 + $0x1e0] sm:$0xff]  }
 0x358   :  { %v5636_v29 = vcombine.low %v4398_v19, %v4406_v37  ;;  %v6254_v14 = vld [vmem:[%s11004_s0 + $0x1f8] sm:$0xff]  }
 0x359   :  { %v9257_v10 = vpop.permute.xlu1 %3145  ;;  %v9259_v44 = vpop.permute.xlu0 %3140  ;;  %6412 = vmatpush3.bf16.msra.mxu0 %v4477_v1  ;;  %v6253_v1 = vld [vmem:[%s11004_s0 + $0x1f0] sm:$0xff]   ;;  %v2523_v53 = vld [vmem:[%s11006_s2 + $0x5f8] sm:$0xff] }
 0x35a   :  { %3455 = vperm.xlu1 %6642, %v2505_v27   ;;  %3450 = vperm.xlu0 %6641, %v2504_v54   ;;  %v4429_v27 = vld [vmem:[%s11007_s3 + $0x188] sm:$0xff]  ;;  %v11446_v28 = vld [vmem:[#allocation91_spill] sm:$0xff] }
 0x35b   :  { %6413 = vmatprep.subr.bf16.mxu0 %v4484_v36  ;;  %v2183_v62 = vmul.f32 %v5895_v30, %v11446_v28  ;;  %v11447_v54 = vld [vmem:[#allocation95_spill] sm:$0xff]  ;;  %v11451_v30 = vld [vmem:[#allocation110_spill] sm:$0xff] }
 0x35d   :  { %v9269_v7 = vpop.permute.xlu1 %3155  ;;  %v9271_v51 = vpop.permute.xlu0 %3150  ;;  %6414 = vmatpush3.bf16.msra.mxu0 %v4476_v12  ;;  %5006 = vmatmul.mubr.bf16.gmra.mxu1 %v5650_v15  ;;  %v2522_v12 = vld [vmem:[%s11006_s2 + $0x5f0] sm:$0xff] }
 0x35e   :  { %11443 = vst [vmem:[#allocation256_spill] sm:$0xff] %v9269_v7  ;;  %11444 = vst [vmem:[#allocation251_spill] sm:$0xff] %v9271_v51  ;;  %3465 = vperm.xlu1 %6642, %v2507_v35   ;;  %3460 = vperm.xlu0 %6641, %v2506_v8   ;;  %v2516_v35 = vld [vmem:[%s11006_s2 + $0x5c0] sm:$0xff]  ;;  %v5637_v8 = vcombine.high %v4398_v19, %v4406_v37  ;;  %v5899_v19 = vunpack.c.h.bf16 %v9354_v38  ;;  %v6252_v37 = vld [vmem:[%s11004_s0 + $0x1e8] sm:$0xff]  }
 0x35f   :  { %v11456_v51 = vld [vmem:[#allocation107_spill] sm:$0xff] }
 0x360   :  { %5055 = vmatmul.mubr.bf16.vlgmr.msra.gmra.mxu0 %v5620_v33  ;;  %v4437_v33 = vld [vmem:[%s11007_s3 + $0x1c8] sm:$0xff] }
 0x361   :  { %v9285_v47 = vpop.permute.xlu1 %3165  ;;  %v9287_v49 = vpop.permute.xlu0 %3160  ;;  %v5667_v41 = vcombine.high %v4429_v27, %v4437_v33  ;;  %5062 = vmatprep.mubr.bf16.mxu0 %v5637_v8  ;;  %v5927_v8 = vunpack.c.h.bf16 %v6252_v37 }
 0x362   :  { %11445 = vst [vmem:[#allocation252_spill] sm:$0xff] %v9287_v49  ;;  %3475 = vperm.xlu1 %6642, %v2509_v39   ;;  %3470 = vperm.xlu0 %6641, %v2508_v11   ;;  %v11448_v39 = vld [vmem:[#allocation96_spill] sm:$0xff]  ;;  %v5918_v49 = vunpack.c.l.bf16 %v9400_v25 }
 0x363   :  { %5013 = vmatprep.mubr.bf16.mxu1 %v5667_v41  ;;  %v4422_v41 = vld [vmem:[%s11007_s3 + $0x150] sm:$0xff]  ;;  %v2199_v7 = vmul.f32 %v5927_v8, %v11456_v51  ;;  %v2517_v51 = vld [vmem:[%s11006_s2 + $0x5c8] sm:$0xff] }
 0x365   :  { %v9295_v31 = vpop.permute.xlu1 %3175  ;;  %v9297_v57 = vpop.permute.xlu0 %3170 }
 0x366   :  { %3485 = vperm.xlu1 %6642, %v2511_v48   ;;  %3480 = vperm.xlu0 %6641, %v2510_v13   ;;  %v5666_v48 = vcombine.low %v4429_v27, %v4437_v33  ;;  %v5930_v27 = vunpack.c.l.bf16 %v6253_v1  ;;  %v5898_v33 = vunpack.c.l.bf16 %v9354_v38  ;;  %v5922_v38 = vunpack.c.l.bf16 %v9407_v50 }
 0x368   :  { %5063 = vmatmul.mubr.bf16.gmra.mxu0 %v5636_v29  ;;  %5014 = vmatmul.mubr.bf16.gmra.mxu1 %v5666_v48  ;;  %v4414_v29 = vld [vmem:[%s11007_s3 + $0x110] sm:$0xff]  ;;  %v5926_v48 = vunpack.c.l.bf16 %v6252_v37 }
 0x369   :  { %v9311_v5 = vpop.permute.xlu1 %3185  ;;  %v9313_v34 = vpop.permute.xlu0 %3180  ;;  %v5653_v37 = vcombine.high %v4414_v29, %v4422_v41 }
 0x36a   :  { %3495 = vperm.xlu1 %6642, %v2513_v61   ;;  %3490 = vperm.xlu0 %6641, %v2512_v60   ;;  %v5903_v61 = vunpack.c.h.bf16 %v6246_v16  ;;  %v5902_v60 = vunpack.c.l.bf16 %v6246_v16  ;;  %v5931_v16 = vunpack.c.h.bf16 %v6253_v1  ;;  %v5923_v1 = vunpack.c.h.bf16 %v9407_v50  ;;  %v11449_v50 = vld [vmem:[#allocation92_spill] sm:$0xff] }
 0x36b   :  { %5070 = vmatprep.mubr.bf16.mxu0 %v5653_v37  ;;  %v3975_v37 = vadd.f32 %v9235_v22, %v2183_v62  ;;  %v11463_v22 = vunpack.c.h.bf16 %v9344_v20  ;;  %v11464_v62 = vld [vmem:[#allocation90_spill] sm:$0xff] }
 0x36c   :  { %v2187_v32 = vmul.f32 %v5903_v61, %v11447_v54  ;;  %v2186_v36 = vmul.f32 %v5902_v60, %v11448_v39  ;;  %v2201_v28 = vmul.f32 %v5931_v16, %v11450_v45  ;;  %v2200_v54 = vmul.f32 %v5930_v27, %v11451_v30  ;;  %v9448_v39 = vld [vmem:[%s11007_s3 + $0x18] sm:$0xff]  ;;  %v2521_v45 = vld [vmem:[%s11006_s2 + $0x5e8] sm:$0xff] }
 0x36d   :  { %v9356_v56 = vpop.permute.xlu1 %3195  ;;  %v9358_v18 = vpop.permute.xlu0 %3190  ;;  %v5652_v16 = vcombine.low %v4414_v29, %v4422_v41  ;;  %v11452_v27 = vld [vmem:[#allocation93_spill] sm:$0xff]  ;;  %v11455_v30 = vld [vmem:[#allocation94_spill] sm:$0xff] }
 0x36e   :  { %3505 = vperm.xlu1 %6642, %v2515_v26   ;;  %3500 = vperm.xlu0 %6641, %v2514_v40   ;;  %v5894_v40 = vunpack.c.l.bf16 %v9349_v58  ;;  %v2520_v58 = vld [vmem:[%s11006_s2 + $0x5e0] sm:$0xff]  ;;  %v3979_v61 = vadd.f32 %v9257_v10, %v2187_v32  ;;  %v3978_v60 = vadd.f32 %v9259_v44, %v2186_v36  ;;  %v11453_v10 = vld [vmem:[#allocation111_spill] sm:$0xff]  ;;  %v2184_v42 = vmul.f32 %v5898_v33, %v11455_v30 }
 0x36f   :  { %v11454_v44 = vld [vmem:[#allocation112_spill] sm:$0xff] }
 0x370   :  { %v4235_v33 = vmax.f32 %v3979_v61, 0.0  ;;  %v4234_v30 = vmax.f32 %v3978_v60, 0.0  ;;  %5071 = vmatmul.mubr.bf16.gmra.mxu0 %v5652_v16 }
 0x371   :  { %v9412_v15 = vpop.permute.xlu1 %3205  ;;  %v9414_v26 = vpop.permute.xlu0 %3200 }
 0x372   :  { %3540 = vperm.xlu1 %6642, %v2522_v12   ;;  %3510 = vperm.xlu0 %6641, %v2516_v35   ;;  %v5935_v12 = vunpack.c.h.bf16 %v6254_v14  ;;  %v5934_v35 = vunpack.c.l.bf16 %v6254_v14  ;;  %v2182_v14 = vmul.f32 %v5894_v40, %v11449_v50  ;;  %v2518_v40 = vld [vmem:[%s11006_s2 + $0x5d0] sm:$0xff]  ;;  %v4499_v16 = vpack.c.bf16 %v4235_v33, %v4234_v30 }
 0x374   :  { %v2203_v32 = vmul.f32 %v5935_v12, %v11453_v10  ;;  %v2202_v36 = vmul.f32 %v5934_v35, %v11454_v44  ;;  %v11457_v35 = vld [vmem:[#allocation108_spill] sm:$0xff]  ;;  %v3976_v44 = vadd.f32 %v9249_v52, %v2184_v42  ;;  %v9485_v42 = vld [vmem:[%s11004_s0 + $0x1d0] sm:$0xff]   ;;  %v3991_v52 = vadd.f32 %v9412_v15, %v2199_v7 }
 0x375   :  { %v3216_v13 = vpop.permute.xlu1 %3215  ;;  %v3211_v11 = vpop.permute.xlu0 %3210  ;;  %v2198_v10 = vmul.f32 %v5926_v48, %v11457_v35  ;;  %v3974_v7 = vadd.f32 %v9237_v17, %v2182_v14  ;;  %v11465_v14 = vunpack.c.l.bf16 %v9344_v20  ;;  %v11468_v20 = vld [vmem:[#allocation103_spill] sm:$0xff] }
 0x376   :  { %3530 = vperm.xlu1 %6642, %v2520_v58   ;;  %3545 = vperm.xlu0 %6641, %v2523_v53   ;;  %v9461_v53 = vld [vmem:[%s11007_s3 + $0x58] sm:$0xff]  ;;  %v2185_v58 = vmul.f32 %v5899_v19, %v11452_v27  ;;  %v3993_v4 = vadd.f32 %v3216_v13, %v2201_v28  ;;  %v3992_v29 = vadd.f32 %v3211_v11, %v2200_v54  ;;  %v11459_v13 = vld [vmem:[#allocation106_spill] sm:$0xff]  ;;  %v4247_v35 = vmax.f32 %v3991_v52, 0.0 }
 0x377   :  { %v5623_v50 = vcombine.high %v9448_v39, %v9461_v53  ;;  %v2519_v11 = vld [vmem:[%s11006_s2 + $0x5d8] sm:$0xff]  ;;  %v2196_v8 = vmul.f32 %v5922_v38, %v11459_v13  ;;  %v3990_v54 = vadd.f32 %v9414_v26, %v2198_v10  ;;  %v4438_v38 = vld [vmem:[%s11007_s3 + $0x1d0] sm:$0xff]  ;;  %v4232_v26 = vmax.f32 %v3976_v44, 0.0 }
 0x378   :  { %v3977_v19 = vadd.f32 %v9247_v63, %v2185_v58  ;;  %v11458_v63 = vld [vmem:[#allocation105_spill] sm:$0xff]  ;;  %v4249_v61 = vmax.f32 %v3993_v4, 0.0  ;;  %v4248_v60 = vmax.f32 %v3992_v29, 0.0  ;;  %v2555_v58 = vld [vmem:[%s11006_s2 + $0x6f8] sm:$0xff] }
 0x379   :  { %v3226_v41 = vpop.permute.xlu1 %3225  ;;  %v3221_v9 = vpop.permute.xlu0 %3220  ;;  %5119 = vmatprep.mubr.bf16.mxu1 %v5623_v50  ;;  %v11462_v29 = vld [vmem:[#allocation89_spill] sm:$0xff]  ;;  %v4246_v10 = vmax.f32 %v3990_v54, 0.0  ;;  %v11470_v13 = vld [vmem:[#allocation104_spill] sm:$0xff] }
 0x37a   :  { %v3995_v27 = vadd.f32 %v3226_v41, %v2203_v32  ;;  %v3994_v12 = vadd.f32 %v3221_v9, %v2202_v36  ;;  %3520 = vperm.xlu1 %6642, %v2518_v40   ;;  %3535 = vperm.xlu0 %6641, %v2521_v45   ;;  %v2197_v9 = vmul.f32 %v5923_v1, %v11458_v63  ;;  %v4430_v1 = vld [vmem:[%s11007_s3 + $0x190] sm:$0xff]  ;;  %v4233_v15 = vmax.f32 %v3977_v19, 0.0  ;;  %v11473_v54 = vld [vmem:[#allocation88_spill] sm:$0xff] }
 0x37b   :  { %v2554_v32 = vld [vmem:[%s11006_s2 + $0x6f0] sm:$0xff]  ;;  %v5669_v36 = vcombine.high %v4430_v1, %v4438_v38  ;;  %v5668_v50 = vcombine.low %v4430_v1, %v4438_v38  ;;  %v2181_v17 = vmul.f32 %v11463_v22, %v11462_v29  ;;  %v2180_v41 = vmul.f32 %v11465_v14, %v11464_v62  ;;  %v2587_v62 = vld [vmem:[%s11006_s2 + $0x7f8] sm:$0xff] }
 0x37c   :  { %v4251_v28 = vmax.f32 %v3995_v27, 0.0  ;;  %v4250_v48 = vmax.f32 %v3994_v12, 0.0  ;;  %v5915_v19 = vunpack.c.h.bf16 %v9485_v42  ;;  %v3989_v27 = vadd.f32 %v9356_v56, %v2197_v9  ;;  %v2586_v14 = vld [vmem:[%s11006_s2 + $0x7f0] sm:$0xff] }
 0x37d   :  { %v9489_v40 = vpop.permute.xlu1 %3235  ;;  %v9491_v45 = vpop.permute.xlu0 %3230  ;;  %v3988_v12 = vadd.f32 %v9358_v18, %v2196_v8  ;;  %v4506_v30 = vpack.c.bf16 %v4249_v61, %v4248_v60  ;;  %5078 = vmatprep.mubr.bf16.mxu0 %v5669_v36  ;;  %v2194_v56 = vmul.f32 %v5918_v49, %v11470_v13  ;;  %v3973_v9 = vadd.f32 %v9215_v23, %v2181_v17  ;;  %v11471_v49 = vld [vmem:[#allocation87_spill] sm:$0xff]  ;;  %v11475_v60 = vld [vmem:[#allocation101_spill] sm:$0xff] }
 0x37e   :  { %11460 = vst [vmem:[#allocation11_spill] sm:$0xff] %v9489_v40  ;;  %11461 = vst [vmem:[#allocation12_spill] sm:$0xff] %v9491_v45  ;;  %3515 = vperm.xlu1 %6642, %v2517_v51   ;;  %3525 = vperm.xlu0 %6641, %v2519_v11   ;;  %v4507_v4 = vpack.c.bf16 %v4251_v28, %v4250_v48  ;;  %v5914_v51 = vunpack.c.l.bf16 %v9485_v42  ;;  %v11469_v11 = vunpack.c.h.bf16 %v9400_v25  ;;  %v4231_v8 = vmax.f32 %v3975_v37, 0.0  ;;  %v2539_v42 = vld [vmem:[%s11006_s2 + $0x678] sm:$0xff]  ;;  %v2538_v25 = vld [vmem:[%s11006_s2 + $0x670] sm:$0xff] }
 0x37f   :  { %v3972_v18 = vadd.f32 %v9217_v6, %v2180_v41  ;;  %v4230_v28 = vmax.f32 %v3974_v7, 0.0  ;;  %v4498_v48 = vpack.c.bf16 %v4233_v15, %v4232_v26  ;;  %5079 = vmatmul.mubr.bf16.gmra.mxu0 %v5668_v50  ;;  %v11472_v23 = vunpack.c.h.bf16 %v9339_v2  ;;  %v6247_v37 = vld [vmem:[%s11004_s0 + $0x1c0] sm:$0xff]   ;;  %v2533_v41 = vld [vmem:[%s11006_s2 + $0x648] sm:$0xff]  ;;  %v11511_v45 = vld [vmem:[#allocation123_spill] sm:$0xff] }
 0x380   :  { %6439 = vmatprep.subr.bf16.mxu1 %v4507_v4  ;;  %v2195_v63 = vmul.f32 %v11469_v11, %v11468_v20  ;;  %v11474_v6 = vunpack.c.l.bf16 %v9339_v2  ;;  %v2193_v1 = vmul.f32 %v5915_v19, %v11475_v60  ;;  %v3986_v7 = vadd.f32 %v9313_v34, %v2194_v56  ;;  %v9552_v2 = vld [vmem:[%s11007_s3 + $0x20] sm:$0xff] }
 0x381   :  { %v9516_v44 = vpop.permute.xlu1 %3245  ;;  %v9518_v33 = vpop.permute.xlu0 %3240  ;;  %6440 = vmatpush3.bf16.msra.mxu1 %v4499_v16  ;;  %v2179_v52 = vmul.f32 %v11472_v23, %v11471_v49  ;;  %v4245_v15 = vmax.f32 %v3989_v27, 0.0  ;;  %v4244_v4 = vmax.f32 %v3988_v12, 0.0  ;;  %11476 = vst [vmem:[#allocation6_spill] sm:$0xff] %v9552_v2  ;;  %v4229_v29 = vmax.f32 %v3973_v9, 0.0  ;;  %v11481_v12 = vld [vmem:[#allocation86_spill] sm:$0xff] }
 0x382   :  { %11466 = vst [vmem:[#allocation243_spill] sm:$0xff] %v9516_v44  ;;  %11467 = vst [vmem:[#allocation244_spill] sm:$0xff] %v9518_v33  ;;  %3705 = vperm.xlu1 %6642, %v2555_v58   ;;  %3700 = vperm.xlu0 %6641, %v2554_v32   ;;  %v2178_v61 = vmul.f32 %v11474_v6, %v11473_v54  ;;  %v3987_v38 = vadd.f32 %v9311_v5, %v2195_v63  ;;  %v9557_v5 = vld [vmem:[%s11007_s3 + $0x60] sm:$0xff]  ;;  %v11478_v32 = vld [vmem:[#allocation102_spill] sm:$0xff]  ;;  %v4228_v22 = vmax.f32 %v3972_v18, 0.0 }
 0x383   :  { %6441 = vmatprep.subr.bf16.mxu1 %v4506_v30  ;;  %v4505_v58 = vpack.c.bf16 %v4247_v35, %v4246_v10  ;;  %11477 = vst [vmem:[#allocation8_spill] sm:$0xff] %v9557_v5  ;;  %v2192_v34 = vmul.f32 %v5914_v51, %v11478_v32  ;;  %v3971_v36 = vadd.f32 %v9192_v24, %v2179_v52  ;;  %v11480_v19 = vunpack.c.h.bf16 %v9328_v21  ;;  %v2571_v54 = vld [vmem:[%s11006_s2 + $0x778] sm:$0xff]  ;;  %v2570_v6 = vld [vmem:[%s11006_s2 + $0x770] sm:$0xff] }
 0x384   :  { %v3970_v50 = vadd.f32 %v9194_v0, %v2178_v61  ;;  %v4497_v17 = vpack.c.bf16 %v4231_v8, %v4230_v28  ;;  %v5625_v24 = vcombine.high %v9552_v2, %v9557_v5  ;;  %v11479_v0 = vld [vmem:[#allocation85_spill] sm:$0xff]  ;;  %v11482_v35 = vunpack.c.l.bf16 %v9328_v21  ;;  %v11483_v8 = vld [vmem:[#allocation99_spill] sm:$0xff]  ;;  %v11517_v44 = vld [vmem:[#allocation140_spill] sm:$0xff] }
 0x385   :  { %v9545_v26 = vpop.permute.xlu1 %3255  ;;  %v9547_v16 = vpop.permute.xlu0 %3250  ;;  %6442 = vmatpush3.bf16.msra.mxu1 %v4498_v48  ;;  %v2177_v27 = vmul.f32 %v11480_v19, %v11479_v0  ;;  %v5907_v30 = vunpack.c.h.bf16 %v6247_v37  ;;  %v3985_v51 = vadd.f32 %v9295_v31, %v2193_v1  ;;  %v3984_v20 = vadd.f32 %v9297_v57, %v2192_v34  ;;  %v11485_v48 = vld [vmem:[#allocation100_spill] sm:$0xff]  ;;  %v11487_v61 = vld [vmem:[#allocation83_spill] sm:$0xff] }
 0x386   :  { %3625 = vperm.xlu1 %6642, %v2539_v42   ;;  %3620 = vperm.xlu0 %6641, %v2538_v25   ;;  %v2176_v10 = vmul.f32 %v11482_v35, %v11481_v12  ;;  %v4243_v11 = vmax.f32 %v3987_v38, 0.0  ;;  %v4242_v63 = vmax.f32 %v3986_v7, 0.0  ;;  %v4504_v9 = vpack.c.bf16 %v4245_v15, %v4244_v4  ;;  %v11489_v1 = vld [vmem:[#allocation84_spill] sm:$0xff]  ;;  %v11496_v35 = vld [vmem:[#allocation81_spill] sm:$0xff] }
 0x387   :  { %6443 = vmatprep.subr.bf16.mxu1 %v4505_v58  ;;  %5184 = vmatprep.mubr.bf16.mxu0 %v5625_v24  ;;  %v5906_v18 = vunpack.c.l.bf16 %v6247_v37  ;;  %v11484_v28 = vunpack.c.h.bf16 %v9395_v55  ;;  %v11486_v42 = vunpack.c.l.bf16 %v9395_v55  ;;  %v3969_v57 = vadd.f32 %v9168_v46, %v2177_v27  ;;  %v11491_v7 = vld [vmem:[#allocation252_spill] sm:$0xff]  ;;  %v2553_v27 = vld [vmem:[%s11006_s2 + $0x6e8] sm:$0xff] }
 0x388   :  { %v3968_v25 = vadd.f32 %v9170_v59, %v2176_v10  ;;  %v4227_v49 = vmax.f32 %v3971_v36, 0.0  ;;  %v4226_v23 = vmax.f32 %v3970_v50, 0.0  ;;  %v4496_v52 = vpack.c.bf16 %v4229_v29, %v4228_v22  ;;  %v11492_v50 = vld [vmem:[#allocation97_spill] sm:$0xff]  ;;  %v11493_v22 = vld [vmem:[#allocation98_spill] sm:$0xff] }
 0x389   :  { %v9580_v13 = vpop.permute.xlu1 %3265  ;;  %v9582_v56 = vpop.permute.xlu0 %3260  ;;  %6444 = vmatpush3.bf16.msra.mxu1 %v4497_v17  ;;  %v2191_v21 = vmul.f32 %v11484_v28, %v11483_v8  ;;  %v2190_v31 = vmul.f32 %v11486_v42, %v11485_v48  ;;  %v5874_v55 = vunpack.c.l.bf16 %v9318_v43  ;;  %v11488_v46 = vunpack.c.h.bf16 %v9323_v3  ;;  %v2552_v12 = vld [vmem:[%s11006_s2 + $0x6e0] sm:$0xff] }
 0x38a   :  { %3865 = vperm.xlu1 %6642, %v2587_v62   ;;  %3860 = vperm.xlu0 %6641, %v2586_v14   ;;  %v11490_v59 = vunpack.c.l.bf16 %v9323_v3  ;;  %v4241_v4 = vmax.f32 %v3985_v51, 0.0  ;;  %v4240_v58 = vmax.f32 %v3984_v20, 0.0  ;;  %v4503_v36 = vpack.c.bf16 %v4243_v11, %v4242_v63  ;;  %v11494_v62 = vld [vmem:[#allocation255_spill] sm:$0xff]  ;;  %v11498_v51 = vld [vmem:[#allocation82_spill] sm:$0xff]  ;;  %v11499_v11 = vld [vmem:[#allocation256_spill] sm:$0xff] }
 0x38b   :  { %6445 = vmatprep.subr.bf16.mxu1 %v4504_v9  ;;  %v2175_v60 = vmul.f32 %v11488_v46, %v11487_v61  ;;  %v3983_v37 = vadd.f32 %v9285_v47, %v2191_v21  ;;  %v3982_v15 = vadd.f32 %v11491_v7, %v2190_v31  ;;  %v2189_v29 = vmul.f32 %v5907_v30, %v11492_v50  ;;  %v11495_v3 = vld [vmem:[#allocation7_spill] sm:$0xff]  ;;  %v11501_v31 = vld [vmem:[#allocation246_spill] sm:$0xff] }
 0x38c   :  { %v2174_v38 = vmul.f32 %v11490_v59, %v11489_v1  ;;  %v2188_v17 = vmul.f32 %v5906_v18, %v11493_v22  ;;  %v4225_v24 = vmax.f32 %v3969_v57, 0.0  ;;  %v4224_v0 = vmax.f32 %v3968_v25, 0.0  ;;  %v11500_v9 = vld [vmem:[#allocation251_spill] sm:$0xff]  ;;  %v9646_v59 = vld [vmem:[%s11007_s3 + $0x28] sm:$0xff] }
 0x38d   :  { %v9607_v32 = vpop.permute.xlu1 %3275  ;;  %v9609_v34 = vpop.permute.xlu0 %3270  ;;  %6446 = vmatpush3.bf16.msra.mxu1 %v4496_v52  ;;  %v3967_v14 = vadd.f32 %v11494_v62, %v2175_v60  ;;  %v4495_v19 = vpack.c.bf16 %v4227_v49, %v4226_v23  ;;  %v11497_v10 = vunpack.c.h.bf16 %v9318_v43  ;;  %v2172_v20 = vmul.f32 %v5874_v55, %v11498_v51  ;;  %v11502_v43 = vld [vmem:[#allocation5_spill] sm:$0xff]  ;;  %11503 = vst [vmem:[#allocation249_spill] sm:$0xff] %v9646_v59  ;;  %v4407_v62 = vld [vmem:[%s11007_s3 + $0xd8] sm:$0xff] }
 0x38e   :  { %3785 = vperm.xlu1 %6642, %v2571_v54   ;;  %3780 = vperm.xlu0 %6641, %v2570_v6   ;;  %v3966_v47 = vadd.f32 %v11495_v3, %v2174_v38  ;;  %v3981_v63 = vadd.f32 %v11499_v11, %v2189_v29  ;;  %v3980_v18 = vadd.f32 %v11500_v9, %v2188_v17  ;;  %v4239_v8 = vmax.f32 %v3983_v37, 0.0  ;;  %v2537_v54 = vld [vmem:[%s11006_s2 + $0x668] sm:$0xff]  ;;  %v2536_v6 = vld [vmem:[%s11006_s2 + $0x660] sm:$0xff]  ;;  %v4399_v17 = vld [vmem:[%s11007_s3 + $0x98] sm:$0xff] }
 0x38f   :  { %6447 = vmatprep.subr.bf16.mxu1 %v4503_v36  ;;  %v2173_v30 = vmul.f32 %v11497_v10, %v11496_v35  ;;  %v4238_v28 = vmax.f32 %v3982_v15, 0.0  ;;  %v4502_v42 = vpack.c.bf16 %v4241_v4, %v4240_v58  ;;  %v3964_v25 = vadd.f32 %v11502_v43, %v2172_v20  ;;  %v2585_v15 = vld [vmem:[%s11006_s2 + $0x7e8] sm:$0xff]  ;;  %v2584_v4 = vld [vmem:[%s11006_s2 + $0x7e0] sm:$0xff]  ;;  %v2550_v35 = vld [vmem:[%s11006_s2 + $0x6d0] sm:$0xff] }
 0x390   :  { %v4223_v49 = vmax.f32 %v3967_v14, 0.0  ;;  %v4222_v23 = vmax.f32 %v3966_v47, 0.0  ;;  %v4494_v52 = vpack.c.bf16 %v4225_v24, %v4224_v0  ;;  %v4237_v55 = vmax.f32 %v3981_v63, 0.0  ;;  %v9657_v58 = vld [vmem:[%s11007_s3 + $0x68] sm:$0xff]  ;;  %v2568_v47 = vld [vmem:[%s11006_s2 + $0x760] sm:$0xff]  ;;  %v2535_v51 = vld [vmem:[%s11006_s2 + $0x658] sm:$0xff] }
 0x391   :  { %v9627_v21 = vpop.permute.xlu1 %3285  ;;  %v9629_v48 = vpop.permute.xlu0 %3280  ;;  %6448 = vmatpush3.bf16.msra.mxu1 %v4495_v19  ;;  %v3965_v57 = vadd.f32 %v11501_v31, %v2173_v30  ;;  %v4236_v61 = vmax.f32 %v3980_v18, 0.0  ;;  %v4501_v1 = vpack.c.bf16 %v4239_v8, %v4238_v28  ;;  %v4220_v37 = vmax.f32 %v3964_v25, 0.0  ;;  %11504 = vst [vmem:[#allocation250_spill] sm:$0xff] %v9657_v58  ;;  %v2569_v3 = vld [vmem:[%s11006_s2 + $0x768] sm:$0xff]  ;;  %v4423_v30 = vld [vmem:[%s11007_s3 + $0x158] sm:$0xff]  ;;  %v2534_v20 = vld [vmem:[%s11006_s2 + $0x650] sm:$0xff] }
 0x392   :  { %3695 = vperm.xlu1 %6642, %v2553_v27   ;;  %3690 = vperm.xlu0 %6641, %v2552_v12   ;;  %v4493_v7 = vpack.c.bf16 %v4223_v49, %v4222_v23  ;;  %v5622_v24 = vcombine.low %v9448_v39, %v9461_v53  ;;  %v5639_v27 = vcombine.high %v4399_v17, %v4407_v62  ;;  %v2551_v12 = vld [vmem:[%s11006_s2 + $0x6d8] sm:$0xff]  ;;  %v2582_v28 = vld [vmem:[%s11006_s2 + $0x7d0] sm:$0xff] }
 0x393   :  { %6449 = vmatprep.subr.bf16.mxu1 %v4502_v42  ;;  %v4221_v38 = vmax.f32 %v3965_v57, 0.0  ;;  %v4500_v22 = vpack.c.bf16 %v4237_v55, %v4236_v61  ;;  %v4415_v53 = vld [vmem:[%s11007_s3 + $0x118] sm:$0xff]  ;;  %v5638_v11 = vcombine.low %v4399_v17, %v4407_v62  ;;  %v2566_v49 = vld [vmem:[%s11006_s2 + $0x750] sm:$0xff]  ;;  %v5627_v5 = vcombine.high %v9646_v59, %v9657_v58  ;;  %v2581_v58 = vld [vmem:[%s11006_s2 + $0x7c8] sm:$0xff] }
 0x394   :  { %v5655_v18 = vcombine.high %v4415_v53, %v4423_v30  ;;  %v2583_v8 = vld [vmem:[%s11006_s2 + $0x7d8] sm:$0xff]  ;;  %v5654_v23 = vcombine.low %v4415_v53, %v4423_v30 }
 0x395   :  { %v9639_v46 = vpop.permute.xlu1 %3295  ;;  %v9641_v60 = vpop.permute.xlu0 %3290  ;;  %6450 = vmatpush3.bf16.msra.mxu1 %v4494_v52  ;;  %v4492_v14 = vpack.c.bf16 %v4221_v38, %v4220_v37  ;;  %v9722_v57 = vld [vmem:[%s11007_s3 + $0x198] sm:$0xff]  ;;  %v9738_v52 = vld [vmem:[%s11004_s0 + $0x200] sm:$0xff]  }
 0x396   :  { %3615 = vperm.xlu1 %6642, %v2537_v54   ;;  %3610 = vperm.xlu0 %6641, %v2536_v6   ;;  %v9727_v43 = vld [vmem:[%s11007_s3 + $0x1d8] sm:$0xff]  ;;  %v9743_v54 = vld [vmem:[%s11004_s0 + $0x208] sm:$0xff]  }
 0x397   :  { %6451 = vmatprep.subr.bf16.mxu1 %v4501_v1  ;;  %v2567_v25 = vld [vmem:[%s11006_s2 + $0x758] sm:$0xff]  ;;  %v5671_v61 = vcombine.high %v9722_v57, %v9727_v43  ;;  %v9754_v1 = vld [vmem:[%s11004_s0 + $0x210] sm:$0xff]   ;;  %v5670_v17 = vcombine.low %v9722_v57, %v9727_v43  ;;  %v11509_v57 = vld [vmem:[#allocation141_spill] sm:$0xff] }
 0x398   :  { %v9759_v38 = vld [vmem:[%s11004_s0 + $0x218] sm:$0xff]  }
 0x399   :  { %v9661_v50 = vpop.permute.xlu1 %3305  ;;  %v9663_v29 = vpop.permute.xlu0 %3300  ;;  %6452 = vmatpush3.bf16.msra.mxu1 %v4493_v7  ;;  %v6262_v37 = vld [vmem:[%s11004_s0 + $0x238] sm:$0xff]   ;;  %v9767_v7 = vld [vmem:[%s11004_s0 + $0x220] sm:$0xff]  }
 0x39a   :  { %3855 = vperm.xlu1 %6642, %v2585_v15   ;;  %3850 = vperm.xlu0 %6641, %v2584_v4   ;;  %v2549_v15 = vld [vmem:[%s11006_s2 + $0x6c8] sm:$0xff]  ;;  %v2548_v4 = vld [vmem:[%s11006_s2 + $0x6c0] sm:$0xff]  ;;  %v6270_v53 = vld [vmem:[%s11004_s0 + $0x278] sm:$0xff]  }
 0x39b   :  { %6453 = vmatprep.subr.bf16.mxu1 %v4500_v22  ;;  %v2532_v22 = vld [vmem:[%s11006_s2 + $0x640] sm:$0xff]  ;;  %v5998_v62 = vunpack.c.l.bf16 %v6270_v53  ;;  %v11513_v59 = vld [vmem:[#allocation143_spill] sm:$0xff] }
 0x39d   :  { %v9679_v0 = vpop.permute.xlu1 %3315  ;;  %v9681_v19 = vpop.permute.xlu0 %3310  ;;  %6454 = vmatpush3.bf16.msra.mxu1 %v4492_v14  ;;  %v9781_v14 = vld [vmem:[%s11004_s0 + $0x228] sm:$0xff]  }
 0x39e   :  { %11505 = vst [vmem:[#allocation241_spill] sm:$0xff] %v9679_v0  ;;  %11506 = vst [vmem:[#allocation242_spill] sm:$0xff] %v9681_v19  ;;  %3775 = vperm.xlu1 %6642, %v2569_v3   ;;  %3770 = vperm.xlu0 %6641, %v2568_v47   ;;  %v6261_v3 = vld [vmem:[%s11004_s0 + $0x230] sm:$0xff]   ;;  %v5958_v2 = vunpack.c.l.bf16 %v9781_v14 }
 0x39f   :  { %v6269_v47 = vld [vmem:[%s11004_s0 + $0x270] sm:$0xff]  }
 0x3a0   :  { %5120 = vmatmul.mubr.bf16.vlgmr.msra.gmra.mxu1 %v5622_v24  ;;  %v5994_v36 = vunpack.c.l.bf16 %v6269_v47 }
 0x3a1   :  { %v9689_v10 = vpop.permute.xlu1 %3325  ;;  %v9691_v39 = vpop.permute.xlu0 %3320  ;;  %5127 = vmatprep.mubr.bf16.mxu1 %v5639_v27  ;;  %v11507_v27 = vld [vmem:[#allocation127_spill] sm:$0xff] }
 0x3a2   :  { %3685 = vperm.xlu1 %6642, %v2551_v12   ;;  %3680 = vperm.xlu0 %6641, %v2550_v35   ;;  %v5967_v12 = vunpack.c.h.bf16 %v6262_v37  ;;  %v5966_v35 = vunpack.c.l.bf16 %v6262_v37  ;;  %v5995_v37 = vunpack.c.h.bf16 %v6269_v47 }
 0x3a4   :  { %v2219_v24 = vmul.f32 %v5967_v12, %v11507_v27  ;;  %v2233_v43 = vmul.f32 %v5995_v37, %v11509_v57  ;;  %v11510_v27 = vld [vmem:[#allocation142_spill] sm:$0xff]  ;;  %v11514_v57 = vld [vmem:[#allocation144_spill] sm:$0xff] }
 0x3a5   :  { %v9705_v63 = vpop.permute.xlu1 %3335  ;;  %v9707_v9 = vpop.permute.xlu0 %3330  ;;  %v2232_v12 = vmul.f32 %v5994_v36, %v11510_v27  ;;  %v2234_v36 = vmul.f32 %v5998_v62, %v11514_v57  ;;  %v11523_v57 = vld [vmem:[#allocation121_spill] sm:$0xff] }
 0x3a6   :  { %3605 = vperm.xlu1 %6642, %v2535_v51   ;;  %3600 = vperm.xlu0 %6641, %v2534_v20  }
 0x3a8   :  { %5128 = vmatmul.mubr.bf16.gmra.mxu1 %v5638_v11  ;;  %v11508_v11 = vld [vmem:[#allocation128_spill] sm:$0xff] }
 0x3a9   :  { %v9715_v42 = vpop.permute.xlu1 %3345  ;;  %v9717_v31 = vpop.permute.xlu0 %3340  ;;  %5135 = vmatprep.mubr.bf16.mxu1 %v5655_v18  ;;  %v2218_v20 = vmul.f32 %v5966_v35, %v11508_v11  ;;  %v4011_v35 = vadd.f32 %v9661_v50, %v2219_v24  ;;  %v11515_v50 = vld [vmem:[#allocation126_spill] sm:$0xff] }
 0x3aa   :  { %3845 = vperm.xlu1 %6642, %v2583_v8   ;;  %3840 = vperm.xlu0 %6641, %v2582_v28   ;;  %v9805_v28 = vld [vmem:[%s11004_s0 + $0x258] sm:$0xff]  }
 0x3ab   :  { %v4010_v11 = vadd.f32 %v9663_v29, %v2218_v20  ;;  %v11516_v29 = vld [vmem:[#allocation139_spill] sm:$0xff]  ;;  %v4267_v62 = vmax.f32 %v4011_v35, 0.0  ;;  %v11522_v35 = vld [vmem:[#allocation138_spill] sm:$0xff] }
 0x3ad   :  { %v9745_v6 = vpop.permute.xlu1 %3355  ;;  %v9747_v55 = vpop.permute.xlu0 %3350 }
 0x3ae   :  { %3765 = vperm.xlu1 %6642, %v2567_v25   ;;  %3760 = vperm.xlu0 %6641, %v2566_v49   ;;  %v6268_v25 = vld [vmem:[%s11004_s0 + $0x268] sm:$0xff]   ;;  %v5959_v49 = vunpack.c.h.bf16 %v9781_v14  ;;  %v2580_v14 = vld [vmem:[%s11006_s2 + $0x7c0] sm:$0xff] }
 0x3af   :  { %v5991_v8 = vunpack.c.h.bf16 %v6268_v25 }
 0x3b0   :  { %5136 = vmatmul.mubr.bf16.gmra.mxu1 %v5654_v23  ;;  %v5963_v23 = vunpack.c.h.bf16 %v6261_v3 }
 0x3b1   :  { %v9794_v30 = vpop.permute.xlu1 %3365  ;;  %v9796_v51 = vpop.permute.xlu0 %3360  ;;  %5143 = vmatprep.mubr.bf16.mxu1 %v5671_v61  ;;  %v9814_v61 = vld [vmem:[%s11004_s0 + $0x260] sm:$0xff]   ;;  %v2231_v20 = vmul.f32 %v5991_v8, %v11516_v29  ;;  %v6264_v29 = vld [vmem:[%s11004_s0 + $0x248] sm:$0xff]  }
 0x3b2   :  { %3675 = vperm.xlu1 %6642, %v2549_v15   ;;  %3670 = vperm.xlu0 %6641, %v2548_v4   ;;  %v5962_v15 = vunpack.c.l.bf16 %v6261_v3  ;;  %v5999_v4 = vunpack.c.h.bf16 %v6270_v53  ;;  %v5987_v3 = vunpack.c.h.bf16 %v9814_v61  ;;  %v5990_v53 = vunpack.c.l.bf16 %v6268_v25  ;;  %v11518_v8 = vld [vmem:[#allocation124_spill] sm:$0xff] }
 0x3b3   :  { %v2215_v25 = vmul.f32 %v5959_v49, %v11511_v45  ;;  %v5986_v33 = vunpack.c.l.bf16 %v9814_v61 }
 0x3b4   :  { %v2235_v37 = vmul.f32 %v5999_v4, %v11513_v59  ;;  %v2216_v24 = vmul.f32 %v5962_v15, %v11515_v50  ;;  %v2230_v45 = vmul.f32 %v5990_v53, %v11517_v44  ;;  %v4266_v15 = vmax.f32 %v4010_v11, 0.0 }
 0x3b5   :  { %v3376_v47 = vpop.permute.xlu1 %3375  ;;  %v3371_v18 = vpop.permute.xlu0 %3370  ;;  %v2214_v44 = vmul.f32 %v5958_v2, %v11518_v8  ;;  %v5982_v2 = vunpack.c.l.bf16 %v9805_v28  ;;  %v4007_v11 = vadd.f32 %v9627_v21, %v2215_v25  ;;  %v11525_v25 = vld [vmem:[#allocation122_spill] sm:$0xff] }
 0x3b6   :  { %3595 = vperm.xlu1 %6642, %v2533_v41   ;;  %3590 = vperm.xlu0 %6641, %v2532_v22   ;;  %v11512_v41 = vld [vmem:[#allocation125_spill] sm:$0xff]  ;;  %v4025_v27 = vadd.f32 %v3376_v47, %v2233_v43  ;;  %v4024_v40 = vadd.f32 %v3371_v18, %v2232_v12  ;;  %v4022_v4 = vadd.f32 %v9796_v51, %v2230_v45 }
 0x3b7   :  { %v2217_v22 = vmul.f32 %v5963_v23, %v11512_v41  ;;  %v2565_v18 = vld [vmem:[%s11006_s2 + $0x748] sm:$0xff]  ;;  %v4006_v41 = vadd.f32 %v9629_v48, %v2214_v44  ;;  %v4515_v51 = vpack.c.bf16 %v4267_v62, %v4266_v15  ;;  %v11530_v62 = vunpack.c.h.bf16 %v9805_v28  ;;  %v11531_v15 = vld [vmem:[#allocation136_spill] sm:$0xff]  ;;  %v2530_v28 = vld [vmem:[%s11006_s2 + $0x630] sm:$0xff] }
 0x3b8   :  { %5144 = vmatmul.mubr.bf16.gmra.mxu1 %v5670_v17  ;;  %v4008_v17 = vadd.f32 %v9641_v60, %v2216_v24  ;;  %v4023_v60 = vadd.f32 %v9794_v30, %v2231_v20  ;;  %v4281_v47 = vmax.f32 %v4025_v27, 0.0  ;;  %v4280_v53 = vmax.f32 %v4024_v40, 0.0  ;;  %v2547_v40 = vld [vmem:[%s11006_s2 + $0x6b8] sm:$0xff] }
 0x3b9   :  { %v3386_v19 = vpop.permute.xlu1 %3385  ;;  %v3381_v0 = vpop.permute.xlu0 %3380  ;;  %5249 = vmatprep.mubr.bf16.mxu1 %v5627_v5  ;;  %v4009_v59 = vadd.f32 %v9639_v46, %v2217_v22  ;;  %v2564_v5 = vld [vmem:[%s11006_s2 + $0x740] sm:$0xff]  ;;  %v6265_v46 = vld [vmem:[%s11004_s0 + $0x250] sm:$0xff]   ;;  %v4278_v45 = vmax.f32 %v4022_v4, 0.0  ;;  %v4263_v8 = vmax.f32 %v4007_v11, 0.0  ;;  %v4262_v44 = vmax.f32 %v4006_v41, 0.0 }
 0x3ba   :  { %v4027_v49 = vadd.f32 %v3386_v19, %v2235_v37  ;;  %v4026_v23 = vadd.f32 %v3381_v0, %v2234_v36  ;;  %3835 = vperm.xlu1 %6642, %v2581_v58   ;;  %3830 = vperm.xlu0 %6641, %v2580_v14   ;;  %v11519_v19 = vld [vmem:[#allocation137_spill] sm:$0xff]  ;;  %v4264_v22 = vmax.f32 %v4008_v17, 0.0  ;;  %v2546_v37 = vld [vmem:[%s11006_s2 + $0x6b0] sm:$0xff]  ;;  %v11526_v36 = vunpack.c.l.bf16 %v9767_v7 }
 0x3bb   :  { %v2229_v0 = vmul.f32 %v5987_v3, %v11519_v19  ;;  %v2228_v3 = vmul.f32 %v5986_v33, %v11522_v35  ;;  %v4265_v30 = vmax.f32 %v4009_v59, 0.0  ;;  %v11524_v33 = vunpack.c.h.bf16 %v9767_v7  ;;  %v11529_v17 = vld [vmem:[#allocation135_spill] sm:$0xff] }
 0x3bc   :  { %v4283_v58 = vmax.f32 %v4027_v49, 0.0  ;;  %v4282_v61 = vmax.f32 %v4026_v23, 0.0  ;;  %v2212_v50 = vmul.f32 %v11526_v36, %v11525_v25  ;;  %v5979_v48 = vunpack.c.h.bf16 %v6265_v46  ;;  %v2578_v25 = vld [vmem:[%s11006_s2 + $0x7b0] sm:$0xff]  ;;  %v11538_v36 = vld [vmem:[#allocation117_spill] sm:$0xff] }
 0x3bd   :  { %v9864_v43 = vpop.permute.xlu1 %3395  ;;  %v9866_v12 = vpop.permute.xlu0 %3390  ;;  %v2213_v21 = vmul.f32 %v11524_v33, %v11523_v57  ;;  %v4021_v24 = vadd.f32 %v9745_v6, %v2229_v0  ;;  %v4020_v20 = vadd.f32 %v9747_v55, %v2228_v3  ;;  %v4279_v27 = vmax.f32 %v4023_v60, 0.0  ;;  %v2531_v0 = vld [vmem:[%s11006_s2 + $0x638] sm:$0xff] }
 0x3be   :  { %11520 = vst [vmem:[#allocation31_spill] sm:$0xff] %v9864_v43  ;;  %11521 = vst [vmem:[#allocation32_spill] sm:$0xff] %v9866_v12  ;;  %3755 = vperm.xlu1 %6642, %v2565_v18   ;;  %3750 = vperm.xlu0 %6641, %v2564_v5   ;;  %v4523_v14 = vpack.c.bf16 %v4283_v58, %v4282_v61  ;;  %v4522_v59 = vpack.c.bf16 %v4281_v47, %v4280_v53  ;;  %v5978_v7 = vunpack.c.l.bf16 %v6265_v46  ;;  %v11532_v58 = vld [vmem:[#allocation119_spill] sm:$0xff]  ;;  %v11534_v46 = vld [vmem:[#allocation120_spill] sm:$0xff] }
 0x3bf   :  { %v2227_v6 = vmul.f32 %v11530_v62, %v11529_v17  ;;  %v2226_v18 = vmul.f32 %v5982_v2, %v11531_v15  ;;  %v4005_v5 = vadd.f32 %v9607_v32, %v2213_v21  ;;  %v4004_v55 = vadd.f32 %v9609_v34, %v2212_v50  ;;  %v6263_v53 = vld [vmem:[%s11004_s0 + $0x240] sm:$0xff]   ;;  %v2579_v21 = vld [vmem:[%s11006_s2 + $0x7b8] sm:$0xff] }
 0x3c0   :  { %6479 = vmatprep.subr.bf16.mxu0 %v4523_v14  ;;  %v4514_v19 = vpack.c.bf16 %v4265_v30, %v4264_v22  ;;  %v11533_v61 = vunpack.c.h.bf16 %v9759_v38  ;;  %v11535_v60 = vunpack.c.l.bf16 %v9759_v38  ;;  %v5975_v4 = vunpack.c.h.bf16 %v6264_v29  ;;  %v11536_v38 = vld [vmem:[#allocation133_spill] sm:$0xff]  ;;  %v11542_v15 = vld [vmem:[#allocation131_spill] sm:$0xff] }
 0x3c1   :  { %v9889_v49 = vpop.permute.xlu1 %3405  ;;  %v9891_v23 = vpop.permute.xlu0 %3400  ;;  %6480 = vmatpush3.bf16.msra.mxu0 %v4515_v51  ;;  %v4019_v47 = vadd.f32 %v9715_v42, %v2227_v6  ;;  %v4018_v2 = vadd.f32 %v9717_v31, %v2226_v18  ;;  %v4277_v35 = vmax.f32 %v4021_v24, 0.0  ;;  %v4276_v3 = vmax.f32 %v4020_v20, 0.0  ;;  %v11537_v51 = vld [vmem:[#allocation134_spill] sm:$0xff] }
 0x3c2   :  { %11527 = vst [vmem:[#allocation45_spill] sm:$0xff] %v9889_v49  ;;  %11528 = vst [vmem:[#allocation46_spill] sm:$0xff] %v9891_v23  ;;  %3665 = vperm.xlu1 %6642, %v2547_v40   ;;  %3660 = vperm.xlu0 %6641, %v2546_v37   ;;  %v2211_v32 = vmul.f32 %v11533_v61, %v11532_v58  ;;  %v2210_v34 = vmul.f32 %v11535_v60, %v11534_v46  ;;  %v5974_v30 = vunpack.c.l.bf16 %v6264_v29  ;;  %v11544_v58 = vld [vmem:[#allocation115_spill] sm:$0xff]  ;;  %v11611_v49 = vld [vmem:[#allocation169_spill] sm:$0xff] }
 0x3c3   :  { %6481 = vmatprep.subr.bf16.mxu0 %v4522_v59  ;;  %v4521_v41 = vpack.c.bf16 %v4279_v27, %v4278_v45  ;;  %v2225_v22 = vmul.f32 %v5979_v48, %v11536_v38  ;;  %v2224_v40 = vmul.f32 %v5978_v7, %v11537_v51  ;;  %v4261_v31 = vmax.f32 %v4005_v5, 0.0  ;;  %v11540_v48 = vld [vmem:[#allocation118_spill] sm:$0xff]  ;;  %v11543_v5 = vld [vmem:[#allocation132_spill] sm:$0xff] }
 0x3c4   :  { %v4003_v42 = vadd.f32 %v9580_v13, %v2211_v32  ;;  %v4002_v37 = vadd.f32 %v9582_v56, %v2210_v34  ;;  %v4260_v57 = vmax.f32 %v4004_v55, 0.0  ;;  %v4513_v33 = vpack.c.bf16 %v4263_v8, %v4262_v44  ;;  %v11546_v32 = vld [vmem:[#allocation116_spill] sm:$0xff] }
 0x3c5   :  { %v9916_v11 = vpop.permute.xlu1 %3415  ;;  %v9918_v14 = vpop.permute.xlu0 %3410  ;;  %6482 = vmatpush3.bf16.msra.mxu0 %v4514_v19  ;;  %v11539_v50 = vunpack.c.h.bf16 %v9754_v1  ;;  %v11541_v24 = vunpack.c.l.bf16 %v9754_v1  ;;  %v5971_v29 = vunpack.c.h.bf16 %v6263_v53  ;;  %v4017_v20 = vadd.f32 %v9705_v63, %v2225_v22  ;;  %v2563_v19 = vld [vmem:[%s11006_s2 + $0x738] sm:$0xff] }
 0x3c6   :  { %3585 = vperm.xlu1 %6642, %v2531_v0   ;;  %3580 = vperm.xlu0 %6641, %v2530_v28   ;;  %v4016_v27 = vadd.f32 %v9707_v9, %v2224_v40  ;;  %v4275_v45 = vmax.f32 %v4019_v47, 0.0  ;;  %v4274_v59 = vmax.f32 %v4018_v2, 0.0  ;;  %v4520_v62 = vpack.c.bf16 %v4277_v35, %v4276_v3  ;;  %v2562_v0 = vld [vmem:[%s11006_s2 + $0x730] sm:$0xff]  ;;  %v11548_v3 = vld [vmem:[#allocation129_spill] sm:$0xff] }
 0x3c7   :  { %6483 = vmatprep.subr.bf16.mxu0 %v4521_v41  ;;  %v2209_v13 = vmul.f32 %v11539_v50, %v11538_v36  ;;  %v2208_v56 = vmul.f32 %v11541_v24, %v11540_v48  ;;  %v5970_v6 = vunpack.c.l.bf16 %v6263_v53  ;;  %v2223_v18 = vmul.f32 %v5975_v4, %v11542_v15  ;;  %v11550_v22 = vld [vmem:[#allocation243_spill] sm:$0xff]  ;;  %v11555_v50 = vld [vmem:[#allocation241_spill] sm:$0xff]  ;;  %v11556_v48 = vld [vmem:[#allocation242_spill] sm:$0xff] }
 0x3c8   :  { %v2222_v55 = vmul.f32 %v5974_v30, %v11543_v5  ;;  %v4259_v9 = vmax.f32 %v4003_v42, 0.0  ;;  %v4258_v8 = vmax.f32 %v4002_v37, 0.0  ;;  %v4512_v44 = vpack.c.bf16 %v4261_v31, %v4260_v57  ;;  %v11549_v30 = vld [vmem:[#allocation130_spill] sm:$0xff]  ;;  %v2544_v31 = vld [vmem:[%s11006_s2 + $0x6a0] sm:$0xff] }
 0x3c9   :  { %v9938_v7 = vpop.permute.xlu1 %3425  ;;  %v9940_v17 = vpop.permute.xlu0 %3420  ;;  %6484 = vmatpush3.bf16.msra.mxu0 %v4513_v33  ;;  %v4001_v1 = vadd.f32 %v9545_v26, %v2209_v13  ;;  %v4000_v63 = vadd.f32 %v9547_v16, %v2208_v56  ;;  %v5938_v28 = vunpack.c.l.bf16 %v9738_v52  ;;  %v11545_v26 = vunpack.c.h.bf16 %v9743_v54  ;;  %v2545_v37 = vld [vmem:[%s11006_s2 + $0x6a8] sm:$0xff] }
 0x3ca   :  { %3825 = vperm.xlu1 %6642, %v2579_v21   ;;  %3820 = vperm.xlu0 %6641, %v2578_v25   ;;  %v11547_v16 = vunpack.c.l.bf16 %v9743_v54  ;;  %v4015_v60 = vadd.f32 %v9689_v10, %v2223_v18  ;;  %v4014_v34 = vadd.f32 %v9691_v39, %v2222_v55  ;;  %v4273_v4 = vmax.f32 %v4017_v20, 0.0  ;;  %v11551_v54 = vld [vmem:[#allocation244_spill] sm:$0xff]  ;;  %v11552_v57 = vld [vmem:[#allocation113_spill] sm:$0xff]  ;;  %v11554_v25 = vld [vmem:[#allocation114_spill] sm:$0xff] }
 0x3cb   :  { %6485 = vmatprep.subr.bf16.mxu0 %v4520_v62  ;;  %v2207_v61 = vmul.f32 %v11545_v26, %v11544_v58  ;;  %v4272_v47 = vmax.f32 %v4016_v27, 0.0  ;;  %v4519_v35 = vpack.c.bf16 %v4275_v45, %v4274_v59  ;;  %v2221_v41 = vmul.f32 %v5971_v29, %v11548_v3  ;;  %v11557_v59 = vld [vmem:[#allocation11_spill] sm:$0xff]  ;;  %v2529_v55 = vld [vmem:[%s11006_s2 + $0x628] sm:$0xff]  ;;  %v10026_v3 = vld [vmem:[%s11004_s0 + $0x280] sm:$0xff]  }
 0x3cc   :  { %v2206_v46 = vmul.f32 %v11547_v16, %v11546_v32  ;;  %v2220_v38 = vmul.f32 %v5970_v6, %v11549_v30  ;;  %v4257_v40 = vmax.f32 %v4001_v1, 0.0  ;;  %v4256_v39 = vmax.f32 %v4000_v63, 0.0  ;;  %v2528_v1 = vld [vmem:[%s11006_s2 + $0x620] sm:$0xff]  ;;  %v2577_v26 = vld [vmem:[%s11006_s2 + $0x7a8] sm:$0xff]  ;;  %v10036_v30 = vld [vmem:[%s11004_s0 + $0x290] sm:$0xff]  }
 0x3cd   :  { %v9961_v53 = vpop.permute.xlu1 %3435  ;;  %v9963_v2 = vpop.permute.xlu0 %3430  ;;  %6486 = vmatpush3.bf16.msra.mxu0 %v4512_v44  ;;  %v3999_v51 = vadd.f32 %v11550_v22, %v2207_v61  ;;  %v4511_v42 = vpack.c.bf16 %v4259_v9, %v4258_v8  ;;  %v11553_v33 = vunpack.c.h.bf16 %v9738_v52  ;;  %v2204_v36 = vmul.f32 %v5938_v28, %v11554_v25  ;;  %v11558_v52 = vld [vmem:[#allocation12_spill] sm:$0xff] }
 0x3ce   :  { %3745 = vperm.xlu1 %6642, %v2563_v19   ;;  %3740 = vperm.xlu0 %6641, %v2562_v0   ;;  %v3998_v10 = vadd.f32 %v11551_v54, %v2206_v46  ;;  %v4013_v13 = vadd.f32 %v11555_v50, %v2221_v41  ;;  %v4012_v24 = vadd.f32 %v11556_v48, %v2220_v38  ;;  %v4271_v56 = vmax.f32 %v4015_v60, 0.0  ;;  %v2576_v61 = vld [vmem:[%s11006_s2 + $0x7a0] sm:$0xff]  ;;  %v10031_v41 = vld [vmem:[%s11004_s0 + $0x288] sm:$0xff]   ;;  %v10047_v54 = vld [vmem:[%s11004_s0 + $0x298] sm:$0xff]  }
 0x3cf   :  { %6487 = vmatprep.subr.bf16.mxu0 %v4519_v35  ;;  %v2205_v21 = vmul.f32 %v11553_v33, %v11552_v57  ;;  %v4270_v29 = vmax.f32 %v4014_v34, 0.0  ;;  %v4518_v45 = vpack.c.bf16 %v4273_v4, %v4272_v47  ;;  %v3996_v6 = vadd.f32 %v11558_v52, %v2204_v36  ;;  %v10010_v60 = vld [vmem:[%s11007_s3 + $0xa0] sm:$0xff]  ;;  %v2561_v47 = vld [vmem:[%s11006_s2 + $0x728] sm:$0xff]  ;;  %v10078_v36 = vld [vmem:[%s11004_s0 + $0x2b8] sm:$0xff]  }
 0x3d0   :  { %v4255_v15 = vmax.f32 %v3999_v51, 0.0  ;;  %v4254_v18 = vmax.f32 %v3998_v10, 0.0  ;;  %v4510_v5 = vpack.c.bf16 %v4257_v40, %v4256_v39  ;;  %v4269_v63 = vmax.f32 %v4013_v13, 0.0  ;;  %v10015_v34 = vld [vmem:[%s11007_s3 + $0xe0] sm:$0xff]  ;;  %v10057_v40 = vld [vmem:[%s11004_s0 + $0x2a8] sm:$0xff]   ;;  %v10100_v52 = vld [vmem:[%s11004_s0 + $0x2d0] sm:$0xff]  }
 0x3d1   :  { %v9981_v20 = vpop.permute.xlu1 %3445  ;;  %v9983_v27 = vpop.permute.xlu0 %3440  ;;  %6488 = vmatpush3.bf16.msra.mxu0 %v4511_v42  ;;  %v3997_v62 = vadd.f32 %v11557_v59, %v2205_v21  ;;  %v4268_v9 = vmax.f32 %v4012_v24, 0.0  ;;  %v4517_v19 = vpack.c.bf16 %v4271_v56, %v4270_v29  ;;  %v4252_v28 = vmax.f32 %v3996_v6, 0.0  ;;  %v2560_v35 = vld [vmem:[%s11006_s2 + $0x720] sm:$0xff]  ;;  %v10063_v42 = vld [vmem:[%s11004_s0 + $0x2b0] sm:$0xff]   ;;  %v10105_v6 = vld [vmem:[%s11004_s0 + $0x2d8] sm:$0xff]  }
 0x3d2   :  { %3655 = vperm.xlu1 %6642, %v2545_v37   ;;  %3650 = vperm.xlu0 %6641, %v2544_v31   ;;  %v4509_v58 = vpack.c.bf16 %v4255_v15, %v4254_v18  ;;  %v5641_v51 = vcombine.high %v10010_v60, %v10015_v34  ;;  %v10052_v10 = vld [vmem:[%s11004_s0 + $0x2a0] sm:$0xff]   ;;  %v6003_v39 = vunpack.c.h.bf16 %v10026_v3  ;;  %v2543_v37 = vld [vmem:[%s11006_s2 + $0x698] sm:$0xff]  ;;  %v2542_v31 = vld [vmem:[%s11006_s2 + $0x690] sm:$0xff]  ;;  %v6002_v57 = vunpack.c.l.bf16 %v10026_v3 }
 0x3d3   :  { %6489 = vmatprep.subr.bf16.mxu0 %v4518_v45  ;;  %v4253_v0 = vmax.f32 %v3997_v62, 0.0  ;;  %v4516_v46 = vpack.c.bf16 %v4269_v63, %v4268_v9  ;;  %v6007_v33 = vunpack.c.h.bf16 %v10031_v41  ;;  %v6006_v21 = vunpack.c.l.bf16 %v10031_v41  ;;  %v10083_v50 = vld [vmem:[%s11004_s0 + $0x2c0] sm:$0xff]   ;;  %v11562_v13 = vld [vmem:[#allocation6_spill] sm:$0xff] }
 0x3d4   :  { %v6011_v25 = vunpack.c.h.bf16 %v10036_v30  ;;  %11561 = vst [vmem:[#allocation47_spill] sm:$0xff] %v10083_v50  ;;  %v11563_v48 = vld [vmem:[#allocation8_spill] sm:$0xff]  ;;  %v6010_v56 = vunpack.c.l.bf16 %v10036_v30  ;;  %v6015_v29 = vunpack.c.h.bf16 %v10047_v54  ;;  %v10095_v62 = vld [vmem:[%s11004_s0 + $0x2c8] sm:$0xff]   ;;  %v11588_v45 = vunpack.c.l.bf16 %v10057_v40 }
 0x3d5   :  { %v9993_v8 = vpop.permute.xlu1 %3455  ;;  %v9995_v44 = vpop.permute.xlu0 %3450  ;;  %6490 = vmatpush3.bf16.msra.mxu0 %v4510_v5  ;;  %v4508_v4 = vpack.c.bf16 %v4253_v0, %v4252_v28  ;;  %v11564_v24 = vcombine.low %v11562_v13, %v11563_v48  ;;  %v10118_v9 = vld [vmem:[%s11004_s0 + $0x2e0] sm:$0xff]   ;;  %v10156_v13 = vld [vmem:[%s11004_s0 + $0x2f8] sm:$0xff]   ;;  %v5640_v48 = vcombine.low %v10010_v60, %v10015_v34  ;;  %v11570_v5 = vld [vmem:[#allocation146_spill] sm:$0xff]  ;;  %v11590_v43 = vunpack.c.h.bf16 %v10063_v42 }
 0x3d6   :  { %3575 = vperm.xlu1 %6642, %v2529_v55   ;;  %3570 = vperm.xlu0 %6641, %v2528_v1   ;;  %v10128_v0 = vld [vmem:[%s11007_s3 + $0x160] sm:$0xff]  ;;  %v6063_v34 = vunpack.c.h.bf16 %v10156_v13  ;;  %v10210_v59 = vmul.f32 %v6002_v57, %v11570_v5  ;;  %v10267_v30 = vld [vmem:[%s11004_s0 + $0x378] sm:$0xff]  }
 0x3d7   :  { %6491 = vmatprep.subr.bf16.mxu0 %v4517_v19  ;;  %v10123_v19 = vld [vmem:[%s11007_s3 + $0x120] sm:$0xff] }
 0x3d8   :  { %v5657_v60 = vcombine.high %v10123_v19, %v10128_v0  ;;  %v11568_v55 = vld [vmem:[#allocation145_spill] sm:$0xff]  ;;  %11571 = vst [vmem:[#allocation28_spill] sm:$0xff] %v10210_v59  ;;  %v5656_v12 = vcombine.low %v10123_v19, %v10128_v0  ;;  %v11596_v19 = vunpack.c.l.bf16 %v10063_v42  ;;  %v11603_v42 = vunpack.c.h.bf16 %v10100_v52 }
 0x3d9   :  { %v10003_v32 = vpop.permute.xlu1 %3465  ;;  %v10005_v16 = vpop.permute.xlu0 %3460  ;;  %6492 = vmatpush3.bf16.msra.mxu0 %v4509_v58  ;;  %v10186_v58 = vld [vmem:[%s11004_s0 + $0x370] sm:$0xff]   ;;  %v10205_v1 = vmul.f32 %v6003_v39, %v11568_v55  ;;  %v11574_v39 = vld [vmem:[#allocation148_spill] sm:$0xff]  ;;  %v11576_v57 = vld [vmem:[#allocation149_spill] sm:$0xff]  ;;  %v11582_v55 = vunpack.c.h.bf16 %v10052_v10 }
 0x3da   :  { %3815 = vperm.xlu1 %6642, %v2577_v26   ;;  %3810 = vperm.xlu0 %6641, %v2576_v61   ;;  %11567 = vst [vmem:[#allocation43_spill] sm:$0xff] %v10186_v58  ;;  %v6062_v61 = vunpack.c.l.bf16 %v10156_v13  ;;  %v10226_v3 = vmul.f32 %v6006_v21, %v11574_v39  ;;  %v10231_v5 = vmul.f32 %v6011_v25, %v11576_v57  ;;  %v10242_v41 = vld [vmem:[%s11007_s3 + $0x1e0] sm:$0xff]  ;;  %v11578_v25 = vld [vmem:[#allocation151_spill] sm:$0xff] }
 0x3db   :  { %6493 = vmatprep.subr.bf16.mxu0 %v4516_v46  ;;  %v10137_v46 = vld [vmem:[%s11004_s0 + $0x2e8] sm:$0xff]   ;;  %11569 = vst [vmem:[#allocation44_spill] sm:$0xff] %v10205_v1  ;;  %v11591_v58 = vld [vmem:[#allocation159_spill] sm:$0xff] }
 0x3dc   :  { %11575 = vst [vmem:[#allocation42_spill] sm:$0xff] %v10226_v3  ;;  %v11581_v57 = vld [vmem:[#allocation153_spill] sm:$0xff] }
 0x3dd   :  { %v10038_v38 = vpop.permute.xlu1 %3475  ;;  %v10040_v22 = vpop.permute.xlu0 %3470  ;;  %6494 = vmatpush3.bf16.msra.mxu0 %v4508_v4  ;;  %v2527_v4 = vld [vmem:[%s11006_s2 + $0x618] sm:$0xff]  ;;  %v10262_v13 = vmul.f32 %v11582_v55, %v11581_v57  ;;  %v11589_v59 = vld [vmem:[#allocation157_spill] sm:$0xff] }
 0x3de   :  { %11559 = vst [vmem:[#allocation27_spill] sm:$0xff] %v10038_v38  ;;  %11560 = vst [vmem:[#allocation29_spill] sm:$0xff] %v10040_v22  ;;  %3735 = vperm.xlu1 %6642, %v2561_v47   ;;  %3730 = vperm.xlu0 %6641, %v2560_v35   ;;  %v2526_v47 = vld [vmem:[%s11006_s2 + $0x610] sm:$0xff]  ;;  %v2575_v35 = vld [vmem:[%s11006_s2 + $0x798] sm:$0xff]  ;;  %v2249_v1 = vmul.f32 %v11590_v43, %v11589_v59  ;;  %v11594_v22 = vunpack.c.l.bf16 %v10078_v36  ;;  %v11598_v43 = vunpack.c.h.bf16 %v10095_v62 }
 0x3df   :  { %v11585_v55 = vld [vmem:[#allocation155_spill] sm:$0xff]  ;;  %v11587_v57 = vld [vmem:[#allocation156_spill] sm:$0xff]  ;;  %v11602_v3 = vld [vmem:[#allocation165_spill] sm:$0xff] }
 0x3e0   :  { %5185 = vmatmul.mubr.bf16.vlgmr.msra.gmra.mxu0 %v11564_v24  ;;  %v2574_v24 = vld [vmem:[%s11006_s2 + $0x790] sm:$0xff] }
 0x3e1   :  { %v10107_v15 = vpop.permute.xlu1 %3485  ;;  %v10109_v18 = vpop.permute.xlu0 %3480  ;;  %5192 = vmatprep.mubr.bf16.mxu0 %v5641_v51  ;;  %v10171_v51 = vld [vmem:[%s11004_s0 + $0x338] sm:$0xff]  }
 0x3e2   :  { %11565 = vst [vmem:[#allocation48_spill] sm:$0xff] %v10109_v18  ;;  %3645 = vperm.xlu1 %6642, %v2543_v37   ;;  %3640 = vperm.xlu0 %6641, %v2542_v31   ;;  %v10151_v31 = vld [vmem:[%s11004_s0 + $0x2f0] sm:$0xff]  }
 0x3e3   :  { %v10166_v37 = vld [vmem:[%s11004_s0 + $0x330] sm:$0xff]  }
 0x3e4   :  { %11566 = vst [vmem:[#allocation30_spill] sm:$0xff] %v10166_v37  ;;  %v2246_v37 = vmul.f32 %v11588_v45, %v11587_v57  ;;  %v11595_v45 = vld [vmem:[#allocation158_spill] sm:$0xff]  ;;  %v11597_v57 = vld [vmem:[#allocation163_spill] sm:$0xff] }
 0x3e5   :  { %v10173_v28 = vpop.permute.xlu1 %3495  ;;  %v10175_v26 = vpop.permute.xlu0 %3490  ;;  %v2248_v0 = vmul.f32 %v11596_v19, %v11595_v45  ;;  %v10307_v59 = vmul.f32 %v11598_v43, %v11597_v57  ;;  %v10319_v45 = vmul.f32 %v11603_v42, %v11602_v3  ;;  %v11607_v3 = vunpack.c.h.bf16 %v10105_v6  ;;  %v11615_v18 = vld [vmem:[#allocation171_spill] sm:$0xff] }
 0x3e6   :  { %3565 = vperm.xlu1 %6642, %v2527_v4   ;;  %3560 = vperm.xlu0 %6641, %v2526_v47  }
 0x3e8   :  { %5193 = vmatmul.mubr.bf16.gmra.mxu0 %v5640_v48  ;;  %v11572_v48 = vld [vmem:[#allocation147_spill] sm:$0xff] }
 0x3e9   :  { %v10214_v4 = vpop.permute.xlu1 %3505  ;;  %v10216_v47 = vpop.permute.xlu0 %3500  ;;  %5200 = vmatprep.mubr.bf16.mxu0 %v5657_v60  ;;  %v10221_v63 = vmul.f32 %v6007_v33, %v11572_v48  ;;  %v10237_v60 = vld [vmem:[%s11007_s3 + $0x1a0] sm:$0xff]  ;;  %v11577_v33 = vld [vmem:[#allocation150_spill] sm:$0xff]  ;;  %v11580_v48 = vunpack.c.l.bf16 %v10047_v54 }
 0x3ea   :  { %3805 = vperm.xlu1 %6642, %v2575_v35   ;;  %3800 = vperm.xlu0 %6641, %v2574_v24   ;;  %v10247_v21 = vmul.f32 %v6010_v56, %v11577_v33  ;;  %v10252_v35 = vmul.f32 %v6015_v29, %v11578_v25  ;;  %v11579_v24 = vld [vmem:[#allocation152_spill] sm:$0xff]  ;;  %v2558_v54 = vld [vmem:[%s11006_s2 + $0x710] sm:$0xff]  ;;  %v11584_v33 = vunpack.c.l.bf16 %v10052_v10  ;;  %v11592_v10 = vunpack.c.h.bf16 %v10078_v36 }
 0x3eb   :  { %11573 = vst [vmem:[#allocation41_spill] sm:$0xff] %v10221_v63  ;;  %v10257_v39 = vmul.f32 %v11580_v48, %v11579_v24  ;;  %v2559_v56 = vld [vmem:[%s11006_s2 + $0x718] sm:$0xff]  ;;  %v11583_v29 = vld [vmem:[#allocation154_spill] sm:$0xff]  ;;  %v11586_v24 = vunpack.c.h.bf16 %v10057_v40  ;;  %v5673_v40 = vcombine.high %v10237_v60, %v10242_v41  ;;  %v6127_v36 = vunpack.c.h.bf16 %v10267_v30 }
 0x3ec   :  { %v10278_v25 = vmul.f32 %v11584_v33, %v11583_v29  ;;  %v2251_v29 = vmul.f32 %v11592_v10, %v11591_v58  ;;  %v11593_v33 = vld [vmem:[#allocation160_spill] sm:$0xff]  ;;  %v11612_v63 = vunpack.c.h.bf16 %v10118_v9 }
 0x3ed   :  { %v2247_v48 = vmul.f32 %v11586_v24, %v11585_v55  ;;  %v2250_v38 = vmul.f32 %v11594_v22, %v11593_v33  ;;  %v3541_v55 = vpop.permute.xlu1 %3540  ;;  %v10297_v24 = vpop.permute.xlu0 %3510  ;;  %v11599_v58 = vld [vmem:[#allocation176_spill] sm:$0xff]  ;;  %v11601_v33 = vunpack.c.l.bf16 %v10095_v62  ;;  %v11604_v62 = vld [vmem:[#allocation166_spill] sm:$0xff] }
 0x3ee   :  { %v2266_v10 = vmul.f32 %v6062_v61, %v11599_v58  ;;  %3725 = vperm.xlu1 %6642, %v2559_v56   ;;  %3720 = vperm.xlu0 %6641, %v2558_v54   ;;  %v11600_v22 = vld [vmem:[#allocation164_spill] sm:$0xff]  ;;  %v4043_v19 = vadd.f32 %v10003_v32, %v2251_v29  ;;  %v2541_v61 = vld [vmem:[%s11006_s2 + $0x688] sm:$0xff]  ;;  %v11605_v54 = vunpack.c.l.bf16 %v10100_v52  ;;  %v11606_v58 = vld [vmem:[#allocation167_spill] sm:$0xff]  ;;  %v2261_v52 = vmul.f32 %v11612_v63, %v11611_v49 }
 0x3ef   :  { %v10314_v23 = vmul.f32 %v11601_v33, %v11600_v22  ;;  %v4042_v57 = vadd.f32 %v10005_v16, %v2250_v38  ;;  %v2540_v56 = vld [vmem:[%s11006_s2 + $0x680] sm:$0xff]  ;;  %v10337_v22 = vmul.f32 %v11607_v3, %v11606_v58  ;;  %v11608_v32 = vld [vmem:[#allocation175_spill] sm:$0xff]  ;;  %v11610_v33 = vunpack.c.l.bf16 %v10105_v6 }
 0x3f0   :  { %v10332_v43 = vmul.f32 %v11605_v54, %v11604_v62  ;;  %v2267_v16 = vmul.f32 %v6063_v34, %v11608_v32  ;;  %v4058_v38 = vadd.f32 %v3541_v55, %v2266_v10  ;;  %5201 = vmatmul.mubr.bf16.gmra.mxu0 %v5656_v12  ;;  %v11609_v29 = vld [vmem:[#allocation168_spill] sm:$0xff]  ;;  %v11613_v62 = vld [vmem:[#allocation170_spill] sm:$0xff]  ;;  %v11614_v54 = vunpack.c.l.bf16 %v10118_v9  ;;  %v11617_v12 = vld [vmem:[#allocation173_spill] sm:$0xff] }
 0x3f1   :  { %v10343_v42 = vmul.f32 %v11610_v33, %v11609_v29  ;;  %v11616_v58 = vunpack.c.h.bf16 %v10137_v46  ;;  %v3531_v34 = vpop.permute.xlu1 %3530  ;;  %v3546_v55 = vpop.permute.xlu0 %3545  ;;  %5208 = vmatprep.mubr.bf16.mxu0 %v5673_v40  ;;  %v11618_v6 = vunpack.c.h.bf16 %v10151_v31  ;;  %v11619_v32 = vld [vmem:[#allocation174_spill] sm:$0xff]  ;;  %v11620_v29 = vunpack.c.l.bf16 %v10151_v31 }
 0x3f2   :  { %v2260_v50 = vmul.f32 %v11614_v54, %v11613_v62  ;;  %v6126_v49 = vunpack.c.l.bf16 %v10267_v30  ;;  %v4059_v63 = vadd.f32 %v3546_v55, %v2267_v16  ;;  %3635 = vperm.xlu1 %6642, %v2541_v61   ;;  %3630 = vperm.xlu0 %6641, %v2540_v56   ;;  %v4041_v9 = vadd.f32 %v9993_v8, %v2249_v1  ;;  %v2525_v31 = vld [vmem:[%s11006_s2 + $0x608] sm:$0xff]  ;;  %v2524_v30 = vld [vmem:[%s11006_s2 + $0x600] sm:$0xff]  ;;  %v11623_v1 = vld [vmem:[#allocation191_spill] sm:$0xff] }
 0x3f3   :  { %v2263_v3 = vmul.f32 %v11616_v58, %v11615_v18  ;;  %v2265_v10 = vmul.f32 %v11618_v6, %v11617_v12  ;;  %v2264_v33 = vmul.f32 %v11620_v29, %v11619_v32  ;;  %v10364_v18 = vld [vmem:[%s11004_s0 + $0x3b8] sm:$0xff]   ;;  %v4040_v40 = vadd.f32 %v9995_v44, %v2248_v0 }
 0x3f4   :  { %v4299_v62 = vmax.f32 %v4043_v19, 0.0  ;;  %v4298_v54 = vmax.f32 %v4042_v57, 0.0  ;;  %v4314_v61 = vmax.f32 %v4058_v38, 0.0  ;;  %v4315_v16 = vmax.f32 %v4059_v63, 0.0  ;;  %v11621_v55 = vld [vmem:[#allocation172_spill] sm:$0xff]  ;;  %v11627_v38 = vld [vmem:[#allocation207_spill] sm:$0xff] }
 0x3f5   :  { %v4056_v56 = vadd.f32 %v3531_v34, %v2264_v33  ;;  %v5672_v58 = vcombine.low %v10237_v60, %v10242_v41  ;;  %v11622_v8 = vunpack.c.l.bf16 %v10137_v46  ;;  %v11624_v0 = vunpack.c.h.bf16 %v10171_v51  ;;  %v11625_v57 = vld [vmem:[#allocation192_spill] sm:$0xff]  ;;  %v3521_v32 = vpop.permute.xlu1 %3520  ;;  %v3536_v29 = vpop.permute.xlu0 %3535 }
 0x3f6   :  { %v11626_v12 = vunpack.c.l.bf16 %v10171_v51  ;;  %v2299_v34 = vmul.f32 %v6127_v36, %v11627_v38  ;;  %v6159_v60 = vunpack.c.h.bf16 %v10364_v18  ;;  %v4039_v41 = vadd.f32 %v9981_v20, %v2247_v48  ;;  %3555 = vperm.xlu1 %6642, %v2525_v31   ;;  %3550 = vperm.xlu0 %6641, %v2524_v30   ;;  %v2573_v51 = vld [vmem:[%s11006_s2 + $0x788] sm:$0xff]  ;;  %v2572_v36 = vld [vmem:[%s11006_s2 + $0x780] sm:$0xff] }
 0x3f7   :  { %v2262_v44 = vmul.f32 %v11622_v8, %v11621_v55  ;;  %v10382_v19 = vmul.f32 %v11624_v0, %v11623_v1  ;;  %v4539_v46 = vpack.c.bf16 %v4315_v16, %v4314_v61  ;;  %v4057_v33 = vadd.f32 %v3536_v29, %v2265_v10  ;;  %v11628_v0 = vld [vmem:[#allocation208_spill] sm:$0xff] }
 0x3f8   :  { %v10387_v6 = vmul.f32 %v11626_v12, %v11625_v57  ;;  %v4038_v63 = vadd.f32 %v9983_v27, %v2246_v37  ;;  %v4297_v55 = vmax.f32 %v4041_v9, 0.0  ;;  %v4296_v8 = vmax.f32 %v4040_v40, 0.0  ;;  %5209 = vmatmul.mubr.bf16.gmra.mxu0 %v5672_v58  ;;  %v10403_v27 = vld [vmem:[%s11007_s3 + $0x30] sm:$0xff] }
 0x3f9   :  { %v4531_v1 = vpack.c.bf16 %v4299_v62, %v4298_v54  ;;  %v2298_v57 = vmul.f32 %v6126_v49, %v11628_v0  ;;  %v4312_v20 = vmax.f32 %v4056_v56, 0.0  ;;  %v4054_v48 = vadd.f32 %v3521_v32, %v2262_v44  ;;  %6519 = vmatprep.subr.bf16.mxu1 %v4539_v46  ;;  %v10408_v37 = vld [vmem:[%s11007_s3 + $0x70] sm:$0xff]  ;;  %v3516_v62 = vpop.permute.xlu1 %3515  ;;  %v3526_v54 = vpop.permute.xlu0 %3525 }
 0x3fa   :  { %v4313_v10 = vmax.f32 %v4057_v33, 0.0  ;;  %v4037_v9 = vadd.f32 %v9961_v53, %v10262_v13  ;;  %v4036_v49 = vadd.f32 %v9963_v2, %v10278_v25  ;;  %v4052_v40 = vadd.f32 %v10297_v24, %v2260_v50  ;;  %3795 = vperm.xlu1 %6642, %v2573_v51   ;;  %3790 = vperm.xlu0 %6641, %v2572_v36   ;;  %v2557_v2 = vld [vmem:[%s11006_s2 + $0x708] sm:$0xff] }
 0x3fb   :  { %6520 = vmatpush3.bf16.msra.mxu1 %v4531_v1  ;;  %v5629_v31 = vcombine.high %v10403_v27, %v10408_v37  ;;  %v4295_v30 = vmax.f32 %v4039_v41, 0.0  ;;  %v4053_v56 = vadd.f32 %v3516_v62, %v2261_v52  ;;  %v4055_v16 = vadd.f32 %v3526_v54, %v2263_v3  ;;  %v2556_v3 = vld [vmem:[%s11006_s2 + $0x700] sm:$0xff] }
 0x3fc   :  { %v4538_v61 = vpack.c.bf16 %v4313_v10, %v4312_v20  ;;  %v4294_v58 = vmax.f32 %v4038_v63, 0.0  ;;  %v4530_v44 = vpack.c.bf16 %v4297_v55, %v4296_v8  ;;  %v4051_v53 = vadd.f32 %v10214_v4, %v10337_v22  ;;  %v11629_v10 = vld [vmem:[#allocation48_spill] sm:$0xff] }
 0x3fd   :  { %v5628_v50 = vcombine.low %v10403_v27, %v10408_v37  ;;  %5314 = vmatprep.mubr.bf16.mxu0 %v5629_v31  ;;  %v4050_v13 = vadd.f32 %v10216_v47, %v10343_v42  ;;  %v4310_v25 = vmax.f32 %v4054_v48, 0.0  ;;  %v4309_v24 = vmax.f32 %v4053_v56, 0.0  ;;  %v3706_v32 = vpop.permute.xlu1 %3705  ;;  %v3701_v47 = vpop.permute.xlu0 %3700  ;;  %v11633_v56 = vld [vmem:[#allocation162_spill] sm:$0xff]  ;;  %v4411_v27 = vld [vmem:[%s11007_s3 + $0xf8] sm:$0xff] }
 0x3fe   :  { %v4311_v52 = vmax.f32 %v4055_v16, 0.0  ;;  %6521 = vmatprep.subr.bf16.mxu1 %v4538_v61  ;;  %v10431_v4 = vadd.f32 %v9938_v7, %v10252_v35  ;;  %v10435_v22 = vadd.f32 %v9940_v17, %v10257_v39  ;;  %v4293_v12 = vmax.f32 %v4037_v9, 0.0  ;;  %3715 = vperm.xlu1 %6642, %v2557_v2   ;;  %v5413_v35 = vld [vmem:[%s11008_s4 + $0x8] sm:$0xff] }
 0x3ff   :  { %v4292_v38 = vmax.f32 %v4036_v49, 0.0  ;;  %6522 = vmatpush3.bf16.msra.mxu1 %v4530_v44  ;;  %v4308_v42 = vmax.f32 %v4052_v40, 0.0  ;;  %v4091_v41 = vadd.f32 %v3706_v32, %v2299_v34  ;;  %v4090_v46 = vadd.f32 %v3701_v47, %v2298_v57  ;;  %3710 = vperm.xlu0 %6641, %v2556_v3   ;;  %v10468_v57 = vld [vmem:[%s11007_s3 + $0x78] sm:$0xff]  ;;  %v5468_v40 = vld [vmem:[%s11009_s5] sm:$0xff] }
 0x400   :  { %v4537_v29 = vpack.c.bf16 %v4311_v52, %v4310_v25  ;;  %v4529_v33 = vpack.c.bf16 %v4295_v30, %v4294_v58  ;;  %v10439_v63 = vadd.f32 %v10173_v28, %v10319_v45  ;;  %v10443_v7 = vadd.f32 %v10175_v26, %v10332_v43  ;;  %v5412_v28 = vld [vmem:[%s11008_s4] sm:$0xff]  ;;  %v10454_v26 = vld [vmem:[%s11007_s3 + $0x38] sm:$0xff]  ;;  %v10499_v25 = vld [vmem:[%s11004_s0 + $0x3f0] sm:$0xff]  }
 0x401   :  { %v4307_v17 = vmax.f32 %v4051_v53, 0.0  ;;  %v4306_v39 = vmax.f32 %v4050_v13, 0.0  ;;  %v4536_v55 = vpack.c.bf16 %v4309_v24, %v4308_v42  ;;  %v4347_v34 = vmax.f32 %v4091_v41, 0.0  ;;  %v3626_v36 = vpop.permute.xlu1 %3625  ;;  %v3621_v0 = vpop.permute.xlu0 %3620  ;;  %v11635_v24 = vld [vmem:[#allocation41_spill] sm:$0xff] }
 0x402   :  { %v4346_v8 = vmax.f32 %v4090_v46, 0.0  ;;  %6523 = vmatprep.subr.bf16.mxu1 %v4537_v29  ;;  %v10458_v45 = vadd.f32 %v9916_v11, %v10231_v5  ;;  %v10462_v43 = vadd.f32 %v9918_v14, %v10247_v21  ;;  %v4291_v1 = vmax.f32 %v10431_v4, 0.0  ;;  %v6318_v11 = vld [vmem:[%s11004_s0 + $0x3f8] sm:$0xff]   ;;  %5427 = vperm.xlu1 %6642, %v5413_v35   ;;  %v11636_v52 = vld [vmem:[#allocation45_spill] sm:$0xff]  ;;  %v11637_v4 = vld [vmem:[#allocation42_spill] sm:$0xff] }
 0x403   :  { %v4528_v51 = vpack.c.bf16 %v4293_v12, %v4292_v38  ;;  %6524 = vmatpush3.bf16.msra.mxu1 %v4529_v33  ;;  %v4290_v5 = vmax.f32 %v10435_v22, 0.0  ;;  %v4075_v14 = vadd.f32 %v3626_v36, %v10382_v19  ;;  %v4074_v21 = vadd.f32 %v3621_v0, %v10387_v6  ;;  %5422 = vperm.xlu0 %6641, %v5412_v28   ;;  %v11638_v22 = vld [vmem:[#allocation46_spill] sm:$0xff]  ;;  %v11639_v29 = vld [vmem:[#allocation27_spill] sm:$0xff]  ;;  %v11640_v46 = vld [vmem:[#allocation29_spill] sm:$0xff] }
 0x404   :  { %v4555_v20 = vpack.c.bf16 %v4347_v34, %v4346_v8  ;;  %6525 = vmatprep.subr.bf16.mxu1 %v4536_v55  ;;  %v4047_v48 = vadd.f32 %v10107_v15, %v10307_v59  ;;  %v4046_v9 = vadd.f32 %v11629_v10, %v10314_v23  ;;  %v4305_v49 = vmax.f32 %v10439_v63, 0.0  ;;  %v5414_v23 = vld [vmem:[%s11008_s4 + $0x10] sm:$0xff]  ;;  %v11630_v15 = vld [vmem:[#allocation161_spill] sm:$0xff]  ;;  %v5415_v63 = vld [vmem:[%s11008_s4 + $0x18] sm:$0xff] }
 0x405   :  { %v5630_v19 = vcombine.low %v10454_v26, %v10468_v57  ;;  %v4304_v6 = vmax.f32 %v10443_v7, 0.0  ;;  %v4535_v62 = vpack.c.bf16 %v4307_v17, %v4306_v39  ;;  %v4331_v54 = vmax.f32 %v4075_v14, 0.0  ;;  %v11631_v59 = vld [vmem:[#allocation47_spill] sm:$0xff]  ;;  %v3866_v2 = vpop.permute.xlu1 %3865  ;;  %v3861_v13 = vpop.permute.xlu0 %3860  ;;  %v5469_v39 = vld [vmem:[%s11009_s5 + $0x8] sm:$0xff]  ;;  %v11646_v14 = vld [vmem:[#allocation44_spill] sm:$0xff] }
 0x406   :  { %v4330_v31 = vmax.f32 %v4074_v21, 0.0  ;;  %6559 = vmatprep.subr.bf16.mxu0 %v4555_v20  ;;  %v11632_v30 = vunpack.c.h.bf16 %v11631_v59  ;;  %v11634_v16 = vunpack.c.l.bf16 %v11631_v59  ;;  %v6191_v44 = vunpack.c.h.bf16 %v6318_v11  ;;  %5478 = vperm.xlu1 %6642, %v5468_v40   ;;  %v11641_v34 = vld [vmem:[#allocation205_spill] sm:$0xff]  ;;  %v11642_v8 = vld [vmem:[#allocation43_spill] sm:$0xff]  ;;  %v11648_v10 = vld [vmem:[#allocation28_spill] sm:$0xff] }
 0x407   :  { %v6190_v53 = vunpack.c.l.bf16 %v6318_v11  ;;  %6526 = vmatpush3.bf16.msra.mxu1 %v4528_v51  ;;  %v4031_v3 = vadd.f32 %v11636_v52, %v11635_v24  ;;  %v4030_v12 = vadd.f32 %v11638_v22, %v11637_v4  ;;  %v4289_v38 = vmax.f32 %v10458_v45, 0.0  ;;  %5432 = vperm.xlu0 %6641, %v5414_v23   ;;  %v11644_v51 = vld [vmem:[#allocation239_spill] sm:$0xff]  ;;  %v5416_v23 = vld [vmem:[%s11008_s4 + $0x20] sm:$0xff] }
 0x408   :  { %v2253_v61 = vmul.f32 %v11632_v30, %v11630_v15  ;;  %v2252_v58 = vmul.f32 %v11634_v16, %v11633_v56  ;;  %v4547_v32 = vpack.c.bf16 %v4331_v54, %v4330_v31  ;;  %6527 = vmatprep.subr.bf16.mxu1 %v4535_v62  ;;  %v4288_v47 = vmax.f32 %v10462_v43, 0.0  ;;  %v11647_v21 = vld [vmem:[#allocation31_spill] sm:$0xff]  ;;  %v11650_v15 = vld [vmem:[#allocation206_spill] sm:$0xff] }
 0x409   :  { %v4527_v42 = vpack.c.bf16 %v4291_v1, %v4290_v5  ;;  %v6158_v7 = vunpack.c.l.bf16 %v10364_v18  ;;  %v4303_v17 = vmax.f32 %v4047_v48, 0.0  ;;  %v4302_v35 = vmax.f32 %v4046_v9, 0.0  ;;  %v3786_v0 = vpop.permute.xlu1 %3785  ;;  %v3781_v11 = vpop.permute.xlu0 %3780  ;;  %v11645_v5 = vld [vmem:[#allocation240_spill] sm:$0xff]  ;;  %v5470_v16 = vld [vmem:[%s11009_s5 + $0x10] sm:$0xff] }
 0x40a   :  { %v4045_v41 = vadd.f32 %v11639_v29, %v2253_v61  ;;  %v4044_v33 = vadd.f32 %v11640_v46, %v2252_v58  ;;  %6560 = vmatpush3.bf16.msra.mxu0 %v4547_v32  ;;  %v4534_v55 = vpack.c.bf16 %v4305_v49, %v4304_v6  ;;  %v11643_v28 = vunpack.c.h.bf16 %v11642_v8  ;;  %v11649_v9 = vld [vmem:[#allocation32_spill] sm:$0xff]  ;;  %5437 = vperm.xlu1 %6642, %v5415_v63  }
 0x40b   :  { %v6187_v43 = vunpack.c.h.bf16 %v10499_v25  ;;  %v6186_v1 = vunpack.c.l.bf16 %v10499_v25  ;;  %v2331_v36 = vmul.f32 %v6191_v44, %v11644_v51  ;;  %6528 = vmatpush3.bf16.msra.mxu1 %v4527_v42  ;;  %v2330_v20 = vmul.f32 %v6190_v53, %v11645_v5  ;;  %5483 = vperm.xlu0 %6641, %v5469_v39   ;;  %v11652_v44 = vld [vmem:[#allocation189_spill] sm:$0xff]  ;;  %v11653_v53 = vld [vmem:[#allocation30_spill] sm:$0xff]  ;;  %v11658_v32 = vld [vmem:[#allocation224_spill] sm:$0xff] }
 0x40c   :  { %v2297_v45 = vmul.f32 %v11643_v28, %v11641_v34  ;;  %v4029_v48 = vadd.f32 %v11647_v21, %v11646_v14  ;;  %v4028_v49 = vadd.f32 %v11649_v9, %v11648_v10  ;;  %v4287_v40 = vmax.f32 %v4031_v3, 0.0  ;;  %6529 = vmatprep.subr.bf16.mxu1 %v4534_v55  ;;  %v11655_v3 = vld [vmem:[#allocation190_spill] sm:$0xff]  ;;  %v5532_v18 = vld [vmem:[%s11010_s6] sm:$0xff] }
 0x40d   :  { %v4286_v6 = vmax.f32 %v4030_v12, 0.0  ;;  %v4526_v62 = vpack.c.bf16 %v4289_v38, %v4288_v47  ;;  %v4301_v54 = vmax.f32 %v4045_v41, 0.0  ;;  %v4300_v31 = vmax.f32 %v4044_v33, 0.0  ;;  %v11657_v12 = vld [vmem:[#allocation223_spill] sm:$0xff]  ;;  %v3691_v47 = vpop.permute.xlu0 %3690  ;;  %v10563_v14 = vld [vmem:[%s11007_s3 + $0xe8] sm:$0xff] }
 0x40e   :  { %v11651_v59 = vunpack.c.l.bf16 %v11642_v8  ;;  %v4123_v61 = vadd.f32 %v3866_v2, %v2331_v36  ;;  %v4122_v56 = vadd.f32 %v3861_v13, %v2330_v20  ;;  %v4533_v58 = vpack.c.bf16 %v4303_v17, %v4302_v35  ;;  %v3696_v13 = vpop.permute.xlu1 %3695  ;;  %v6309_v42 = vld [vmem:[%s11004_s0 + $0x3b0] sm:$0xff]   ;;  %5442 = vperm.xlu1 %6642, %v5416_v23   ;;  %v5471_v8 = vld [vmem:[%s11009_s5 + $0x18] sm:$0xff]  ;;  %v10558_v20 = vld [vmem:[%s11007_s3 + $0xa8] sm:$0xff] }
 0x40f   :  { %v11654_v24 = vunpack.c.h.bf16 %v11653_v53  ;;  %v11656_v4 = vunpack.c.l.bf16 %v11653_v53  ;;  %v2315_v38 = vmul.f32 %v6159_v60, %v11657_v12  ;;  %v2314_v2 = vmul.f32 %v6158_v7, %v11658_v32  ;;  %6530 = vmatpush3.bf16.msra.mxu1 %v4526_v62  ;;  %5488 = vperm.xlu0 %6641, %v5470_v16   ;;  %v11659_v21 = vld [vmem:[#allocation237_spill] sm:$0xff]  ;;  %v11660_v62 = vld [vmem:[#allocation238_spill] sm:$0xff] }
 0x410   :  { %v2296_v30 = vmul.f32 %v11651_v59, %v11650_v15  ;;  %v4285_v29 = vmax.f32 %v4029_v48, 0.0  ;;  %v4284_v41 = vmax.f32 %v4028_v49, 0.0  ;;  %v4089_v46 = vadd.f32 %v3696_v13, %v2297_v45  ;;  %6531 = vmatprep.subr.bf16.mxu1 %v4533_v58  ;;  %v5534_v53 = vld [vmem:[%s11010_s6 + $0x10] sm:$0xff]  ;;  %v11663_v32 = vld [vmem:[#allocation249_spill] sm:$0xff] }
 0x411   :  { %v2281_v52 = vmul.f32 %v11654_v24, %v11652_v44  ;;  %v2280_v22 = vmul.f32 %v11656_v4, %v11655_v3  ;;  %v4525_v63 = vpack.c.bf16 %v4287_v40, %v4286_v6  ;;  %v4107_v17 = vadd.f32 %v3786_v0, %v2315_v38  ;;  %v3611_v51 = vpop.permute.xlu0 %3610  ;;  %v5417_v40 = vld [vmem:[%s11008_s4 + $0x28] sm:$0xff] }
 0x412   :  { %v4088_v33 = vadd.f32 %v3691_v47, %v2296_v30  ;;  %v4106_v35 = vadd.f32 %v3781_v11, %v2314_v2  ;;  %v4532_v60 = vpack.c.bf16 %v4301_v54, %v4300_v31  ;;  %v4379_v7 = vmax.f32 %v4123_v61, 0.0  ;;  %v3616_v45 = vpop.permute.xlu1 %3615  ;;  %5542 = vperm.xlu1 %6642, %v5532_v18   ;;  %v6300_v6 = vld [vmem:[%s11004_s0 + $0x368] sm:$0xff]   ;;  %v5472_v47 = vld [vmem:[%s11009_s5 + $0x20] sm:$0xff] }
 0x413   :  { %v4378_v39 = vmax.f32 %v4122_v56, 0.0  ;;  %v4345_v55 = vmax.f32 %v4089_v46, 0.0  ;;  %v6155_v28 = vunpack.c.h.bf16 %v6309_v42  ;;  %6532 = vmatpush3.bf16.msra.mxu1 %v4525_v63  ;;  %v6154_v36 = vunpack.c.l.bf16 %v6309_v42  ;;  %5493 = vperm.xlu0 %6641, %v5471_v8   ;;  %v6292_v24 = vld [vmem:[%s11004_s0 + $0x328] sm:$0xff]  }
 0x414   :  { %v4344_v34 = vmax.f32 %v4088_v33, 0.0  ;;  %v4073_v11 = vadd.f32 %v3616_v45, %v2281_v52  ;;  %v4072_v5 = vadd.f32 %v3611_v51, %v2280_v22  ;;  %6533 = vmatprep.subr.bf16.mxu1 %v4532_v60  ;;  %v2329_v48 = vmul.f32 %v6187_v43, %v11659_v21  ;;  %v5533_v43 = vld [vmem:[%s11010_s6 + $0x8] sm:$0xff]  ;;  %v5418_v51 = vld [vmem:[%s11008_s4 + $0x30] sm:$0xff] }
 0x415   :  { %v4524_v10 = vpack.c.bf16 %v4285_v29, %v4284_v41  ;;  %v4363_v9 = vmax.f32 %v4107_v17, 0.0  ;;  %v4362_v49 = vmax.f32 %v4106_v35, 0.0  ;;  %v2328_v54 = vmul.f32 %v6186_v1, %v11660_v62  ;;  %v3851_v30 = vpop.permute.xlu0 %3850  ;;  %v11661_v52 = vld [vmem:[#allocation221_spill] sm:$0xff]  ;;  %v11662_v4 = vld [vmem:[#allocation222_spill] sm:$0xff] }
 0x416   :  { %v4554_v0 = vpack.c.bf16 %v4345_v55, %v4344_v34  ;;  %v4571_v31 = vpack.c.bf16 %v4379_v7, %v4378_v39  ;;  %v4329_v23 = vmax.f32 %v4073_v11, 0.0  ;;  %v4328_v15 = vmax.f32 %v4072_v5, 0.0  ;;  %v3856_v59 = vpop.permute.xlu1 %3855  ;;  %5447 = vperm.xlu1 %6642, %v5417_v40   ;;  %v11664_v2 = vld [vmem:[#allocation250_spill] sm:$0xff]  ;;  %v11666_v7 = vld [vmem:[#allocation203_spill] sm:$0xff]  ;;  %v11667_v55 = vld [vmem:[#allocation204_spill] sm:$0xff] }
 0x417   :  { %6534 = vmatpush3.bf16.msra.mxu1 %v4524_v10  ;;  %v5643_v61 = vcombine.high %v10558_v20, %v10563_v14  ;;  %v4121_v16 = vadd.f32 %v3856_v59, %v2329_v48  ;;  %v4120_v58 = vadd.f32 %v3851_v30, %v2328_v54  ;;  %v6119_v25 = vunpack.c.h.bf16 %v6300_v6  ;;  %5547 = vperm.xlu0 %6641, %v5533_v43   ;;  %v5473_v35 = vld [vmem:[%s11009_s5 + $0x28] sm:$0xff]  ;;  %v5419_v40 = vld [vmem:[%s11008_s4 + $0x38] sm:$0xff] }
 0x418   :  { %6561 = vmatprep.subr.bf16.mxu0 %v4554_v0  ;;  %v4546_v56 = vpack.c.bf16 %v4329_v23, %v4328_v15  ;;  %6599 = vmatprep.subr.bf16.mxu1 %v4571_v31  ;;  %v6118_v1 = vunpack.c.l.bf16 %v6300_v6  ;;  %v4563_v44 = vpack.c.bf16 %v4363_v9, %v4362_v49  ;;  %v2313_v3 = vmul.f32 %v6155_v28, %v11661_v52  ;;  %v10600_v18 = vld [vmem:[%s11007_s3 + $0x128] sm:$0xff]  ;;  %v11668_v6 = vld [vmem:[#allocation187_spill] sm:$0xff]  ;;  %v11669_v54 = vld [vmem:[#allocation188_spill] sm:$0xff] }
 0x419   :  { %v2312_v22 = vmul.f32 %v6154_v36, %v11662_v4  ;;  %v4377_v12 = vmax.f32 %v4121_v16, 0.0  ;;  %v4376_v38 = vmax.f32 %v4120_v58, 0.0  ;;  %v11665_v13 = vcombine.low %v11663_v32, %v11664_v2  ;;  %v3771_v29 = vpop.permute.xlu0 %3770  ;;  %v10605_v60 = vld [vmem:[%s11007_s3 + $0x168] sm:$0xff]  ;;  %v5535_v15 = vld [vmem:[%s11010_s6 + $0x18] sm:$0xff]  ;;  %v6335_v16 = vpop.f32.mrf.mxu0  ;;  %v6299_v52 = vld [vmem:[%s11004_s0 + $0x360] sm:$0xff]  }
 0x41a   :  { %6562 = vmatpush3.bf16.msra.mxu0 %v4546_v56  ;;  %v3776_v42 = vpop.permute.xlu1 %3775  ;;  %5552 = vperm.xlu1 %6642, %v5534_v53   ;;  %v6087_v63 = vunpack.c.h.bf16 %v6292_v24  ;;  %v6086_v17 = vunpack.c.l.bf16 %v6292_v24  ;;  %v2295_v39 = vmul.f32 %v6119_v25, %v11666_v7  ;;  %v2294_v34 = vmul.f32 %v6118_v1, %v11667_v55  ;;  %v6316_v8 = vld [vmem:[%s11004_s0 + $0x3e8] sm:$0xff]   ;;  %v6375_v58 = vpop.f32.mrf.mxu1  ;;  %v5474_v2 = vld [vmem:[%s11009_s5 + $0x30] sm:$0xff] }
 0x41b   :  { %5250 = vmatmul.mubr.bf16.vlgmr.msra.gmra.mxu1 %v11665_v13  ;;  %v4570_v41 = vpack.c.bf16 %v4377_v12, %v4376_v38  ;;  %v4105_v46 = vadd.f32 %v3776_v42, %v2313_v3  ;;  %v4104_v33 = vadd.f32 %v3771_v29, %v2312_v22  ;;  %5498 = vperm.xlu0 %6641, %v5472_v47   ;;  %v6183_v9 = vunpack.c.h.bf16 %v6316_v8  ;;  %v10636_v53 = vld [vmem:[%s11007_s3 + $0x1a8] sm:$0xff]  ;;  %v11670_v3 = vld [vmem:[#allocation235_spill] sm:$0xff]  ;;  %v11671_v22 = vld [vmem:[#allocation236_spill] sm:$0xff]  ;;  %v6336_v13 = vpop.f32.mrf.mxu0 }
 0x41c   :  { %6600 = vmatpush3.bf16.msra.mxu1 %v4563_v44  ;;  %5257 = vmatprep.mubr.bf16.mxu1 %v5643_v61  ;;  %v5642_v11 = vcombine.low %v10558_v20, %v10563_v14  ;;  %v5659_v10 = vcombine.high %v10600_v18, %v10605_v60  ;;  %v6182_v49 = vunpack.c.l.bf16 %v6316_v8  ;;  %v2279_v62 = vmul.f32 %v6087_v63, %v11668_v6  ;;  %v6308_v20 = vld [vmem:[%s11004_s0 + $0x3a8] sm:$0xff]   ;;  %v5536_v44 = vld [vmem:[%s11010_s6 + $0x20] sm:$0xff]  ;;  %v6376_v7 = vpop.f32.mrf.mxu1 }
 0x41d   :  { %v4361_v28 = vmax.f32 %v4105_v46, 0.0  ;;  %v4360_v45 = vmax.f32 %v4104_v33, 0.0  ;;  %6601 = vmatprep.subr.bf16.mxu1 %v4570_v41  ;;  %v3681_v0 = vpop.permute.xlu0 %3680  ;;  %v2278_v31 = vmul.f32 %v6086_v17, %v11669_v54  ;;  %v6151_v25 = vunpack.c.h.bf16 %v6308_v20  ;;  %v10641_v24 = vld [vmem:[%s11007_s3 + $0x1e8] sm:$0xff] }
 0x41e   :  { %v3686_v36 = vpop.permute.xlu1 %3685  ;;  %v4086_v48 = vadd.f32 %v3681_v0, %v2294_v34  ;;  %5503 = vperm.xlu1 %6642, %v5473_v35   ;;  %v6150_v1 = vunpack.c.l.bf16 %v6308_v20  ;;  %v2327_v4 = vmul.f32 %v6183_v9, %v11670_v3  ;;  %v2326_v12 = vmul.f32 %v6182_v49, %v11671_v22  ;;  %v6338_v35 = vpop.f32.mrf.mxu0  ;;  %v5537_v34 = vld [vmem:[%s11010_s6 + $0x28] sm:$0xff] }
 0x41f   :  { %v4562_v5 = vpack.c.bf16 %v4361_v28, %v4360_v45  ;;  %v4087_v21 = vadd.f32 %v3686_v36, %v2295_v39  ;;  %5452 = vperm.xlu0 %6641, %v5418_v51   ;;  %v5658_v29 = vcombine.low %v10600_v18, %v10605_v60  ;;  %v6337_v41 = vadd.f32 %v6336_v13, %v6335_v16  ;;  %v6291_v18 = vld [vmem:[%s11004_s0 + $0x320] sm:$0xff]   ;;  %v11672_v60 = vld [vmem:[#allocation219_spill] sm:$0xff] }
 0x420   :  { %v4342_v23 = vmax.f32 %v4086_v48, 0.0  ;;  %v5675_v17 = vcombine.high %v10636_v53, %v10641_v24  ;;  %v6115_v39 = vunpack.c.h.bf16 %v6299_v52  ;;  %v6114_v55 = vunpack.c.l.bf16 %v6299_v52  ;;  %v11673_v45 = vld [vmem:[#allocation220_spill] sm:$0xff] }
 0x421   :  { %v4343_v14 = vmax.f32 %v4087_v21, 0.0  ;;  %6602 = vmatpush3.bf16.msra.mxu1 %v4562_v5  ;;  %v3601_v59 = vpop.permute.xlu0 %3600  ;;  %v6377_v8 = vadd.f32 %v6376_v7, %v6375_v58  ;;  %v2311_v28 = vmul.f32 %v6151_v25, %v11672_v60  ;;  %v2310_v51 = vmul.f32 %v6150_v1, %v11673_v45  ;;  %v6339_v5 = vpop.f32.mrf.mxu0  ;;  %v5538_v25 = vld [vmem:[%s11010_s6 + $0x30] sm:$0xff] }
 0x422   :  { %v3606_v43 = vpop.permute.xlu1 %3605  ;;  %v4070_v56 = vadd.f32 %v3601_v59, %v2278_v31  ;;  %5457 = vperm.xlu1 %6642, %v5419_v40   ;;  %v6378_v21 = vpop.f32.mrf.mxu1  ;;  %v6340_v49 = vadd.f32 %v6339_v5, %v6338_v35  ;;  %v6083_v20 = vunpack.c.h.bf16 %v6291_v18  ;;  %v5631_v13 = vcombine.high %v10454_v26, %v10468_v57 }
 0x423   :  { %5258 = vmatmul.mubr.bf16.gmra.mxu1 %v5642_v11  ;;  %v4553_v30 = vpack.c.bf16 %v4343_v14, %v4342_v23  ;;  %v4071_v61 = vadd.f32 %v3606_v43, %v2279_v62  ;;  %5557 = vperm.xlu0 %6641, %v5535_v15   ;;  %v5475_v11 = vld [vmem:[%s11009_s5 + $0x38] sm:$0xff]  ;;  %v10666_v9 = vadd.f32 %v6377_v8, %v6337_v41  ;;  %v6341_v54 = vpop.f32.mrf.mxu0  ;;  %v6082_v14 = vunpack.c.l.bf16 %v6291_v18  ;;  %v11674_v43 = vld [vmem:[#allocation201_spill] sm:$0xff] }
 0x424   :  { %5265 = vmatprep.mubr.bf16.mxu1 %v5659_v10  ;;  %v4326_v32 = vmax.f32 %v4070_v56, 0.0  ;;  %v6379_v31 = vpop.f32.mrf.mxu1  ;;  %v5539_v23 = vld [vmem:[%s11010_s6 + $0x38] sm:$0xff]  ;;  %v2293_v59 = vmul.f32 %v6115_v39, %v11674_v43  ;;  %v6315_v56 = vld [vmem:[%s11004_s0 + $0x3e0] sm:$0xff]  }
 0x425   :  { %v4327_v38 = vmax.f32 %v4071_v61, 0.0  ;;  %6563 = vmatprep.subr.bf16.mxu0 %v4553_v30  ;;  %v3841_v42 = vpop.permute.xlu0 %3840  ;;  %v6380_v15 = vadd.f32 %v6379_v31, %v6378_v21  ;;  %v11675_v30 = vld [vmem:[#allocation202_spill] sm:$0xff]  ;;  %v6342_v1 = vpop.f32.mrf.mxu0  ;;  %v6178_v41 = vunpack.c.l.bf16 %v6315_v56 }
 0x426   :  { %v3846_v47 = vpop.permute.xlu1 %3845  ;;  %v4118_v63 = vadd.f32 %v3841_v42, %v2326_v12  ;;  %5562 = vperm.xlu1 %6642, %v5536_v44   ;;  %v2292_v61 = vmul.f32 %v6114_v55, %v11675_v30  ;;  %v6381_v44 = vpop.f32.mrf.mxu1  ;;  %v6343_v12 = vadd.f32 %v6342_v1, %v6341_v54 }
 0x427   :  { %v4545_v46 = vpack.c.bf16 %v4327_v38, %v4326_v32  ;;  %v4119_v33 = vadd.f32 %v3846_v47, %v2327_v4  ;;  %5508 = vperm.xlu0 %6641, %v5474_v2   ;;  %v5674_v4 = vcombine.low %v10636_v53, %v10641_v24  ;;  %v10681_v22 = vadd.f32 %v6380_v15, %v6340_v49  ;;  %v6344_v47 = vpop.f32.mrf.mxu0  ;;  %v6307_v24 = vld [vmem:[%s11004_s0 + $0x3a0] sm:$0xff]  }
 0x428   :  { %v4374_v0 = vmax.f32 %v4118_v63, 0.0  ;;  %v6382_v42 = vpop.f32.mrf.mxu1  ;;  %v6146_v5 = vunpack.c.l.bf16 %v6307_v24 }
 0x429   :  { %v4375_v36 = vmax.f32 %v4119_v33, 0.0  ;;  %6564 = vmatpush3.bf16.msra.mxu0 %v4545_v46  ;;  %v3761_v10 = vpop.permute.xlu0 %3760  ;;  %v6383_v46 = vadd.f32 %v6382_v42, %v6381_v44  ;;  %v11676_v33 = vld [vmem:[#allocation185_spill] sm:$0xff]  ;;  %v6345_v39 = vpop.f32.mrf.mxu0  ;;  %v6290_v44 = vld [vmem:[%s11004_s0 + $0x318] sm:$0xff]  }
 0x42a   :  { %v3766_v48 = vpop.permute.xlu1 %3765  ;;  %v4102_v62 = vadd.f32 %v3761_v10, %v2310_v51  ;;  %5567 = vperm.xlu1 %6642, %v5537_v34   ;;  %v2277_v63 = vmul.f32 %v6083_v20, %v11676_v33  ;;  %v6384_v55 = vpop.f32.mrf.mxu1  ;;  %v6346_v60 = vadd.f32 %v6345_v39, %v6344_v47  ;;  %v11678_v10 = vld [vmem:[#allocation233_spill] sm:$0xff]  ;;  %v11682_v39 = vld [vmem:[#allocation199_spill] sm:$0xff] }
 0x42b   :  { %5266 = vmatmul.mubr.bf16.gmra.mxu1 %v5658_v29  ;;  %v4569_v40 = vpack.c.bf16 %v4375_v36, %v4374_v0  ;;  %v4103_v6 = vadd.f32 %v3766_v48, %v2311_v28  ;;  %5513 = vperm.xlu0 %6641, %v5475_v11   ;;  %v6179_v29 = vunpack.c.h.bf16 %v6315_v56  ;;  %v10690_v18 = vadd.f32 %v6383_v46, %v6343_v12  ;;  %v6347_v36 = vpop.f32.mrf.mxu0  ;;  %v6298_v48 = vld [vmem:[%s11004_s0 + $0x358] sm:$0xff]  }
 0x42c   :  { %5273 = vmatprep.mubr.bf16.mxu1 %v5675_v17  ;;  %v4358_v58 = vmax.f32 %v4102_v62, 0.0  ;;  %v11677_v17 = vld [vmem:[#allocation186_spill] sm:$0xff]  ;;  %v6385_v0 = vpop.f32.mrf.mxu1  ;;  %v6147_v11 = vunpack.c.h.bf16 %v6307_v24  ;;  %v6079_v24 = vunpack.c.h.bf16 %v6290_v44 }
 0x42d   :  { %v4359_v16 = vmax.f32 %v4103_v6, 0.0  ;;  %6603 = vmatprep.subr.bf16.mxu1 %v4569_v40  ;;  %v3671_v3 = vpop.permute.xlu0 %3670  ;;  %v2276_v53 = vmul.f32 %v6082_v14, %v11677_v17  ;;  %v6386_v21 = vadd.f32 %v6385_v0, %v6384_v55  ;;  %v2325_v49 = vmul.f32 %v6179_v29, %v11678_v10  ;;  %v11679_v40 = vld [vmem:[#allocation234_spill] sm:$0xff]  ;;  %v6348_v31 = vpop.f32.mrf.mxu0 }
 0x42e   :  { %v3676_v52 = vpop.permute.xlu1 %3675  ;;  %v4084_v2 = vadd.f32 %v3671_v3, %v2292_v61  ;;  %5577 = vperm.xlu1 %6642, %v5539_v23   ;;  %v2324_v6 = vmul.f32 %v6178_v41, %v11679_v40  ;;  %v6387_v20 = vpop.f32.mrf.mxu1  ;;  %v6349_v43 = vadd.f32 %v6348_v31, %v6347_v36 }
 0x42f   :  { %v4561_v38 = vpack.c.bf16 %v4359_v16, %v4358_v58  ;;  %v4085_v32 = vadd.f32 %v3676_v52, %v2293_v59  ;;  %5572 = vperm.xlu0 %6641, %v5538_v25   ;;  %v10697_v15 = vadd.f32 %v6386_v21, %v6346_v60  ;;  %v6350_v56 = vpop.f32.mrf.mxu0  ;;  %v6111_v58 = vunpack.c.h.bf16 %v6298_v48  ;;  %v11680_v52 = vld [vmem:[#allocation217_spill] sm:$0xff]  ;;  %v6314_v60 = vld [vmem:[%s11004_s0 + $0x3d8] sm:$0xff]  }
 0x430   :  { %v4340_v7 = vmax.f32 %v4084_v2, 0.0  ;;  %v6388_v16 = vpop.f32.mrf.mxu1  ;;  %v6110_v25 = vunpack.c.l.bf16 %v6298_v48  ;;  %v2309_v3 = vmul.f32 %v6147_v11, %v11680_v52 }
 0x431   :  { %v4341_v35 = vmax.f32 %v4085_v32, 0.0  ;;  %6604 = vmatpush3.bf16.msra.mxu1 %v4561_v38  ;;  %v3591_v8 = vpop.permute.xlu0 %3590  ;;  %v6389_v1 = vadd.f32 %v6388_v16, %v6387_v20  ;;  %v6351_v2 = vpop.f32.mrf.mxu0  ;;  %v2291_v55 = vmul.f32 %v6111_v58, %v11682_v39  ;;  %v11684_v20 = vld [vmem:[#allocation183_spill] sm:$0xff] }
 0x432   :  { %v3596_v34 = vpop.permute.xlu1 %3595  ;;  %v4068_v51 = vadd.f32 %v3591_v8, %v2276_v53  ;;  %v6352_v41 = vadd.f32 %v6351_v2, %v6350_v56 }
 0x433   :  { %5274 = vmatmul.mubr.bf16.gmra.mxu1 %v5674_v4  ;;  %v4552_v28 = vpack.c.bf16 %v4341_v35, %v4340_v7  ;;  %v4069_v45 = vadd.f32 %v3596_v34, %v2277_v63  ;;  %v11681_v4 = vld [vmem:[#allocation218_spill] sm:$0xff]  ;;  %v10704_v29 = vadd.f32 %v6389_v1, %v6349_v43  ;;  %v6353_v17 = vpop.f32.mrf.mxu0  ;;  %v6078_v35 = vunpack.c.l.bf16 %v6290_v44  ;;  %v11683_v34 = vld [vmem:[#allocation200_spill] sm:$0xff] }
 0x434   :  { %5379 = vmatprep.mubr.bf16.mxu1 %v5631_v13  ;;  %v4324_v54 = vmax.f32 %v4068_v51, 0.0  ;;  %v2308_v12 = vmul.f32 %v6146_v5, %v11681_v4  ;;  %v6390_v13 = vpop.f32.mrf.mxu1  ;;  %v2290_v8 = vmul.f32 %v6110_v25, %v11683_v34 }
 0x435   :  { %v4325_v62 = vmax.f32 %v4069_v45, 0.0  ;;  %6565 = vmatprep.subr.bf16.mxu0 %v4552_v28  ;;  %v3831_v23 = vpop.permute.xlu0 %3830  ;;  %v6354_v51 = vpop.f32.mrf.mxu0 }
 0x436   :  { %v3836_v14 = vpop.permute.xlu1 %3835  ;;  %v4116_v61 = vadd.f32 %v3831_v23, %v2324_v6  ;;  %v6391_v53 = vpop.f32.mrf.mxu1  ;;  %v6355_v21 = vadd.f32 %v6354_v51, %v6353_v17  ;;  %v11685_v23 = vld [vmem:[#allocation184_spill] sm:$0xff] }
 0x437   :  { %v4544_v59 = vpack.c.bf16 %v4325_v62, %v4324_v54  ;;  %v4117_v30 = vadd.f32 %v3836_v14, %v2325_v49  ;;  %v6392_v7 = vadd.f32 %v6391_v53, %v6390_v13  ;;  %v6356_v40 = vpop.f32.mrf.mxu0  ;;  %v6175_v62 = vunpack.c.h.bf16 %v6314_v60 }
 0x438   :  { %v4372_v32 = vmax.f32 %v4116_v61, 0.0  ;;  %v6393_v36 = vpop.f32.mrf.mxu1  ;;  %v6174_v54 = vunpack.c.l.bf16 %v6314_v60  ;;  %v2275_v14 = vmul.f32 %v6079_v24, %v11684_v20  ;;  %v2274_v43 = vmul.f32 %v6078_v35, %v11685_v23 }
 0x439   :  { %v4373_v38 = vmax.f32 %v4117_v30, 0.0  ;;  %6566 = vmatpush3.bf16.msra.mxu0 %v4544_v59  ;;  %v3751_v42 = vpop.permute.xlu0 %3750  ;;  %v10711_v5 = vadd.f32 %v6392_v7, %v6352_v41  ;;  %v6306_v59 = vld [vmem:[%s11004_s0 + $0x398] sm:$0xff]   ;;  %v6357_v56 = vpop.f32.mrf.mxu0 }
 0x43a   :  { %v3756_v47 = vpop.permute.xlu1 %3755  ;;  %v4100_v63 = vadd.f32 %v3751_v42, %v2308_v12  ;;  %v6394_v6 = vpop.f32.mrf.mxu1  ;;  %v6358_v44 = vadd.f32 %v6357_v56, %v6356_v40  ;;  %v6142_v2 = vunpack.c.l.bf16 %v6306_v59  ;;  %v11686_v42 = vld [vmem:[#allocation231_spill] sm:$0xff]  ;;  %v11691_v56 = vld [vmem:[#allocation198_spill] sm:$0xff] }
 0x43b   :  { %v4568_v46 = vpack.c.bf16 %v4373_v38, %v4372_v32  ;;  %v4101_v33 = vadd.f32 %v3756_v47, %v2309_v3  ;;  %v6395_v31 = vadd.f32 %v6394_v6, %v6393_v36  ;;  %v6415_v38 = vpop.f32.mrf.mxu0  ;;  %v6143_v32 = vunpack.c.h.bf16 %v6306_v59  ;;  %v6297_v47 = vld [vmem:[%s11004_s0 + $0x350] sm:$0xff]  }
 0x43c   :  { %v4356_v45 = vmax.f32 %v4100_v63, 0.0  ;;  %v6396_v16 = vpop.f32.mrf.mxu1  ;;  %v2323_v41 = vmul.f32 %v6175_v62, %v11686_v42  ;;  %v6289_v36 = vld [vmem:[%s11004_s0 + $0x310] sm:$0xff]  }
 0x43d   :  { %v4357_v28 = vmax.f32 %v4101_v33, 0.0  ;;  %6605 = vmatprep.subr.bf16.mxu1 %v4568_v46  ;;  %v3661_v11 = vpop.permute.xlu0 %3660  ;;  %v10718_v1 = vadd.f32 %v6395_v31, %v6355_v21  ;;  %v11687_v46 = vld [vmem:[#allocation232_spill] sm:$0xff]  ;;  %v6416_v53 = vpop.f32.mrf.mxu0  ;;  %v6075_v23 = vunpack.c.h.bf16 %v6289_v36 }
 0x43e   :  { %v3666_v0 = vpop.permute.xlu1 %3665  ;;  %v4082_v49 = vadd.f32 %v3661_v11, %v2290_v8  ;;  %v6397_v12 = vpop.f32.mrf.mxu1  ;;  %v2322_v33 = vmul.f32 %v6174_v54, %v11687_v46  ;;  %v6417_v39 = vadd.f32 %v6416_v53, %v6415_v38  ;;  %v11689_v21 = vld [vmem:[#allocation216_spill] sm:$0xff] }
 0x43f   :  { %v4560_v48 = vpack.c.bf16 %v4357_v28, %v4356_v45  ;;  %v4083_v10 = vadd.f32 %v3666_v0, %v2291_v55  ;;  %v6398_v13 = vadd.f32 %v6397_v12, %v6396_v16  ;;  %v6418_v60 = vpop.f32.mrf.mxu0  ;;  %v6107_v28 = vunpack.c.h.bf16 %v6297_v47  ;;  %v11688_v0 = vld [vmem:[#allocation215_spill] sm:$0xff] }
 0x440   :  { %v4338_v61 = vmax.f32 %v4082_v49, 0.0  ;;  %v6106_v45 = vunpack.c.l.bf16 %v6297_v47  ;;  %v10728_v51 = vadd.f32 %v6417_v39, %v10666_v9  ;;  %v2307_v11 = vmul.f32 %v6143_v32, %v11688_v0 }
 0x441   :  { %v4339_v30 = vmax.f32 %v4083_v10, 0.0  ;;  %6606 = vmatpush3.bf16.msra.mxu1 %v4560_v48  ;;  %v3581_v25 = vpop.permute.xlu0 %3580  ;;  %v10725_v7 = vadd.f32 %v6398_v13, %v6358_v44  ;;  %v2306_v48 = vmul.f32 %v6142_v2, %v11689_v21  ;;  %v6419_v40 = vpop.f32.mrf.mxu0  ;;  %v11694_v21 = vld [vmem:[#allocation229_spill] sm:$0xff] }
 0x442   :  { %v3586_v58 = vpop.permute.xlu1 %3585  ;;  %v4066_v4 = vadd.f32 %v3581_v25, %v2274_v43  ;;  %v6420_v54 = vadd.f32 %v6419_v40, %v6418_v60  ;;  %v6074_v43 = vunpack.c.l.bf16 %v6289_v36  ;;  %v2288_v16 = vmul.f32 %v6106_v45, %v11691_v56  ;;  %v11696_v56 = vld [vmem:[#allocation213_spill] sm:$0xff] }
 0x443   :  { %v4551_v52 = vpack.c.bf16 %v4339_v30, %v4338_v61  ;;  %v4067_v3 = vadd.f32 %v3586_v58, %v2275_v14  ;;  %v6421_v9 = vpop.f32.mrf.mxu0  ;;  %v11690_v30 = vld [vmem:[#allocation197_spill] sm:$0xff]  ;;  %v6313_v58 = vld [vmem:[%s11004_s0 + $0x3d0] sm:$0xff]  }
 0x444   :  { %v4322_v17 = vmax.f32 %v4066_v4, 0.0  ;;  %v10736_v59 = vadd.f32 %v6420_v54, %v10681_v22  ;;  %v2289_v61 = vmul.f32 %v6107_v28, %v11690_v30  ;;  %v6171_v13 = vunpack.c.h.bf16 %v6313_v58 }
 0x445   :  { %v4323_v63 = vmax.f32 %v4067_v3, 0.0  ;;  %6567 = vmatprep.subr.bf16.mxu0 %v4551_v52  ;;  %v3821_v35 = vpop.permute.xlu0 %3820  ;;  %v6422_v52 = vpop.f32.mrf.mxu0  ;;  %v6170_v47 = vunpack.c.l.bf16 %v6313_v58  ;;  %v11697_v58 = vld [vmem:[#allocation214_spill] sm:$0xff] }
 0x446   :  { %v3826_v24 = vpop.permute.xlu1 %3825  ;;  %v4114_v8 = vadd.f32 %v3821_v35, %v2322_v33  ;;  %v6423_v12 = vadd.f32 %v6422_v52, %v6421_v9  ;;  %v11693_v33 = vld [vmem:[#allocation182_spill] sm:$0xff] }
 0x447   :  { %v4543_v55 = vpack.c.bf16 %v4323_v63, %v4322_v17  ;;  %v4115_v34 = vadd.f32 %v3826_v24, %v2323_v41  ;;  %v6424_v22 = vpop.f32.mrf.mxu0  ;;  %v11692_v41 = vld [vmem:[#allocation181_spill] sm:$0xff]  ;;  %v2272_v63 = vmul.f32 %v6074_v43, %v11693_v33  ;;  %v6305_v17 = vld [vmem:[%s11004_s0 + $0x390] sm:$0xff]  }
 0x448   :  { %v4370_v49 = vmax.f32 %v4114_v8, 0.0  ;;  %v10744_v42 = vadd.f32 %v6423_v12, %v10690_v18  ;;  %v2273_v46 = vmul.f32 %v6075_v23, %v11692_v41  ;;  %v6139_v45 = vunpack.c.h.bf16 %v6305_v17 }
 0x449   :  { %v4371_v10 = vmax.f32 %v4115_v34, 0.0  ;;  %6568 = vmatpush3.bf16.msra.mxu0 %v4543_v55  ;;  %v3741_v62 = vpop.permute.xlu0 %3740  ;;  %v6425_v35 = vpop.f32.mrf.mxu0  ;;  %v6138_v36 = vunpack.c.l.bf16 %v6305_v17 }
 0x44a   :  { %v3746_v6 = vpop.permute.xlu1 %3745  ;;  %v4098_v14 = vadd.f32 %v3741_v62, %v2306_v48  ;;  %v6426_v34 = vadd.f32 %v6425_v35, %v6424_v22  ;;  %v2321_v48 = vmul.f32 %v6171_v13, %v11694_v21 }
 0x44b   :  { %v4567_v31 = vpack.c.bf16 %v4371_v10, %v4370_v49  ;;  %v4099_v20 = vadd.f32 %v3746_v6, %v2307_v11  ;;  %v6427_v18 = vpop.f32.mrf.mxu0  ;;  %v6296_v11 = vld [vmem:[%s11004_s0 + $0x348] sm:$0xff]  }
 0x44c   :  { %v4354_v44 = vmax.f32 %v4098_v14, 0.0  ;;  %v10752_v0 = vadd.f32 %v6426_v34, %v10697_v15  ;;  %v11695_v10 = vld [vmem:[#allocation230_spill] sm:$0xff]  ;;  %v6103_v15 = vunpack.c.h.bf16 %v6296_v11  ;;  %v6102_v43 = vunpack.c.l.bf16 %v6296_v11 }
 0x44d   :  { %v4355_v25 = vmax.f32 %v4099_v20, 0.0  ;;  %6607 = vmatprep.subr.bf16.mxu1 %v4567_v31  ;;  %v3651_v4 = vpop.permute.xlu0 %3650  ;;  %v2320_v49 = vmul.f32 %v6170_v47, %v11695_v10  ;;  %v6428_v62 = vpop.f32.mrf.mxu0  ;;  %v11699_v47 = vld [vmem:[#allocation196_spill] sm:$0xff] }
 0x44e   :  { %v3656_v3 = vpop.permute.xlu1 %3655  ;;  %v4080_v2 = vadd.f32 %v3651_v4, %v2288_v16  ;;  %v6429_v20 = vadd.f32 %v6428_v62, %v6427_v18  ;;  %v2305_v16 = vmul.f32 %v6139_v45, %v11696_v56  ;;  %v2286_v41 = vmul.f32 %v6102_v43, %v11699_v47  ;;  %v6304_v45 = vld [vmem:[%s11004_s0 + $0x388] sm:$0xff]   ;;  %v11705_v47 = vld [vmem:[#allocation212_spill] sm:$0xff] }
 0x44f   :  { %v4559_v38 = vpack.c.bf16 %v4355_v25, %v4354_v44  ;;  %v4081_v32 = vadd.f32 %v3656_v3, %v2289_v61  ;;  %v6288_v61 = vld [vmem:[%s11004_s0 + $0x308] sm:$0xff]   ;;  %v2304_v25 = vmul.f32 %v6138_v36, %v11697_v58 }
 0x450   :  { %v4336_v24 = vmax.f32 %v4080_v2, 0.0  ;;  %v10760_v30 = vadd.f32 %v6429_v20, %v10704_v29  ;;  %v6071_v2 = vunpack.c.h.bf16 %v6288_v61  ;;  %v6070_v22 = vunpack.c.l.bf16 %v6288_v61  ;;  %v11698_v29 = vld [vmem:[#allocation195_spill] sm:$0xff] }
 0x451   :  { %v4337_v53 = vmax.f32 %v4081_v32, 0.0  ;;  %6608 = vmatpush3.bf16.msra.mxu1 %v4559_v38  ;;  %v3571_v55 = vpop.permute.xlu0 %3570  ;;  %v2287_v13 = vmul.f32 %v6103_v15, %v11698_v29  ;;  %v11703_v15 = vld [vmem:[#allocation228_spill] sm:$0xff]  ;;  %v11704_v29 = vld [vmem:[#allocation211_spill] sm:$0xff] }
 0x452   :  { %v3576_v39 = vpop.permute.xlu1 %3575  ;;  %v4064_v28 = vadd.f32 %v3571_v55, %v2272_v63 }
 0x453   :  { %v4550_v8 = vpack.c.bf16 %v4337_v53, %v4336_v24  ;;  %v4065_v60 = vadd.f32 %v3576_v39, %v2273_v46  ;;  %v6312_v46 = vld [vmem:[%s11004_s0 + $0x3c8] sm:$0xff]  }
 0x454   :  { %v4320_v6 = vmax.f32 %v4064_v28, 0.0  ;;  %v6167_v55 = vunpack.c.h.bf16 %v6312_v46  ;;  %v6166_v34 = vunpack.c.l.bf16 %v6312_v46  ;;  %v11701_v28 = vld [vmem:[#allocation180_spill] sm:$0xff] }
 0x455   :  { %v4321_v40 = vmax.f32 %v4065_v60, 0.0  ;;  %6569 = vmatprep.subr.bf16.mxu0 %v4550_v8  ;;  %v3811_v31 = vpop.permute.xlu0 %3810  ;;  %v11700_v8 = vld [vmem:[#allocation179_spill] sm:$0xff]  ;;  %v2270_v18 = vmul.f32 %v6070_v22, %v11701_v28  ;;  %v6287_v22 = vld [vmem:[%s11004_s0 + $0x300] sm:$0xff]  }
 0x456   :  { %v3816_v54 = vpop.permute.xlu1 %3815  ;;  %v4112_v23 = vadd.f32 %v3811_v31, %v2320_v49  ;;  %v2271_v60 = vmul.f32 %v6071_v2, %v11700_v8  ;;  %v6134_v31 = vunpack.c.l.bf16 %v6304_v45  ;;  %v2318_v43 = vmul.f32 %v6166_v34, %v11703_v15  ;;  %v11706_v28 = vld [vmem:[#allocation193_spill] sm:$0xff] }
 0x457   :  { %v4542_v14 = vpack.c.bf16 %v4321_v40, %v4320_v6  ;;  %v4113_v9 = vadd.f32 %v3816_v54, %v2321_v48  ;;  %v6135_v54 = vunpack.c.h.bf16 %v6304_v45  ;;  %v6067_v34 = vunpack.c.h.bf16 %v6287_v22  ;;  %v11707_v45 = vld [vmem:[#allocation194_spill] sm:$0xff] }
 0x458   :  { %v4368_v52 = vmax.f32 %v4112_v23, 0.0  ;;  %v6066_v8 = vunpack.c.l.bf16 %v6287_v22 }
 0x459   :  { %v4369_v44 = vmax.f32 %v4113_v9, 0.0  ;;  %6570 = vmatpush3.bf16.msra.mxu0 %v4542_v14  ;;  %v3731_v4 = vpop.permute.xlu0 %3730  ;;  %v6295_v14 = vld [vmem:[%s11004_s0 + $0x340] sm:$0xff]   ;;  %v11702_v9 = vld [vmem:[#allocation227_spill] sm:$0xff] }
 0x45a   :  { %v3736_v3 = vpop.permute.xlu1 %3735  ;;  %v4096_v32 = vadd.f32 %v3731_v4, %v2304_v25  ;;  %v2319_v23 = vmul.f32 %v6167_v55, %v11702_v9 }
 0x45b   :  { %v4566_v12 = vpack.c.bf16 %v4369_v44, %v4368_v52  ;;  %v4097_v38 = vadd.f32 %v3736_v3, %v2305_v16 }
 0x45c   :  { %v4352_v63 = vmax.f32 %v4096_v32, 0.0  ;;  %v6098_v32 = vunpack.c.l.bf16 %v6295_v14 }
 0x45d   :  { %v4353_v33 = vmax.f32 %v4097_v38, 0.0  ;;  %6609 = vmatprep.subr.bf16.mxu1 %v4566_v12  ;;  %v3641_v53 = vpop.permute.xlu0 %3640  ;;  %v6099_v38 = vunpack.c.h.bf16 %v6295_v14 }
 0x45e   :  { %v3646_v17 = vpop.permute.xlu1 %3645  ;;  %v4078_v39 = vadd.f32 %v3641_v53, %v2286_v41  ;;  %v2302_v41 = vmul.f32 %v6134_v31, %v11705_v47  ;;  %v11711_v47 = vld [vmem:[#allocation226_spill] sm:$0xff] }
 0x45f   :  { %v4558_v24 = vpack.c.bf16 %v4353_v33, %v4352_v63  ;;  %v4079_v35 = vadd.f32 %v3646_v17, %v2287_v13  ;;  %v2303_v13 = vmul.f32 %v6135_v54, %v11704_v29  ;;  %v11710_v29 = vld [vmem:[#allocation225_spill] sm:$0xff] }
 0x460   :  { %v4334_v11 = vmax.f32 %v4078_v39, 0.0  ;;  %v6455_v21 = vpop.f32.mrf.mxu1 }
 0x461   :  { %v4335_v36 = vmax.f32 %v4079_v35, 0.0  ;;  %6610 = vmatpush3.bf16.msra.mxu1 %v4558_v24  ;;  %v3561_v10 = vpop.permute.xlu0 %3560 }
 0x462   :  { %v3566_v48 = vpop.permute.xlu1 %3565  ;;  %v4062_v6 = vadd.f32 %v3561_v10, %v2270_v18  ;;  %v6456_v62 = vpop.f32.mrf.mxu1  ;;  %v2285_v18 = vmul.f32 %v6099_v38, %v11706_v28 }
 0x463   :  { %v4549_v49 = vpack.c.bf16 %v4335_v36, %v4334_v11  ;;  %v4063_v40 = vadd.f32 %v3566_v48, %v2271_v60  ;;  %v6457_v20 = vadd.f32 %v6456_v62, %v6455_v21  ;;  %v2284_v36 = vmul.f32 %v6098_v32, %v11707_v45  ;;  %v6311_v11 = vld [vmem:[%s11004_s0 + $0x3c0] sm:$0xff]  }
 0x464   :  { %v4318_v56 = vmax.f32 %v4062_v6, 0.0  ;;  %v6458_v16 = vpop.f32.mrf.mxu1  ;;  %v6162_v14 = vunpack.c.l.bf16 %v6311_v11 }
 0x465   :  { %v4319_v61 = vmax.f32 %v4063_v40, 0.0  ;;  %6571 = vmatprep.subr.bf16.mxu0 %v4549_v49  ;;  %v3801_v25 = vpop.permute.xlu0 %3800  ;;  %v10783_v44 = vadd.f32 %v6457_v20, %v10728_v51  ;;  %v6163_v20 = vunpack.c.h.bf16 %v6311_v11 }
 0x466   :  { %v3806_v58 = vpop.permute.xlu1 %3805  ;;  %v4110_v4 = vadd.f32 %v3801_v25, %v2318_v43  ;;  %v6459_v12 = vpop.f32.mrf.mxu1  ;;  %v11709_v43 = vld [vmem:[#allocation178_spill] sm:$0xff] }
 0x467   :  { %v4541_v52 = vpack.c.bf16 %v4319_v61, %v4318_v56  ;;  %v4111_v3 = vadd.f32 %v3806_v58, %v2319_v23  ;;  %v6460_v2 = vadd.f32 %v6459_v12, %v6458_v16  ;;  %v11708_v23 = vld [vmem:[#allocation177_spill] sm:$0xff]  ;;  %v2268_v61 = vmul.f32 %v6066_v8, %v11709_v43  ;;  %v4427_v43 = vld [vmem:[%s11007_s3 + $0x178] sm:$0xff] }
 0x468   :  { %v4366_v33 = vmax.f32 %v4110_v4, 0.0  ;;  %v6461_v51 = vpop.f32.mrf.mxu1  ;;  %v2269_v15 = vmul.f32 %v6067_v34, %v11708_v23  ;;  %v6303_v56 = vld [vmem:[%s11004_s0 + $0x380] sm:$0xff]   ;;  %v4442_v23 = vld [vmem:[%s11007_s3 + $0x1f0] sm:$0xff] }
 0x469   :  { %v4367_v46 = vmax.f32 %v4111_v3, 0.0  ;;  %6572 = vmatpush3.bf16.msra.mxu0 %v4541_v52  ;;  %v3721_v17 = vpop.permute.xlu0 %3720  ;;  %v10791_v53 = vadd.f32 %v6460_v2, %v10736_v59  ;;  %v6131_v2 = vunpack.c.h.bf16 %v6303_v56  ;;  %v11712_v8 = vld [vmem:[#allocation209_spill] sm:$0xff] }
 0x46a   :  { %v3726_v63 = vpop.permute.xlu1 %3725  ;;  %v4094_v39 = vadd.f32 %v3721_v17, %v2302_v41  ;;  %v6462_v55 = vpop.f32.mrf.mxu1  ;;  %v2316_v41 = vmul.f32 %v6162_v14, %v11711_v47 }
 0x46b   :  { %v4565_v24 = vpack.c.bf16 %v4367_v46, %v4366_v33  ;;  %v4095_v35 = vadd.f32 %v3726_v63, %v2303_v13  ;;  %v6463_v60 = vadd.f32 %v6462_v55, %v6461_v51  ;;  %v2317_v13 = vmul.f32 %v6163_v20, %v11710_v29 }
 0x46c   :  { %v4350_v48 = vmax.f32 %v4094_v39, 0.0  ;;  %v6464_v59 = vpop.f32.mrf.mxu1  ;;  %v6130_v51 = vunpack.c.l.bf16 %v6303_v56  ;;  %v4435_v56 = vld [vmem:[%s11007_s3 + $0x1b8] sm:$0xff] }
 0x46d   :  { %v4351_v21 = vmax.f32 %v4095_v35, 0.0  ;;  %6611 = vmatprep.subr.bf16.mxu1 %v4565_v24  ;;  %v3631_v49 = vpop.permute.xlu0 %3630  ;;  %v10799_v40 = vadd.f32 %v6463_v60, %v10744_v42  ;;  %v4410_v24 = vld [vmem:[%s11007_s3 + $0xf0] sm:$0xff]  ;;  %v2301_v60 = vmul.f32 %v6131_v2, %v11712_v8 }
 0x46e   :  { %v3636_v10 = vpop.permute.xlu1 %3635  ;;  %v4076_v54 = vadd.f32 %v3631_v49, %v2284_v36  ;;  %v6465_v31 = vpop.f32.mrf.mxu1  ;;  %v11713_v36 = vld [vmem:[#allocation210_spill] sm:$0xff] }
 0x46f   :  { %v4557_v6 = vpack.c.bf16 %v4351_v21, %v4350_v48  ;;  %v4077_v62 = vadd.f32 %v3636_v10, %v2285_v18  ;;  %v6466_v9 = vadd.f32 %v6465_v31, %v6464_v59  ;;  %v2300_v11 = vmul.f32 %v6130_v51, %v11713_v36  ;;  %v4403_v31 = vld [vmem:[%s11007_s3 + $0xb8] sm:$0xff] }
 0x470   :  { %v4332_v58 = vmax.f32 %v4076_v54, 0.0  ;;  %v6467_v42 = vpop.f32.mrf.mxu1  ;;  %v4426_v54 = vld [vmem:[%s11007_s3 + $0x170] sm:$0xff]  ;;  %v5647_v14 = vcombine.high %v4403_v31, %v4411_v27  ;;  %v5646_v57 = vcombine.low %v4403_v31, %v4411_v27 }
 0x471   :  { %v4333_v16 = vmax.f32 %v4077_v62, 0.0  ;;  %6612 = vmatpush3.bf16.msra.mxu1 %v4557_v6  ;;  %v3551_v52 = vpop.permute.xlu0 %3550  ;;  %v10807_v3 = vadd.f32 %v6466_v9, %v10752_v0  ;;  %v4402_v0 = vld [vmem:[%s11007_s3 + $0xb0] sm:$0xff] }
 0x472   :  { %v3556_v25 = vpop.permute.xlu1 %3555  ;;  %v4060_v38 = vadd.f32 %v3551_v52, %v2268_v61  ;;  %v6468_v32 = vpop.f32.mrf.mxu1  ;;  %v5645_v45 = vcombine.high %v4402_v0, %v4410_v24  ;;  %v4418_v62 = vld [vmem:[%s11007_s3 + $0x130] sm:$0xff] }
 0x473   :  { %v4548_v4 = vpack.c.bf16 %v4333_v16, %v4332_v58  ;;  %v4061_v12 = vadd.f32 %v3556_v25, %v2269_v15  ;;  %v6469_v22 = vadd.f32 %v6468_v32, %v6467_v42  ;;  %v5661_v20 = vcombine.high %v4418_v62, %v4426_v54  ;;  %v4434_v9 = vld [vmem:[%s11007_s3 + $0x1b0] sm:$0xff]  ;;  %v4419_v15 = vld [vmem:[%s11007_s3 + $0x138] sm:$0xff] }
 0x474   :  { %v4316_v33 = vmax.f32 %v4060_v38, 0.0  ;;  %v5660_v26 = vcombine.low %v4418_v62, %v4426_v54  ;;  %v5663_v61 = vcombine.high %v4419_v15, %v4427_v43  ;;  %v4443_v16 = vld [vmem:[%s11007_s3 + $0x1f8] sm:$0xff]  ;;  %v5676_v58 = vcombine.low %v4434_v9, %v4442_v23  ;;  %v10864_v32 = vpop.f32.mrf.mxu1  ;;  %s6666_s3 = smov [#allocation2]  }
 0x475   :  { %v4317_v46 = vmax.f32 %v4061_v12, 0.0  ;;  %6573 = vmatprep.subr.bf16.mxu0 %v4548_v4  ;;  %v3791_v17 = vpop.permute.xlu0 %3790  ;;  %v10818_v35 = vadd.f32 %v6469_v22, %v10760_v30  ;;  %v5662_v42 = vcombine.low %v4419_v15, %v4427_v43  ;;  %v5679_v25 = vcombine.high %v4435_v56, %v4443_v16  ;;  %v10858_v4 = vpop.f32.mrf.mxu0  ;;  %s5608_s22 = sshll.u32 %s6666_s3, 4  ;;  %s5609_s22 = int_to_ptr.vmem [resolvable:$true] %s5608_s22 }
 0x476   :  { %v3796_v63 = vpop.permute.xlu1 %3795  ;;  %v4108_v34 = vadd.f32 %v3791_v17, %v2316_v41  ;;  %v5678_v52 = vcombine.low %v4435_v56, %v4443_v16  ;;  %v10868_v22 = vpop.f32.mrf.mxu1  ;;  %s6643_s23 = scalar_lea.vmem %s5609_s22, 16  ;;  %s6647_s24 = scalar_lea.vmem %s5609_s22, 32 }
 0x477   :  { %v4540_v39 = vpack.c.bf16 %v4317_v46, %v4316_v33  ;;  %v4109_v55 = vadd.f32 %v3796_v63, %v2317_v13  ;;  %v10860_v12 = vpop.f32.mrf.mxu0  ;;  %p6644_p0 = scmp.ne.s32.totalorder %s5609_s22, %s6643_s23  ;;  %p6648_p1 = scmp.lt.s32.totalorder %s5609_s22, %s5609_s22 }
 0x478   :  { %v4364_v18 = vmax.f32 %v4108_v34, 0.0  ;;  %v10872_v13 = vpop.f32.mrf.mxu1  ;;  %p6649_p2 = scmp.lt.s32.totalorder %s6647_s24, %s6643_s23 }
 0x479   :  { %v4365_v28 = vmax.f32 %v4109_v55, 0.0  ;;  %6574 = vmatpush3.bf16.msra.mxu0 %v4540_v39  ;;  %v10862_v38 = vpop.f32.mrf.mxu0 }
 0x47a   :  { %v3716_v21 = vpop.permute.xlu1 %3715  ;;  %v3711_v10 = vpop.permute.xlu0 %3710  ;;  %p6650_p3 = por %p6649_p2, %p6648_p1 }
 0x47b   :  { %v4564_v48 = vpack.c.bf16 %v4365_v28, %v4364_v18  ;;  %v4093_v59 = vadd.f32 %v3716_v21, %v2301_v60  ;;  %v4092_v49 = vadd.f32 %v3711_v10, %v2300_v11  ;;  %v10866_v2 = vpop.f32.mrf.mxu0  ;;  %v10876_v41 = vpop.f32.mrf.mxu1 }
 0x47c   :  { %5315 = vmatmul.mubr.bf16.vlgmr.msra.gmra.mxu0 %v5628_v50  ;;  %v5644_v50 = vcombine.low %v4402_v0, %v4410_v24  ;;  %p6651_p4 = pnand %p6650_p3, %p6644_p0 }
 0x47d   :  { %v4349_v30 = vmax.f32 %v4093_v59, 0.0  ;;  %6613 = vmatprep.subr.bf16.mxu1 %v4564_v48  ;;  %5322 = vmatprep.mubr.bf16.mxu0 %v5645_v45  ;;  %v4348_v6 = vmax.f32 %v4092_v49, 0.0  ;;  %v10870_v29 = vpop.f32.mrf.mxu0  ;;  %v10878_v33 = vpop.f32.mrf.mxu1 }
 0x47e   :  { %v5423_v49 = vpop.permute.xlu0 %5422 }
 0x47f   :  { %v4556_v37 = vpack.c.bf16 %v4349_v30, %v4348_v6  ;;  %v10874_v47 = vpop.f32.mrf.mxu0  ;;  %v10880_v63 = vpop.f32.mrf.mxu1 }
 0x480   :  { %v10894_v6 = vpop.permute.xlu1 %5427 }
 0x481   :  { %6614 = vmatpush3.bf16.msra.mxu1 %v4556_v37 }
 0x482   :  { %v10900_v31 = vpop.permute.xlu0 %5432 }
 0x483   :  { %11714 = vst [vmem:[#allocation25_spill] sm:$0xff] %v10900_v31 }
 0x484   :  { %5323 = vmatmul.mubr.bf16.gmra.mxu0 %v5644_v50  ;;  %5380 = vmatmul.mubr.bf16.vlgmr.msra.gmra.mxu1 %v5630_v19  ;;  %v5677_v19 = vcombine.high %v4434_v9, %v4442_v23  ;;  %v10904_v37 = vpop.permute.xlu1 %5478 }
 0x485   :  { %5330 = vmatprep.mubr.bf16.mxu0 %v5661_v20  ;;  %5387 = vmatprep.mubr.bf16.mxu1 %v5647_v14 }
 0x486   :  { %v10910_v14 = vpop.permute.xlu0 %5483 }
 0x488   :  { %v10914_v23 = vpop.permute.xlu1 %5437 }
 0x489   :  { %11719 = vst [vmem:[#allocation24_spill] sm:$0xff] %v10914_v23 }
 0x48c   :  { %5331 = vmatmul.mubr.bf16.gmra.mxu0 %v5660_v26  ;;  %5388 = vmatmul.mubr.bf16.gmra.mxu1 %v5646_v57  ;;  %v10920_v26 = vpop.permute.xlu0 %5488 }
 0x48d   :  { %5338 = vmatprep.mubr.bf16.mxu0 %v5677_v19  ;;  %5395 = vmatprep.mubr.bf16.mxu1 %v5663_v61  ;;  %11722 = vst [vmem:[#allocation21_spill] sm:$0xff] %v10920_v26  ;;  %v10924_v19 = vpop.permute.xlu1 %5442 }
 0x48e   :  { %11724 = vst [vmem:[#allocation35_spill] sm:$0xff] %v10924_v19 }
 0x491   :  { %v10932_v23 = vpop.permute.xlu1 %5542 }
 0x492   :  { %11728 = vst [vmem:[#allocation247_spill] sm:$0xff] %v10932_v23 }
 0x494   :  { %5339 = vmatmul.mubr.bf16.gmra.mxu0 %v5676_v58  ;;  %5396 = vmatmul.mubr.bf16.gmra.mxu1 %v5662_v42  ;;  %v10928_v42 = vpop.permute.xlu0 %5493 }
 0x495   :  { %5403 = vmatprep.mubr.bf16.mxu1 %v5679_v25  ;;  %11726 = vst [vmem:[#allocation19_spill] sm:$0xff] %v10928_v42  ;;  %v10940_v31 = vpop.permute.xlu1 %5447 }
 0x49c   :  { %5404 = vmatmul.mubr.bf16.gmra.mxu1 %v5678_v52 }
 0x4a0   :  { %v6495_v46 = vpop.f32.mrf.mxu0 }
 0x4a2   :  { %v6496_v51 = vpop.f32.mrf.mxu0 }
 0x4a3   :  { %v6497_v16 = vadd.f32 %v6496_v51, %v6495_v46 }
 0x4a4   :  { %v6498_v17 = vpop.f32.mrf.mxu0 }
 0x4a6   :  { %v6499_v24 = vpop.f32.mrf.mxu0 }
 0x4a7   :  { %v6500_v26 = vadd.f32 %v6499_v24, %v6498_v17 }
 0x4a8   :  { %v6501_v55 = vpop.f32.mrf.mxu0 }
 0x4a9   :  { %v5190_v42 = vadd.f32 %v6500_v26, %v10791_v53 }
 0x4aa   :  { %v6502_v8 = vpop.f32.mrf.mxu0 }
 0x4ac   :  { %v6504_v28 = vpop.f32.mrf.mxu0 }
 0x4ae   :  { %v6505_v45 = vpop.f32.mrf.mxu0 }
 0x4b0   :  { %v10882_v11 = vpop.f32.mrf.mxu0 }
 0x4b2   :  { %v10886_v48 = vpop.f32.mrf.mxu0 }
 0x4b4   :  { %v10890_v10 = vpop.f32.mrf.mxu0 }
 0x4b6   :  { %v10896_v62 = vpop.f32.mrf.mxu0 }
 0x4b8   :  { %v10902_v27 = vpop.f32.mrf.mxu0 }
 0x4b9   :  { %11715 = vst [vmem:[#allocation26_spill] sm:$0xff] %v10902_v27 }
 0x4ba   :  { %v10908_v20 = vpop.f32.mrf.mxu0 }
 0x4bb   :  { %11717 = vst [vmem:[#allocation40_spill] sm:$0xff] %v10908_v20 }
 0x4bc   :  { %v10916_v15 = vpop.f32.mrf.mxu0 }
 0x4bd   :  { %11720 = vst [vmem:[#allocation37_spill] sm:$0xff] %v10916_v15  ;;  %v5187_v15 = vadd.f32 %v6497_v16, %v10783_v44 }
 0x4be   :  { %v10922_v57 = vpop.f32.mrf.mxu0 }
 0x4bf   :  { %11723 = vst [vmem:[#allocation22_spill] sm:$0xff] %v10922_v57 }
 0x4db   :  { %v6535_v0 = vpop.f32.mrf.mxu1 }
 0x4dd   :  { %v6536_v39 = vpop.f32.mrf.mxu1 }
 0x4df   :  { %v6538_v34 = vpop.f32.mrf.mxu1 }
 0x4e1   :  { %v6539_v60 = vpop.f32.mrf.mxu1 }
 0x4e3   :  { %v6541_v18 = vpop.f32.mrf.mxu1 }
 0x4e5   :  { %v6542_v36 = vpop.f32.mrf.mxu1 }
 0x4e7   :  { %v10884_v21 = vpop.f32.mrf.mxu1 }
 0x4e9   :  { %v10888_v59 = vpop.f32.mrf.mxu1 }
 0x4eb   :  { %v10892_v30 = vpop.f32.mrf.mxu1 }
 0x4ed   :  { %v10898_v54 = vpop.f32.mrf.mxu1 }
 0x4ef   :  { %v10906_v50 = vpop.f32.mrf.mxu1 }
 0x4f0   :  { %11716 = vst [vmem:[#allocation39_spill] sm:$0xff] %v10906_v50 }
 0x4f1   :  { %v10912_v9 = vpop.f32.mrf.mxu1 }
 0x4f2   :  { %11718 = vst [vmem:[#allocation23_spill] sm:$0xff] %v10912_v9  ;;  %v6540_v9 = vadd.f32 %v6539_v60, %v6538_v34 }
 0x4f3   :  { %v10918_v43 = vpop.f32.mrf.mxu1 }
 0x4f4   :  { %11721 = vst [vmem:[#allocation38_spill] sm:$0xff] %v10918_v43  ;;  %v6537_v43 = vadd.f32 %v6536_v39, %v6535_v0  ;;  %v6432_v39 = vadd.f32 %v10860_v12, %v10858_v4  ;;  %v10949_v4 = vpop.permute.xlu1 %5552 }
 0x4f5   :  { %v10926_v61 = vpop.f32.mrf.mxu1 }
 0x4f6   :  { %11725 = vst [vmem:[#allocation36_spill] sm:$0xff] %v10926_v61  ;;  %v10937_v61 = vpop.permute.xlu0 %5547  ;;  %v5252_v51 = vadd.f32 %v6537_v43, %v5187_v15  ;;  %v6543_v43 = vadd.f32 %v6542_v36, %v6541_v18  ;;  %v5076_v12 = vadd.f32 %v6432_v39, %v10711_v5  ;;  %v6509_v18 = vadd.f32 %v10886_v48, %v10882_v11 }
 0x4f7   :  { %v10930_v25 = vpop.f32.mrf.mxu1  ;;  %v6475_v5 = vadd.f32 %v10876_v41, %v10872_v13  ;;  %v6512_v13 = vadd.f32 %v10896_v62, %v10890_v10  ;;  %v11729_v10 = vld [vmem:[#allocation25_spill] sm:$0xff] }
 0x4f8   :  { %11727 = vst [vmem:[#allocation20_spill] sm:$0xff] %v10930_v25  ;;  %v6503_v25 = vadd.f32 %v6502_v8, %v6501_v55  ;;  %v6435_v8 = vadd.f32 %v10866_v2, %v10862_v38  ;;  %v6546_v2 = vadd.f32 %v10888_v59, %v10884_v21 }
 0x4f9   :  { %v10935_v57 = vpop.f32.mrf.mxu1 }
 0x4fa   :  { %v5195_v15 = vadd.f32 %v6503_v25, %v10799_v40  ;;  %v10945_v55 = vpop.permute.xlu0 %5498  ;;  %v6472_v40 = vadd.f32 %v10868_v22, %v10864_v32 }
 0x4fc   :  { %v5260_v38 = vadd.f32 %v6543_v43, %v5195_v15  ;;  %v5141_v59 = vadd.f32 %v6472_v40, %v5076_v12  ;;  %v11731_v15 = vld [vmem:[#allocation23_spill] sm:$0xff] }
 0x4fe   :  { %v10966_v21 = vpop.permute.xlu0 %5452 }
 0x53c   :  { %v6575_v56 = vpop.f32.mrf.mxu0 }
 0x53e   :  { %v6576_v58 = vpop.f32.mrf.mxu0 }
 0x53f   :  { %v6577_v19 = vadd.f32 %v6576_v58, %v6575_v56  ;;  %v6506_v56 = vadd.f32 %v6505_v45, %v6504_v28  ;;  %v5255_v58 = vadd.f32 %v6540_v9, %v5190_v42 }
 0x540   :  { %v6578_v52 = vpop.f32.mrf.mxu0 }
 0x541   :  { %v5317_v44 = vadd.f32 %v6577_v19, %v5252_v51  ;;  %v5198_v28 = vadd.f32 %v6506_v56, %v10807_v3  ;;  %v6438_v3 = vadd.f32 %v10874_v47, %v10870_v29  ;;  %v10974_v51 = vpop.permute.xlu1 %5503 }
 0x542   :  { %v6579_v20 = vpop.f32.mrf.mxu0 }
 0x543   :  { %v6580_v0 = vadd.f32 %v6579_v20, %v6578_v52  ;;  %v5263_v29 = vadd.f32 %v6546_v2, %v5198_v28  ;;  %v11736_v2 = vld [vmem:[#allocation24_spill] sm:$0xff] }
 0x544   :  { %v6581_v27 = vpop.f32.mrf.mxu0  ;;  %v6615_v46 = vpop.f32.mrf.mxu1 }
 0x545   :  { %v5320_v20 = vadd.f32 %v6580_v0, %v5255_v58  ;;  %v5084_v0 = vadd.f32 %v6438_v3, %v10725_v7  ;;  %v11730_v58 = vld [vmem:[#allocation39_spill] sm:$0xff] }
 0x546   :  { %v6582_v50 = vpop.f32.mrf.mxu0  ;;  %v6616_v23 = vpop.f32.mrf.mxu1  ;;  %v6552_v43 = vadd.f32 %v11731_v15, %v11730_v58 }
 0x547   :  { %v6617_v17 = vadd.f32 %v6616_v23, %v6615_v46  ;;  %v6583_v23 = vadd.f32 %v6582_v50, %v6581_v27  ;;  %v5081_v50 = vadd.f32 %v6435_v8, %v10718_v1  ;;  %v6549_v1 = vadd.f32 %v10898_v54, %v10892_v30 }
 0x548   :  { %v6584_v24 = vpop.f32.mrf.mxu0  ;;  %v6618_v16 = vpop.f32.mrf.mxu1 }
 0x549   :  { %v5382_v53 = vadd.f32 %v6617_v17, %v5317_v44  ;;  %v5325_v22 = vadd.f32 %v6583_v23, %v5260_v38  ;;  %v5146_v44 = vadd.f32 %v6475_v5, %v5081_v50  ;;  %v5458_v50 = vpop.permute.xlu1 %5457 }
 0x54a   :  { %v6585_v34 = vpop.f32.mrf.mxu0  ;;  %v6619_v60 = vpop.f32.mrf.mxu1 }
 0x54b   :  { %v5460_v26 = vmul.f32 %v5423_v49, %v5382_v53  ;;  %v6620_v19 = vadd.f32 %v6619_v60, %v6618_v16  ;;  %v6586_v11 = vadd.f32 %v6585_v34, %v6584_v24  ;;  %v11732_v53 = vld [vmem:[#allocation26_spill] sm:$0xff]  ;;  %v11733_v34 = vld [vmem:[#allocation40_spill] sm:$0xff]  ;;  %v11734_v60 = vld [vmem:[#allocation247_spill] sm:$0xff] }
 0x54c   :  { %v6587_v52 = vpop.f32.mrf.mxu0  ;;  %v6621_v45 = vpop.f32.mrf.mxu1  ;;  %v6515_v8 = vadd.f32 %v11733_v34, %v11732_v53 }
 0x54d   :  { %v5516_v36 = vadd.f32 %v10904_v37, %v5460_v26  ;;  %v5385_v49 = vadd.f32 %v6620_v19, %v5320_v20  ;;  %v5203_v37 = vadd.f32 %v6509_v18, %v10818_v35  ;;  %v6478_v35 = vadd.f32 %v10880_v63, %v10878_v33  ;;  %v11735_v63 = vld [vmem:[#allocation21_spill] sm:$0xff] }
 0x54e   :  { %v6588_v27 = vpop.f32.mrf.mxu0  ;;  %v6622_v32 = vpop.f32.mrf.mxu1  ;;  %v5328_v54 = vadd.f32 %v6586_v11, %v5263_v29  ;;  %v5211_v3 = vadd.f32 %v6515_v8, %v5146_v44  ;;  %v11739_v11 = vld [vmem:[#allocation37_spill] sm:$0xff] }
 0x54f   :  { %v5461_v48 = vmul.f32 %v10894_v6, %v5385_v49  ;;  %v6623_v9 = vadd.f32 %v6622_v32, %v6621_v45  ;;  %v5524_v47 = vmax.f32 %v5516_v36, 0.0  ;;  %v6589_v17 = vadd.f32 %v6588_v27, %v6587_v52  ;;  %v5558_v52 = vpop.permute.xlu0 %5557  ;;  %v11737_v32 = vld [vmem:[#allocation38_spill] sm:$0xff] }
 0x550   :  { %v6590_v42 = vpop.f32.mrf.mxu0  ;;  %v6624_v41 = vpop.f32.mrf.mxu1  ;;  %v5268_v16 = vadd.f32 %v6549_v1, %v5203_v37  ;;  %v5149_v12 = vadd.f32 %v6478_v35, %v5084_v0 }
 0x551   :  { %v5517_v25 = vadd.f32 %v10910_v14, %v5461_v48  ;;  %v5390_v46 = vadd.f32 %v6623_v9, %v5325_v22  ;;  %v5206_v14 = vadd.f32 %v6512_v13, %v5141_v59  ;;  %v5580_v20 = vmul.f32 %v11734_v60, %v5524_v47  ;;  %v11740_v48 = vld [vmem:[#allocation22_spill] sm:$0xff] }
 0x552   :  { %v6591_v6 = vpop.f32.mrf.mxu0  ;;  %v6625_v30 = vpop.f32.mrf.mxu1  ;;  %v5333_v40 = vadd.f32 %v6589_v17, %v5268_v16  ;;  %v6518_v9 = vadd.f32 %v11740_v48, %v11739_v11 }
 0x553   :  { %v5525_v24 = vmax.f32 %v5517_v25, 0.0  ;;  %v5462_v62 = vmul.f32 %v11729_v10, %v5390_v46  ;;  %v6626_v39 = vadd.f32 %v6625_v30, %v6624_v41  ;;  %v6592_v28 = vadd.f32 %v6591_v6, %v6590_v42  ;;  %v11741_v42 = vld [vmem:[#allocation19_spill] sm:$0xff]  ;;  %v5509_v17 = vpop.permute.xlu0 %5508 }
 0x554   :  { %v6593_v56 = vpop.f32.mrf.mxu0  ;;  %v6627_v7 = vpop.f32.mrf.mxu1  ;;  %v5271_v5 = vadd.f32 %v6552_v43, %v5206_v14  ;;  %v11742_v6 = vld [vmem:[#allocation35_spill] sm:$0xff] }
 0x555   :  { %v5581_v33 = vmul.f32 %v10937_v61, %v5525_v24  ;;  %v5518_v23 = vadd.f32 %v11735_v63, %v5462_v62  ;;  %v5393_v26 = vadd.f32 %v6626_v39, %v5328_v54  ;;  %v11738_v61 = vld [vmem:[#allocation36_spill] sm:$0xff]  ;;  %v5214_v54 = vadd.f32 %v6518_v9, %v5149_v12  ;;  %v5563_v14 = vpop.permute.xlu1 %5562 }
 0x556   :  { %v6594_v19 = vpop.f32.mrf.mxu0  ;;  %v6628_v18 = vpop.f32.mrf.mxu1  ;;  %v6555_v22 = vadd.f32 %v11738_v61, %v11737_v32  ;;  %v5336_v41 = vadd.f32 %v6592_v28, %v5271_v5  ;;  %v11743_v24 = vld [vmem:[#allocation20_spill] sm:$0xff] }
 0x557   :  { %v5588_v45 = vadd.f32 %v5581_v33, %v5580_v20  ;;  %v5526_v38 = vmax.f32 %v5518_v23, 0.0  ;;  %v5463_v36 = vmul.f32 %v11736_v2, %v5393_v26  ;;  %v6629_v49 = vadd.f32 %v6628_v18, %v6627_v7  ;;  %v5514_v63 = vpop.permute.xlu0 %5513 }
 0x558   :  { %v6596_v27 = vpop.f32.mrf.mxu0  ;;  %v6630_v59 = vpop.f32.mrf.mxu1  ;;  %v6595_v29 = vadd.f32 %v6594_v19, %v6593_v56  ;;  %v5276_v30 = vadd.f32 %v6555_v22, %v5211_v3  ;;  %v6558_v10 = vadd.f32 %v10935_v57, %v11743_v24 }
 0x559   :  { %v5582_v37 = vmul.f32 %v10949_v4, %v5526_v38  ;;  %v5519_v1 = vadd.f32 %v11741_v42, %v5463_v36  ;;  %v5398_v13 = vadd.f32 %v6629_v49, %v5333_v40  ;;  %v5568_v40 = vpop.permute.xlu1 %5567 }
 0x55a   :  { %v6631_v47 = vpop.f32.mrf.mxu1  ;;  %v6597_v44 = vpop.f32.mrf.mxu0  ;;  %v5341_v56 = vadd.f32 %v6595_v29, %v5276_v30  ;;  %v5279_v7 = vadd.f32 %v6558_v10, %v5214_v54 }
 0x55b   :  { %v5589_v25 = vadd.f32 %v5588_v45, %v5582_v37  ;;  %v5527_v46 = vmax.f32 %v5519_v1, 0.0  ;;  %v5464_v0 = vmul.f32 %v11742_v6, %v5398_v13  ;;  %v6632_v35 = vadd.f32 %v6631_v47, %v6630_v59  ;;  %v5573_v36 = vpop.permute.xlu0 %5572 }
 0x55c   :  { %v6633_v62 = vpop.f32.mrf.mxu1  ;;  %v6598_v58 = vadd.f32 %v6597_v44, %v6596_v27 }
 0x55d   :  { %v5583_v4 = vmul.f32 %v5558_v52, %v5527_v46  ;;  %v5520_v39 = vadd.f32 %v10945_v55, %v5464_v0  ;;  %v5401_v16 = vadd.f32 %v6632_v35, %v5336_v41  ;;  %v5578_v3 = vpop.permute.xlu1 %5577 }
 0x55e   :  { %v6634_v15 = vpop.f32.mrf.mxu1  ;;  %v5344_v23 = vadd.f32 %v6598_v58, %v5279_v7 }
 0x55f   :  { %v5590_v43 = vadd.f32 %v5589_v25, %v5583_v4  ;;  %v5528_v53 = vmax.f32 %v5520_v39, 0.0  ;;  %v5465_v34 = vmul.f32 %v10940_v31, %v5401_v16  ;;  %v6635_v8 = vadd.f32 %v6634_v15, %v6633_v62 }
 0x560   :  { %v6636_v60 = vpop.f32.mrf.mxu1 }
 0x561   :  { %v5584_v20 = vmul.f32 %v5563_v14, %v5528_v53  ;;  %v5521_v33 = vadd.f32 %v10974_v51, %v5465_v34  ;;  %v5406_v57 = vadd.f32 %v6635_v8, %v5341_v56 }
 0x562   :  { %v6637_v26 = vpop.f32.mrf.mxu1 }
 0x563   :  { %v5591_v55 = vadd.f32 %v5590_v43, %v5584_v20  ;;  %v5529_v19 = vmax.f32 %v5521_v33, 0.0  ;;  %v5466_v52 = vmul.f32 %v10966_v21, %v5406_v57  ;;  %v6638_v12 = vadd.f32 %v6637_v26, %v6636_v60 }
 0x565   :  { %v5585_v28 = vmul.f32 %v5568_v40, %v5529_v19  ;;  %v5522_v18 = vadd.f32 %v5509_v17, %v5466_v52  ;;  %v5409_v45 = vadd.f32 %v6638_v12, %v5344_v23 }
 0x567   :  { %v5592_v31 = vadd.f32 %v5591_v55, %v5585_v28  ;;  %v5530_v38 = vmax.f32 %v5522_v18, 0.0  ;;  %v5467_v2 = vmul.f32 %v5458_v50, %v5409_v45 }
 0x569   :  { %v5586_v49 = vmul.f32 %v5573_v36, %v5530_v38  ;;  %v5523_v27 = vadd.f32 %v5514_v63, %v5467_v2 }
 0x56b   :  { %v5531_v51 = vmax.f32 %v5523_v27, 0.0  ;;  %v5593_v5 = vadd.f32 %v5592_v31, %v5586_v49 }
 0x56d   :  { %v5587_v32 = vmul.f32 %v5578_v3, %v5531_v51 }
 0x56f   :  { %v5594_v61 = vadd.f32 %v5593_v5, %v5587_v32 }
 0x571   :  { %v5595_v22 = vrot.slane %v5594_v61, 4 }
 0x573   :  { %v5596_v11 = vadd.f32 %v5595_v22, %v5594_v61 }
 0x575   :  { %v5597_v48 = vrot.slane %v5596_v11, 2 }
 0x577   :  { %v5598_v21 = vadd.f32 %v5597_v48, %v5596_v11 }
 0x579   :  { %v5599_v9 = vrot.slane %v5598_v21, 1 }
 0x57b   :  { %v5600_v59 = vadd.f32 %v5599_v9, %v5598_v21 }
 0x57d   :  { %5601 = vst [vmem:[#allocation2] sm:$0x1] %v5600_v59 }
 0x57e   :  { %6654 = shalt.err (!%p6651_p4)
}
 0x57f   :  { %5611 = dma.vmem_to_hbm [thread:$0]  %s5609_s22, 16, %s11011_s7, [#allocation3]  }
 0x580   :  { %6663 = dma.done.wait [#allocation3], 16  }
 0x581   :  { %6664 = vsyncadd [#allocation3], 4294967280 }
 0x582   :  { %5615 = vsyncpa [#allocation3], 1 }

</bundles_post_ra>
